<compile_context>
chip_gen: v5e
topology: v5e:2x2
jax: 0.10.0
libtpu: 0.0.40
codegen_flags: <defaults>
</compile_context>

<pallas_src>
import functools
import math

import jax
import jax.numpy as jnp
from jax import lax
from jax.experimental import pallas as pl
from jax.experimental.pallas import tpu as pltpu


def _prototype_kernel(q_ref, k_ref, v_ref, key_ref,
                      wq_ref, bq_ref, wk_ref, bk_ref, wv_ref, bv_ref,
                      wo_ref, bo_ref,
                      out_ref, losses_ref,
                      qp_ref, kp_ref, vp_ref, concat_ref,
                      *, batch_block, tokens, proto_size, proto_dim, eps=1e-5):
    """One grid step == `batch_block` batch elements.  Everything fits in VMEM."""
    bt, N = batch_block, tokens
    P, D = proto_size, proto_dim
    scale = jnp.float32(1.0 / math.sqrt(D))

    # Fused q/k/v projections across the whole block: M = bt*N rows on the MXU,
    # bf16 operands, f32 accumulation.  Stored to bf16 scratch so per-batch
    # attention reads are plain dynamic ref slices.
    qp_ref[...] = (jnp.dot(q_ref[...], wq_ref[...],
                           preferred_element_type=jnp.float32)
                   + bq_ref[...]).astype(qp_ref.dtype)
    kp_ref[...] = (jnp.dot(k_ref[...], wk_ref[...],
                           preferred_element_type=jnp.float32)
                   + bk_ref[...]).astype(kp_ref.dtype)
    vp_ref[...] = (jnp.dot(v_ref[...], wv_ref[...],
                           preferred_element_type=jnp.float32)
                   + bv_ref[...]).astype(vp_ref.dtype)

    def attn_body(b, carry):
        sep, ortho = carry
        row = pl.multiple_of(b * N, N)
        qb = qp_ref[pl.ds(row, N), :]          # (N, P*D) bf16
        kb = kp_ref[pl.ds(row, N), :]
        vb = vp_ref[pl.ds(row, N), :]

        head_outs = []
        for h in range(P):                      # static, P is small
            lo = h * D
            qh = qb[:, lo:lo + D]               # (N, D) bf16
            kh = kb[:, lo:lo + D]
            vh = vb[:, lo:lo + D]

            # scaled dot-product attention, softmax over dim=-1
            s = lax.dot_general(qh, kh, (((1,), (1,)), ((), ())),
                                preferred_element_type=jnp.float32) * scale
            s = s - jnp.max(s, axis=-1, keepdims=True)
            e = jnp.exp(s)
            pw = e * pl.reciprocal(jnp.sum(e, axis=-1, keepdims=True),
                                   approx=True)            # (N, N) f32
            pw16 = pw.astype(jnp.bfloat16)

            head_outs.append(
                jnp.dot(pw16, vh, preferred_element_type=jnp.float32))

            # inter_head_ortho_loss (r = 1):
            #   ||P P^T - I||_F^2 = sum(PPT^2) - 2*tr(PPT) + N, tr = sum(P^2)
            row_sq = jnp.sum(pw * pw, axis=-1, keepdims=True)        # (N, 1)
            ppt = lax.dot_general(pw16, pw16, (((1,), (1,)), ((), ())),
                                  preferred_element_type=jnp.float32)
            ortho_sq = (jnp.sum(ppt * ppt) - 2.0 * jnp.sum(row_sq)
                        + jnp.float32(N))
            ortho = ortho + jnp.sqrt(jnp.maximum(ortho_sq, 0.0))

            # inter_head_separation_loss partial:
            #   sum(pwn pwn^T) - 2N = ||sum over rows of pwn||^2 - 2N
            colsum = jnp.sum(pw * lax.rsqrt(row_sq), axis=0, keepdims=True)
            sep = sep + jnp.sum(colsum * colsum) - 2.0 * jnp.float32(N)

        # implicit "concat heads": ONE lane-dense store per batch element
        concat_ref[pl.ds(row, N), :] = jnp.concatenate(
            head_outs, axis=-1).astype(concat_ref.dtype)
        return sep, ortho

    sep, ortho = lax.fori_loop(
        0, bt, attn_body,
        (jnp.zeros((1, 1), jnp.float32), jnp.zeros((1, 1), jnp.float32)))

    # single fused output projection + residual (stored un-normalized)
    out_ref[...] = (jnp.dot(concat_ref[...], wo_ref[...],
                            preferred_element_type=jnp.float32)
                    + bo_ref[...] + key_ref[...]).astype(out_ref.dtype)

    # InstanceNorm2d (affine=False): per batch element, per channel over N.
    # Single fused pass: sum and sum-of-squares together.
    @pl.loop(0, bt)
    def _(b):
        row = pl.multiple_of(b * N, N)
        yb = out_ref[pl.ds(row, N), :]
        mean = jnp.sum(yb, axis=0, keepdims=True) * (1.0 / N)
        ex2 = jnp.sum(yb * yb, axis=0, keepdims=True) * (1.0 / N)
        var = ex2 - mean * mean
        out_ref[pl.ds(row, N), :] = (
            (yb - mean) * lax.rsqrt(var + eps)).astype(out_ref.dtype)

    # both loss partials in one small store
    lane = lax.broadcasted_iota(jnp.int32, (1, 1, 2), 2)
    losses_ref[...] = jnp.where(lane == 0, sep, ortho)


def prototype_forward(key, q, k, v, params, *, proto_size, proto_dim,
                      batch_block=None):
    """Equivalent of Prototype.forward(key, q, k, v, mode='train')."""
    B, C, H, W = q.shape
    N = H * W
    F_ = C
    PD = proto_size * proto_dim

    if batch_block is None:
        # Fewer, fatter grid steps (amortize per-step overhead / weight
        # re-fetch): grow towards ~1024 rows per step, but keep nb >= 2 when
        # possible so v7x can shard the "parallel" axis across its two TCs.
        batch_block = 1
        target_rows = 1024
        while (B % (batch_block * 2) == 0
               and batch_block * 2 * N <= target_rows
               and B // (batch_block * 2) >= 2):
            batch_block *= 2
    assert B % batch_block == 0
    nb = B // batch_block
    rows = batch_block * N

    bf16, f32 = jnp.bfloat16, jnp.float32

    # torch .view(B, h*w, dims) is a raw row-major reshape (NOT a transpose)
    q_t = q.reshape(B * N, F_).astype(bf16)
    k_t = k.reshape(B * N, F_).astype(bf16)
    v_t = v.reshape(B * N, F_).astype(bf16)
    # residual key: genuine NCHW -> (B, N, C) transpose, then flatten (kept f32)
    key_t = key.reshape(B, F_, N).transpose(0, 2, 1).reshape(B * N, F_).astype(f32)

    wq = params["wq"].astype(bf16); bq = params["bq"].astype(f32)
    wk = params["wk"].astype(bf16); bk = params["bk"].astype(f32)
    wv = params["wv"].astype(bf16); bv = params["bv"].astype(f32)
    wo = params["wo"].astype(bf16); bo = params["bo"].astype(f32)

    kernel = functools.partial(
        _prototype_kernel, batch_block=batch_block, tokens=N,
        proto_size=proto_size, proto_dim=proto_dim)

    grid_spec = pltpu.PrefetchScalarGridSpec(
        num_scalar_prefetch=0,
        grid=(nb,),
        in_specs=[
            pl.BlockSpec((rows, F_), lambda b: (b, 0)),   # q (bf16)
            pl.BlockSpec((rows, F_), lambda b: (b, 0)),   # k (bf16)
            pl.BlockSpec((rows, F_), lambda b: (b, 0)),   # v (bf16)
            pl.BlockSpec((rows, F_), lambda b: (b, 0)),   # key residual (f32)
            pl.BlockSpec((F_, PD), lambda b: (0, 0)),     # w_q
            pl.BlockSpec((1, PD), lambda b: (0, 0)),      # b_q
            pl.BlockSpec((F_, PD), lambda b: (0, 0)),     # w_k
            pl.BlockSpec((1, PD), lambda b: (0, 0)),      # b_k
            pl.BlockSpec((F_, PD), lambda b: (0, 0)),     # w_v
            pl.BlockSpec((1, PD), lambda b: (0, 0)),      # b_v
            pl.BlockSpec((PD, F_), lambda b: (0, 0)),     # w_out
            pl.BlockSpec((1, F_), lambda b: (0, 0)),      # b_out
        ],
        out_specs=[
            pl.BlockSpec((rows, F_), lambda b: (b, 0)),   # output, (B*N, C) layout
            pl.BlockSpec((1, 1, 2), lambda b: (b, 0, 0)), # [sep, ortho] partials
        ],
        scratch_shapes=[
            pltpu.VMEM((rows, PD), bf16),   # q projection
            pltpu.VMEM((rows, PD), bf16),   # k projection
            pltpu.VMEM((rows, PD), bf16),   # v projection
            pltpu.VMEM((rows, PD), bf16),   # concatenated head outputs
        ],
    )

    out_flat, losses = pl.pallas_call(
        kernel,
        out_shape=(
            jax.ShapeDtypeStruct((B * N, F_), jnp.float32),
            jax.ShapeDtypeStruct((nb, 1, 2), jnp.float32),
        ),
        grid_spec=grid_spec,
        compiler_params=pltpu.CompilerParams(
            dimension_semantics=("parallel",),
            vmem_limit_bytes=32 * 1024 * 1024),
    )(q_t, k_t, v_t, key_t, wq, bq, wk, bk, wv, bv, wo, bo)

    output = out_flat.reshape(B, N, F_).transpose(0, 2, 1).reshape(B, F_, H, W)
    separation_loss = jnp.sum(losses[:, 0, 0]) / (
        B * N * proto_size * (proto_size - 1))
    ortho_loss = jnp.sum(losses[:, 0, 1])
    return output, separation_loss, ortho_loss


def _reference_forward(key, q, k, v, params, *, proto_size, proto_dim, eps=1e-5):
    """Pure-JAX mirror of the PyTorch forward (mode='train'), for checking."""
    B, C, H, W = q.shape
    N = H * W
    P, D = proto_size, proto_dim

    def lin(x, w, b):
        return x @ w + b

    qr = q.reshape(B, N, C)
    kr = k.reshape(B, N, C)
    vr = v.reshape(B, N, C)
    qh = lin(qr, params["wq"], params["bq"]).reshape(B, N, P, D).transpose(0, 2, 1, 3)
    kh = lin(kr, params["wk"], params["bk"]).reshape(B, N, P, D).transpose(0, 2, 1, 3)
    vh = lin(vr, params["wv"], params["bv"]).reshape(B, N, P, D).transpose(0, 2, 1, 3)

    s = jnp.einsum('bpnd,bpmd->bpnm', qh, kh) / math.sqrt(D)
    pw = jax.nn.softmax(s, axis=-1)                              # (B, P, N, N)
    o = jnp.einsum('bpnm,bpmd->bpnd', pw, vh)
    o = o.transpose(0, 2, 1, 3).reshape(B, N, P * D)
    o = lin(o, params["wo"], params["bo"])                       # (B, N, C)
    o = o.reshape(B, H, W, C).transpose(0, 3, 1, 2)              # (B, C, H, W)

    y = o + key
    mean = y.mean(axis=(2, 3), keepdims=True)
    var = ((y - mean) ** 2).mean(axis=(2, 3), keepdims=True)
    out = (y - mean) / jnp.sqrt(var + eps)

    eye = jnp.eye(N)
    pwn = pw / jnp.linalg.norm(pw, axis=-1, keepdims=True)
    sim = jnp.einsum('bpld,bpjd->bpjl', pwn, pwn) - 2.0 * eye
    sep = jnp.sum(sim) / (B * N * P * (P - 1))
    ppt = jnp.einsum('bpnk,bpmk->bpnm', pw, pw) - eye
    ortho = jnp.sum(jnp.sqrt(jnp.sum(ppt ** 2, axis=(-1, -2))))
    return out, sep, ortho


def _init_params(rng, feature_dim, proto_size, proto_dim):
    """Deterministic nn.Linear-style init (weights stored as (in, out))."""
    PD = proto_size * proto_dim

    def linear(key_, fan_in, fan_out):
        kw, kb = jax.random.split(key_)
        bound = 1.0 / math.sqrt(fan_in)
        w = jax.random.uniform(kw, (fan_in, fan_out), jnp.float32, -bound, bound)
        b = jax.random.uniform(kb, (1, fan_out), jnp.float32, -bound, bound)
        return w, b

    k1, k2, k3, k4 = jax.random.split(rng, 4)
    wq, bq = linear(k1, feature_dim, PD)
    wk, bk = linear(k2, feature_dim, PD)
    wv, bv = linear(k3, feature_dim, PD)
    wo, bo = linear(k4, PD, feature_dim)
    return dict(wq=wq, bq=bq, wk=wk, bk=bk, wv=wv, bv=bv, wo=wo, bo=bo)


if __name__ == "__main__":
    # small, module-consistent shapes
    B, C, H, W = 4, 32, 8, 8          # feature_dim = 32, N = h*w = 64
    PROTO_SIZE, PROTO_DIM = 4, 16     # proto_size * proto_dim = 64

    root = jax.random.PRNGKey(0)
    kx, kq, kk, kv, kp = jax.random.split(root, 5)
    key_in = jax.random.normal(kx, (B, C, H, W), jnp.float32)
    q_in = jax.random.normal(kq, (B, C, H, W), jnp.float32)
    k_in = jax.random.normal(kk, (B, C, H, W), jnp.float32)
    v_in = jax.random.normal(kv, (B, C, H, W), jnp.float32)
    params = _init_params(kp, C, PROTO_SIZE, PROTO_DIM)

    out, sep_loss, ortho_loss = prototype_forward(
        key_in, q_in, k_in, v_in, params,
        proto_size=PROTO_SIZE, proto_dim=PROTO_DIM)
    jax.block_until_ready((out, sep_loss, ortho_loss))

    # sanity check against a pure-JAX mirror of the torch forward
    # (scoped high-precision reference; no process-global config changes)
    with jax.default_matmul_precision("highest"):
        ref_out, ref_sep, ref_ortho = _reference_forward(
            key_in, q_in, k_in, v_in, params,
            proto_size=PROTO_SIZE, proto_dim=PROTO_DIM)
    assert out.shape == (B, C, H, W)
    assert jnp.allclose(out, ref_out, rtol=2e-2, atol=2e-2)
    assert jnp.allclose(sep_loss, ref_sep, rtol=2e-2, atol=2e-2)
    assert jnp.allclose(ortho_loss, ref_ortho, rtol=2e-2, atol=2e-2)

    print("KERNEL_OK")
</pallas_src>

<mosaic_0001>
module attributes {stable_mosaic.version = 11 : i64} {
  func.func @_prototype_kernel(%arg0: i32, %arg1: memref<128x32xbf16, #tpu.memory_space<vmem>>, %arg2: memref<128x32xbf16, #tpu.memory_space<vmem>>, %arg3: memref<128x32xbf16, #tpu.memory_space<vmem>>, %arg4: memref<128x32xf32, #tpu.memory_space<vmem>>, %arg5: memref<32x64xbf16, #tpu.memory_space<vmem>>, %arg6: memref<1x64xf32, #tpu.memory_space<vmem>>, %arg7: memref<32x64xbf16, #tpu.memory_space<vmem>>, %arg8: memref<1x64xf32, #tpu.memory_space<vmem>>, %arg9: memref<32x64xbf16, #tpu.memory_space<vmem>>, %arg10: memref<1x64xf32, #tpu.memory_space<vmem>>, %arg11: memref<64x32xbf16, #tpu.memory_space<vmem>>, %arg12: memref<1x32xf32, #tpu.memory_space<vmem>>, %arg13: memref<128x32xf32, #tpu.memory_space<vmem>>, %arg14: memref<1x1x2xf32, #tpu.memory_space<vmem>>, %arg15: memref<128x64xbf16, #tpu.memory_space<vmem>>, %arg16: memref<128x64xbf16, #tpu.memory_space<vmem>>, %arg17: memref<128x64xbf16, #tpu.memory_space<vmem>>, %arg18: memref<128x64xbf16, #tpu.memory_space<vmem>>) attributes {dimension_semantics = [#tpu.dimension_semantics<parallel>], iteration_bounds = array<i64: 2>, scalar_prefetch = 0 : i64, scratch_operands = 4 : i64, tpu.core_type = #tpu.core_type<tc>, window_params = [{transform_indices = @transform_0, window_bounds = array<i64: 128, 32>}, {transform_indices = @transform_1, window_bounds = array<i64: 128, 32>}, {transform_indices = @transform_2, window_bounds = array<i64: 128, 32>}, {transform_indices = @transform_3, window_bounds = array<i64: 128, 32>}, {pipeline_mode = #tpu.pipeline_mode<synchronous>, transform_indices = @transform_4, window_bounds = array<i64: 32, 64>}, {pipeline_mode = #tpu.pipeline_mode<synchronous>, transform_indices = @transform_5, window_bounds = array<i64: 1, 64>}, {pipeline_mode = #tpu.pipeline_mode<synchronous>, transform_indices = @transform_6, window_bounds = array<i64: 32, 64>}, {pipeline_mode = #tpu.pipeline_mode<synchronous>, transform_indices = @transform_7, window_bounds = array<i64: 1, 64>}, {pipeline_mode = #tpu.pipeline_mode<synchronous>, transform_indices = @transform_8, window_bounds = array<i64: 32, 64>}, {pipeline_mode = #tpu.pipeline_mode<synchronous>, transform_indices = @transform_9, window_bounds = array<i64: 1, 64>}, {pipeline_mode = #tpu.pipeline_mode<synchronous>, transform_indices = @transform_10, window_bounds = array<i64: 64, 32>}, {pipeline_mode = #tpu.pipeline_mode<synchronous>, transform_indices = @transform_11, window_bounds = array<i64: 1, 32>}, {transform_indices = @transform_12, window_bounds = array<i64: 128, 32>}, {transform_indices = @transform_13, window_bounds = array<i64: 1, 1, 2>}]} {
    %c0 = arith.constant 0 : index
    %c0_0 = arith.constant 0 : index
    %0 = vector.load %arg1[%c0, %c0_0] : memref<128x32xbf16, #tpu.memory_space<vmem>>, vector<128x32xbf16>
    %c0_1 = arith.constant 0 : index
    %c0_2 = arith.constant 0 : index
    %1 = vector.load %arg5[%c0_1, %c0_2] : memref<32x64xbf16, #tpu.memory_space<vmem>>, vector<32x64xbf16>
    %cst = arith.constant dense<0.000000e+00> : vector<128x64xf32>
    %2 = tpu.matmul %0, %1, %cst {dimension_numbers = #tpu.dot_dimension_numbers<[1], [0], [0], [1], [0, 0, 1, 1], [], []>} : vector<128x32xbf16>, vector<32x64xbf16>, vector<128x64xf32> -> vector<128x64xf32>
    %c0_3 = arith.constant 0 : index
    %c0_4 = arith.constant 0 : index
    %3 = vector.load %arg6[%c0_3, %c0_4] : memref<1x64xf32, #tpu.memory_space<vmem>>, vector<1x64xf32>
    %4 = vector.broadcast %3 : vector<1x64xf32> to vector<128x64xf32>
    %5 = arith.addf %2, %4 : vector<128x64xf32>
    %6 = arith.truncf %5 : vector<128x64xf32> to vector<128x64xbf16>
    %c0_5 = arith.constant 0 : index
    %c0_6 = arith.constant 0 : index
    %7 = vector.load %arg15[%c0_5, %c0_6] : memref<128x64xbf16, #tpu.memory_space<vmem>>, vector<128x64xbf16>
    tpu.vector_store %arg15[%c0_5, %c0_6], %6 {strides = array<i32>} : memref<128x64xbf16, #tpu.memory_space<vmem>>, vector<128x64xbf16>,
    %c0_7 = arith.constant 0 : index
    %c0_8 = arith.constant 0 : index
    %8 = vector.load %arg2[%c0_7, %c0_8] : memref<128x32xbf16, #tpu.memory_space<vmem>>, vector<128x32xbf16>
    %c0_9 = arith.constant 0 : index
    %c0_10 = arith.constant 0 : index
    %9 = vector.load %arg7[%c0_9, %c0_10] : memref<32x64xbf16, #tpu.memory_space<vmem>>, vector<32x64xbf16>
    %cst_11 = arith.constant dense<0.000000e+00> : vector<128x64xf32>
    %10 = tpu.matmul %8, %9, %cst_11 {dimension_numbers = #tpu.dot_dimension_numbers<[1], [0], [0], [1], [0, 0, 1, 1], [], []>} : vector<128x32xbf16>, vector<32x64xbf16>, vector<128x64xf32> -> vector<128x64xf32>
    %c0_12 = arith.constant 0 : index
    %c0_13 = arith.constant 0 : index
    %11 = vector.load %arg8[%c0_12, %c0_13] : memref<1x64xf32, #tpu.memory_space<vmem>>, vector<1x64xf32>
    %12 = vector.broadcast %11 : vector<1x64xf32> to vector<128x64xf32>
    %13 = arith.addf %10, %12 : vector<128x64xf32>
    %14 = arith.truncf %13 : vector<128x64xf32> to vector<128x64xbf16>
    %c0_14 = arith.constant 0 : index
    %c0_15 = arith.constant 0 : index
    %15 = vector.load %arg16[%c0_14, %c0_15] : memref<128x64xbf16, #tpu.memory_space<vmem>>, vector<128x64xbf16>
    tpu.vector_store %arg16[%c0_14, %c0_15], %14 {strides = array<i32>} : memref<128x64xbf16, #tpu.memory_space<vmem>>, vector<128x64xbf16>,
    %c0_16 = arith.constant 0 : index
    %c0_17 = arith.constant 0 : index
    %16 = vector.load %arg3[%c0_16, %c0_17] : memref<128x32xbf16, #tpu.memory_space<vmem>>, vector<128x32xbf16>
    %c0_18 = arith.constant 0 : index
    %c0_19 = arith.constant 0 : index
    %17 = vector.load %arg9[%c0_18, %c0_19] : memref<32x64xbf16, #tpu.memory_space<vmem>>, vector<32x64xbf16>
    %cst_20 = arith.constant dense<0.000000e+00> : vector<128x64xf32>
    %18 = tpu.matmul %16, %17, %cst_20 {dimension_numbers = #tpu.dot_dimension_numbers<[1], [0], [0], [1], [0, 0, 1, 1], [], []>} : vector<128x32xbf16>, vector<32x64xbf16>, vector<128x64xf32> -> vector<128x64xf32>
    %c0_21 = arith.constant 0 : index
    %c0_22 = arith.constant 0 : index
    %19 = vector.load %arg10[%c0_21, %c0_22] : memref<1x64xf32, #tpu.memory_space<vmem>>, vector<1x64xf32>
    %20 = vector.broadcast %19 : vector<1x64xf32> to vector<128x64xf32>
    %21 = arith.addf %18, %20 : vector<128x64xf32>
    %22 = arith.truncf %21 : vector<128x64xf32> to vector<128x64xbf16>
    %c0_23 = arith.constant 0 : index
    %c0_24 = arith.constant 0 : index
    %23 = vector.load %arg17[%c0_23, %c0_24] : memref<128x64xbf16, #tpu.memory_space<vmem>>, vector<128x64xbf16>
    tpu.vector_store %arg17[%c0_23, %c0_24], %22 {strides = array<i32>} : memref<128x64xbf16, #tpu.memory_space<vmem>>, vector<128x64xbf16>,
    %cst_25 = arith.constant 0.000000e+00 : f32
    %24 = vector.broadcast %cst_25 : f32 to vector<1x1xf32>
    %cst_26 = arith.constant 0.000000e+00 : f32
    %25 = vector.broadcast %cst_26 : f32 to vector<1x1xf32>
    %cst_27 = arith.constant 2.500000e-01 : f32
    %c0_i32 = arith.constant 0 : i32
    %c2_i32 = arith.constant 2 : i32
    %26 = arith.addi %c0_i32, %c2_i32 : i32
    %c1_i32 = arith.constant 1 : i32
    %27:2 = scf.for %arg19 = %c0_i32 to %26 step %c1_i32 iter_args(%arg20 = %24, %arg21 = %25) -> (vector<1x1xf32>, vector<1x1xf32>)  : i32 {
      %c64_i32 = arith.constant 64 : i32
      %47 = arith.muli %arg19, %c64_i32 : i32
      %48 = tpu.assume_multiple %47, 64 : i32
      %49 = arith.index_cast %48 : i32 to index
      %c0_48 = arith.constant 0 : index
      %50 = vector.load %arg15[%49, %c0_48] : memref<128x64xbf16, #tpu.memory_space<vmem>>, vector<64x64xbf16>
      %51 = arith.index_cast %48 : i32 to index
      %c0_49 = arith.constant 0 : index
      %52 = vector.load %arg16[%51, %c0_49] : memref<128x64xbf16, #tpu.memory_space<vmem>>, vector<64x64xbf16>
      %53 = arith.index_cast %48 : i32 to index
      %c0_50 = arith.constant 0 : index
      %54 = vector.load %arg17[%53, %c0_50] : memref<128x64xbf16, #tpu.memory_space<vmem>>, vector<64x64xbf16>
      %55 = vector.extract_strided_slice %50 {offsets = [0, 0], sizes = [64, 16], strides = [1, 1]} : vector<64x64xbf16> to vector<64x16xbf16>
      %56 = vector.extract_strided_slice %52 {offsets = [0, 0], sizes = [64, 16], strides = [1, 1]} : vector<64x64xbf16> to vector<64x16xbf16>
      %57 = vector.extract_strided_slice %54 {offsets = [0, 0], sizes = [64, 16], strides = [1, 1]} : vector<64x64xbf16> to vector<64x16xbf16>
      %cst_51 = arith.constant dense<0.000000e+00> : vector<64x64xf32>
      %58 = tpu.matmul %55, %56, %cst_51 {dimension_numbers = #tpu.dot_dimension_numbers<[1], [1], [0], [0], [0, 0, 1, 0], [], []>} : vector<64x16xbf16>, vector<64x16xbf16>, vector<64x64xf32> -> vector<64x64xf32>
      %59 = vector.broadcast %cst_27 : f32 to vector<64x64xf32>
      %60 = arith.mulf %58, %59 : vector<64x64xf32>
      %cst_52 = arith.constant dense<0xFF800000> : vector<64xf32>
      %61 = vector.multi_reduction <maximumf>, %60, %cst_52 [1] : vector<64x64xf32> to vector<64xf32>
      %62 = vector.shape_cast %61 : vector<64xf32> to vector<64x1xf32>
      %63 = vector.broadcast %62 : vector<64x1xf32> to vector<64x64xf32>
      %64 = arith.subf %60, %63 : vector<64x64xf32>
      %65 = math.exp %64 : vector<64x64xf32>
      %cst_53 = arith.constant dense<0.000000e+00> : vector<64xf32>
      %66 = vector.multi_reduction <add>, %65, %cst_53 [1] : vector<64x64xf32> to vector<64xf32>
      %67 = vector.shape_cast %66 : vector<64xf32> to vector<64x1xf32>
      %68 = tpu.reciprocal %67 {approx = true} : vector<64x1xf32> -> vector<64x1xf32>
      %69 = vector.broadcast %68 : vector<64x1xf32> to vector<64x64xf32>
      %70 = arith.mulf %65, %69 : vector<64x64xf32>
      %71 = arith.truncf %70 : vector<64x64xf32> to vector<64x64xbf16>
      %cst_54 = arith.constant dense<0.000000e+00> : vector<64x16xf32>
      %72 = tpu.matmul %71, %57, %cst_54 {dimension_numbers = #tpu.dot_dimension_numbers<[1], [0], [0], [1], [0, 0, 1, 1], [], []>} : vector<64x64xbf16>, vector<64x16xbf16>, vector<64x16xf32> -> vector<64x16xf32>
      %73 = arith.mulf %70, %70 : vector<64x64xf32>
      %cst_55 = arith.constant dense<0.000000e+00> : vector<64xf32>
      %74 = vector.multi_reduction <add>, %73, %cst_55 [1] : vector<64x64xf32> to vector<64xf32>
      %75 = vector.shape_cast %74 : vector<64xf32> to vector<64x1xf32>
      %cst_56 = arith.constant dense<0.000000e+00> : vector<64x64xf32>
      %76 = tpu.matmul %71, %71, %cst_56 {dimension_numbers = #tpu.dot_dimension_numbers<[1], [1], [0], [0], [0, 0, 1, 0], [], []>} : vector<64x64xbf16>, vector<64x64xbf16>, vector<64x64xf32> -> vector<64x64xf32>
      %77 = arith.mulf %76, %76 : vector<64x64xf32>
      %78 = vector.shape_cast %77 : vector<64x64xf32> to vector<1x64x64xf32>
      %cst_57 = arith.constant dense<0.000000e+00> : vector<1xf32>
      %79 = vector.multi_reduction <add>, %78, %cst_57 [1, 2] : vector<1x64x64xf32> to vector<1xf32>
      %80 = vector.shape_cast %79 : vector<1xf32> to vector<1x1x1xf32>
      %81 = vector.extract %80[0, 0, 0] : f32 from vector<1x1x1xf32>
      %82 = vector.shape_cast %75 : vector<64x1xf32> to vector<1x64x1xf32>
      %cst_58 = arith.constant dense<0.000000e+00> : vector<1xf32>
      %83 = vector.multi_reduction <add>, %82, %cst_58 [1, 2] : vector<1x64x1xf32> to vector<1xf32>
      %84 = vector.shape_cast %83 : vector<1xf32> to vector<1x1x1xf32>
      %85 = vector.extract %84[0, 0, 0] : f32 from vector<1x1x1xf32>
      %cst_59 = arith.constant 2.000000e+00 : f32
      %86 = arith.mulf %cst_59, %85 : f32
      %87 = arith.subf %81, %86 : f32
      %cst_60 = arith.constant 6.400000e+01 : f32
      %88 = arith.addf %87, %cst_60 : f32
      %cst_61 = arith.constant 0.000000e+00 : f32
      %89 = arith.maximumf %88, %cst_61 : f32
      %90 = math.sqrt %89 : f32
      %91 = vector.broadcast %90 : f32 to vector<1x1xf32>
      %92 = arith.addf %arg21, %91 : vector<1x1xf32>
      %93 = math.rsqrt %75 : vector<64x1xf32>
      %94 = vector.broadcast %93 : vector<64x1xf32> to vector<64x64xf32>
      %95 = arith.mulf %70, %94 : vector<64x64xf32>
      %cst_62 = arith.constant dense<0.000000e+00> : vector<64xf32>
      %96 = vector.multi_reduction <add>, %95, %cst_62 [0] : vector<64x64xf32> to vector<64xf32>
      %97 = vector.shape_cast %96 : vector<64xf32> to vector<1x64xf32>
      %98 = arith.mulf %97, %97 : vector<1x64xf32>
      %99 = vector.shape_cast %98 : vector<1x64xf32> to vector<1x1x64xf32>
      %cst_63 = arith.constant dense<0.000000e+00> : vector<1xf32>
      %100 = vector.multi_reduction <add>, %99, %cst_63 [1, 2] : vector<1x1x64xf32> to vector<1xf32>
      %101 = vector.shape_cast %100 : vector<1xf32> to vector<1x1x1xf32>
      %102 = vector.extract %101[0, 0, 0] : f32 from vector<1x1x1xf32>
      %103 = vector.broadcast %102 : f32 to vector<1x1xf32>
      %104 = arith.addf %arg20, %103 : vector<1x1xf32>
      %cst_64 = arith.constant 2.000000e+00 : f32
      %cst_65 = arith.constant 6.400000e+01 : f32
      %105 = arith.mulf %cst_64, %cst_65 : f32
      %106 = vector.broadcast %105 : f32 to vector<1x1xf32>
      %107 = arith.subf %104, %106 : vector<1x1xf32>
      %108 = vector.extract_strided_slice %50 {offsets = [0, 16], sizes = [64, 16], strides = [1, 1]} : vector<64x64xbf16> to vector<64x16xbf16>
      %109 = vector.extract_strided_slice %52 {offsets = [0, 16], sizes = [64, 16], strides = [1, 1]} : vector<64x64xbf16> to vector<64x16xbf16>
      %110 = vector.extract_strided_slice %54 {offsets = [0, 16], sizes = [64, 16], strides = [1, 1]} : vector<64x64xbf16> to vector<64x16xbf16>
      %cst_66 = arith.constant dense<0.000000e+00> : vector<64x64xf32>
      %111 = tpu.matmul %108, %109, %cst_66 {dimension_numbers = #tpu.dot_dimension_numbers<[1], [1], [0], [0], [0, 0, 1, 0], [], []>} : vector<64x16xbf16>, vector<64x16xbf16>, vector<64x64xf32> -> vector<64x64xf32>
      %112 = vector.broadcast %cst_27 : f32 to vector<64x64xf32>
      %113 = arith.mulf %111, %112 : vector<64x64xf32>
      %cst_67 = arith.constant dense<0xFF800000> : vector<64xf32>
      %114 = vector.multi_reduction <maximumf>, %113, %cst_67 [1] : vector<64x64xf32> to vector<64xf32>
      %115 = vector.shape_cast %114 : vector<64xf32> to vector<64x1xf32>
      %116 = vector.broadcast %115 : vector<64x1xf32> to vector<64x64xf32>
      %117 = arith.subf %113, %116 : vector<64x64xf32>
      %118 = math.exp %117 : vector<64x64xf32>
      %cst_68 = arith.constant dense<0.000000e+00> : vector<64xf32>
      %119 = vector.multi_reduction <add>, %118, %cst_68 [1] : vector<64x64xf32> to vector<64xf32>
      %120 = vector.shape_cast %119 : vector<64xf32> to vector<64x1xf32>
      %121 = tpu.reciprocal %120 {approx = true} : vector<64x1xf32> -> vector<64x1xf32>
      %122 = vector.broadcast %121 : vector<64x1xf32> to vector<64x64xf32>
      %123 = arith.mulf %118, %122 : vector<64x64xf32>
      %124 = arith.truncf %123 : vector<64x64xf32> to vector<64x64xbf16>
      %cst_69 = arith.constant dense<0.000000e+00> : vector<64x16xf32>
      %125 = tpu.matmul %124, %110, %cst_69 {dimension_numbers = #tpu.dot_dimension_numbers<[1], [0], [0], [1], [0, 0, 1, 1], [], []>} : vector<64x64xbf16>, vector<64x16xbf16>, vector<64x16xf32> -> vector<64x16xf32>
      %126 = arith.mulf %123, %123 : vector<64x64xf32>
      %cst_70 = arith.constant dense<0.000000e+00> : vector<64xf32>
      %127 = vector.multi_reduction <add>, %126, %cst_70 [1] : vector<64x64xf32> to vector<64xf32>
      %128 = vector.shape_cast %127 : vector<64xf32> to vector<64x1xf32>
      %cst_71 = arith.constant dense<0.000000e+00> : vector<64x64xf32>
      %129 = tpu.matmul %124, %124, %cst_71 {dimension_numbers = #tpu.dot_dimension_numbers<[1], [1], [0], [0], [0, 0, 1, 0], [], []>} : vector<64x64xbf16>, vector<64x64xbf16>, vector<64x64xf32> -> vector<64x64xf32>
      %130 = arith.mulf %129, %129 : vector<64x64xf32>
      %131 = vector.shape_cast %130 : vector<64x64xf32> to vector<1x64x64xf32>
      %cst_72 = arith.constant dense<0.000000e+00> : vector<1xf32>
      %132 = vector.multi_reduction <add>, %131, %cst_72 [1, 2] : vector<1x64x64xf32> to vector<1xf32>
      %133 = vector.shape_cast %132 : vector<1xf32> to vector<1x1x1xf32>
      %134 = vector.extract %133[0, 0, 0] : f32 from vector<1x1x1xf32>
      %135 = vector.shape_cast %128 : vector<64x1xf32> to vector<1x64x1xf32>
      %cst_73 = arith.constant dense<0.000000e+00> : vector<1xf32>
      %136 = vector.multi_reduction <add>, %135, %cst_73 [1, 2] : vector<1x64x1xf32> to vector<1xf32>
      %137 = vector.shape_cast %136 : vector<1xf32> to vector<1x1x1xf32>
      %138 = vector.extract %137[0, 0, 0] : f32 from vector<1x1x1xf32>
      %cst_74 = arith.constant 2.000000e+00 : f32
      %139 = arith.mulf %cst_74, %138 : f32
      %140 = arith.subf %134, %139 : f32
      %cst_75 = arith.constant 6.400000e+01 : f32
      %141 = arith.addf %140, %cst_75 : f32
      %cst_76 = arith.constant 0.000000e+00 : f32
      %142 = arith.maximumf %141, %cst_76 : f32
      %143 = math.sqrt %142 : f32
      %144 = vector.broadcast %143 : f32 to vector<1x1xf32>
      %145 = arith.addf %92, %144 : vector<1x1xf32>
      %146 = math.rsqrt %128 : vector<64x1xf32>
      %147 = vector.broadcast %146 : vector<64x1xf32> to vector<64x64xf32>
      %148 = arith.mulf %123, %147 : vector<64x64xf32>
      %cst_77 = arith.constant dense<0.000000e+00> : vector<64xf32>
      %149 = vector.multi_reduction <add>, %148, %cst_77 [0] : vector<64x64xf32> to vector<64xf32>
      %150 = vector.shape_cast %149 : vector<64xf32> to vector<1x64xf32>
      %151 = arith.mulf %150, %150 : vector<1x64xf32>
      %152 = vector.shape_cast %151 : vector<1x64xf32> to vector<1x1x64xf32>
      %cst_78 = arith.constant dense<0.000000e+00> : vector<1xf32>
      %153 = vector.multi_reduction <add>, %152, %cst_78 [1, 2] : vector<1x1x64xf32> to vector<1xf32>
      %154 = vector.shape_cast %153 : vector<1xf32> to vector<1x1x1xf32>
      %155 = vector.extract %154[0, 0, 0] : f32 from vector<1x1x1xf32>
      %156 = vector.broadcast %155 : f32 to vector<1x1xf32>
      %157 = arith.addf %107, %156 : vector<1x1xf32>
      %cst_79 = arith.constant 2.000000e+00 : f32
      %cst_80 = arith.constant 6.400000e+01 : f32
      %158 = arith.mulf %cst_79, %cst_80 : f32
      %159 = vector.broadcast %158 : f32 to vector<1x1xf32>
      %160 = arith.subf %157, %159 : vector<1x1xf32>
      %161 = vector.extract_strided_slice %50 {offsets = [0, 32], sizes = [64, 16], strides = [1, 1]} : vector<64x64xbf16> to vector<64x16xbf16>
      %162 = vector.extract_strided_slice %52 {offsets = [0, 32], sizes = [64, 16], strides = [1, 1]} : vector<64x64xbf16> to vector<64x16xbf16>
      %163 = vector.extract_strided_slice %54 {offsets = [0, 32], sizes = [64, 16], strides = [1, 1]} : vector<64x64xbf16> to vector<64x16xbf16>
      %cst_81 = arith.constant dense<0.000000e+00> : vector<64x64xf32>
      %164 = tpu.matmul %161, %162, %cst_81 {dimension_numbers = #tpu.dot_dimension_numbers<[1], [1], [0], [0], [0, 0, 1, 0], [], []>} : vector<64x16xbf16>, vector<64x16xbf16>, vector<64x64xf32> -> vector<64x64xf32>
      %165 = vector.broadcast %cst_27 : f32 to vector<64x64xf32>
      %166 = arith.mulf %164, %165 : vector<64x64xf32>
      %cst_82 = arith.constant dense<0xFF800000> : vector<64xf32>
      %167 = vector.multi_reduction <maximumf>, %166, %cst_82 [1] : vector<64x64xf32> to vector<64xf32>
      %168 = vector.shape_cast %167 : vector<64xf32> to vector<64x1xf32>
      %169 = vector.broadcast %168 : vector<64x1xf32> to vector<64x64xf32>
      %170 = arith.subf %166, %169 : vector<64x64xf32>
      %171 = math.exp %170 : vector<64x64xf32>
      %cst_83 = arith.constant dense<0.000000e+00> : vector<64xf32>
      %172 = vector.multi_reduction <add>, %171, %cst_83 [1] : vector<64x64xf32> to vector<64xf32>
      %173 = vector.shape_cast %172 : vector<64xf32> to vector<64x1xf32>
      %174 = tpu.reciprocal %173 {approx = true} : vector<64x1xf32> -> vector<64x1xf32>
      %175 = vector.broadcast %174 : vector<64x1xf32> to vector<64x64xf32>
      %176 = arith.mulf %171, %175 : vector<64x64xf32>
      %177 = arith.truncf %176 : vector<64x64xf32> to vector<64x64xbf16>
      %cst_84 = arith.constant dense<0.000000e+00> : vector<64x16xf32>
      %178 = tpu.matmul %177, %163, %cst_84 {dimension_numbers = #tpu.dot_dimension_numbers<[1], [0], [0], [1], [0, 0, 1, 1], [], []>} : vector<64x64xbf16>, vector<64x16xbf16>, vector<64x16xf32> -> vector<64x16xf32>
      %179 = arith.mulf %176, %176 : vector<64x64xf32>
      %cst_85 = arith.constant dense<0.000000e+00> : vector<64xf32>
      %180 = vector.multi_reduction <add>, %179, %cst_85 [1] : vector<64x64xf32> to vector<64xf32>
      %181 = vector.shape_cast %180 : vector<64xf32> to vector<64x1xf32>
      %cst_86 = arith.constant dense<0.000000e+00> : vector<64x64xf32>
      %182 = tpu.matmul %177, %177, %cst_86 {dimension_numbers = #tpu.dot_dimension_numbers<[1], [1], [0], [0], [0, 0, 1, 0], [], []>} : vector<64x64xbf16>, vector<64x64xbf16>, vector<64x64xf32> -> vector<64x64xf32>
      %183 = arith.mulf %182, %182 : vector<64x64xf32>
      %184 = vector.shape_cast %183 : vector<64x64xf32> to vector<1x64x64xf32>
      %cst_87 = arith.constant dense<0.000000e+00> : vector<1xf32>
      %185 = vector.multi_reduction <add>, %184, %cst_87 [1, 2] : vector<1x64x64xf32> to vector<1xf32>
      %186 = vector.shape_cast %185 : vector<1xf32> to vector<1x1x1xf32>
      %187 = vector.extract %186[0, 0, 0] : f32 from vector<1x1x1xf32>
      %188 = vector.shape_cast %181 : vector<64x1xf32> to vector<1x64x1xf32>
      %cst_88 = arith.constant dense<0.000000e+00> : vector<1xf32>
      %189 = vector.multi_reduction <add>, %188, %cst_88 [1, 2] : vector<1x64x1xf32> to vector<1xf32>
      %190 = vector.shape_cast %189 : vector<1xf32> to vector<1x1x1xf32>
      %191 = vector.extract %190[0, 0, 0] : f32 from vector<1x1x1xf32>
      %cst_89 = arith.constant 2.000000e+00 : f32
      %192 = arith.mulf %cst_89, %191 : f32
      %193 = arith.subf %187, %192 : f32
      %cst_90 = arith.constant 6.400000e+01 : f32
      %194 = arith.addf %193, %cst_90 : f32
      %cst_91 = arith.constant 0.000000e+00 : f32
      %195 = arith.maximumf %194, %cst_91 : f32
      %196 = math.sqrt %195 : f32
      %197 = vector.broadcast %196 : f32 to vector<1x1xf32>
      %198 = arith.addf %145, %197 : vector<1x1xf32>
      %199 = math.rsqrt %181 : vector<64x1xf32>
      %200 = vector.broadcast %199 : vector<64x1xf32> to vector<64x64xf32>
      %201 = arith.mulf %176, %200 : vector<64x64xf32>
      %cst_92 = arith.constant dense<0.000000e+00> : vector<64xf32>
      %202 = vector.multi_reduction <add>, %201, %cst_92 [0] : vector<64x64xf32> to vector<64xf32>
      %203 = vector.shape_cast %202 : vector<64xf32> to vector<1x64xf32>
      %204 = arith.mulf %203, %203 : vector<1x64xf32>
      %205 = vector.shape_cast %204 : vector<1x64xf32> to vector<1x1x64xf32>
      %cst_93 = arith.constant dense<0.000000e+00> : vector<1xf32>
      %206 = vector.multi_reduction <add>, %205, %cst_93 [1, 2] : vector<1x1x64xf32> to vector<1xf32>
      %207 = vector.shape_cast %206 : vector<1xf32> to vector<1x1x1xf32>
      %208 = vector.extract %207[0, 0, 0] : f32 from vector<1x1x1xf32>
      %209 = vector.broadcast %208 : f32 to vector<1x1xf32>
      %210 = arith.addf %160, %209 : vector<1x1xf32>
      %cst_94 = arith.constant 2.000000e+00 : f32
      %cst_95 = arith.constant 6.400000e+01 : f32
      %211 = arith.mulf %cst_94, %cst_95 : f32
      %212 = vector.broadcast %211 : f32 to vector<1x1xf32>
      %213 = arith.subf %210, %212 : vector<1x1xf32>
      %214 = vector.extract_strided_slice %50 {offsets = [0, 48], sizes = [64, 16], strides = [1, 1]} : vector<64x64xbf16> to vector<64x16xbf16>
      %215 = vector.extract_strided_slice %52 {offsets = [0, 48], sizes = [64, 16], strides = [1, 1]} : vector<64x64xbf16> to vector<64x16xbf16>
      %216 = vector.extract_strided_slice %54 {offsets = [0, 48], sizes = [64, 16], strides = [1, 1]} : vector<64x64xbf16> to vector<64x16xbf16>
      %cst_96 = arith.constant dense<0.000000e+00> : vector<64x64xf32>
      %217 = tpu.matmul %214, %215, %cst_96 {dimension_numbers = #tpu.dot_dimension_numbers<[1], [1], [0], [0], [0, 0, 1, 0], [], []>} : vector<64x16xbf16>, vector<64x16xbf16>, vector<64x64xf32> -> vector<64x64xf32>
      %218 = vector.broadcast %cst_27 : f32 to vector<64x64xf32>
      %219 = arith.mulf %217, %218 : vector<64x64xf32>
      %cst_97 = arith.constant dense<0xFF800000> : vector<64xf32>
      %220 = vector.multi_reduction <maximumf>, %219, %cst_97 [1] : vector<64x64xf32> to vector<64xf32>
      %221 = vector.shape_cast %220 : vector<64xf32> to vector<64x1xf32>
      %222 = vector.broadcast %221 : vector<64x1xf32> to vector<64x64xf32>
      %223 = arith.subf %219, %222 : vector<64x64xf32>
      %224 = math.exp %223 : vector<64x64xf32>
      %cst_98 = arith.constant dense<0.000000e+00> : vector<64xf32>
      %225 = vector.multi_reduction <add>, %224, %cst_98 [1] : vector<64x64xf32> to vector<64xf32>
      %226 = vector.shape_cast %225 : vector<64xf32> to vector<64x1xf32>
      %227 = tpu.reciprocal %226 {approx = true} : vector<64x1xf32> -> vector<64x1xf32>
      %228 = vector.broadcast %227 : vector<64x1xf32> to vector<64x64xf32>
      %229 = arith.mulf %224, %228 : vector<64x64xf32>
      %230 = arith.truncf %229 : vector<64x64xf32> to vector<64x64xbf16>
      %cst_99 = arith.constant dense<0.000000e+00> : vector<64x16xf32>
      %231 = tpu.matmul %230, %216, %cst_99 {dimension_numbers = #tpu.dot_dimension_numbers<[1], [0], [0], [1], [0, 0, 1, 1], [], []>} : vector<64x64xbf16>, vector<64x16xbf16>, vector<64x16xf32> -> vector<64x16xf32>
      %232 = arith.mulf %229, %229 : vector<64x64xf32>
      %cst_100 = arith.constant dense<0.000000e+00> : vector<64xf32>
      %233 = vector.multi_reduction <add>, %232, %cst_100 [1] : vector<64x64xf32> to vector<64xf32>
      %234 = vector.shape_cast %233 : vector<64xf32> to vector<64x1xf32>
      %cst_101 = arith.constant dense<0.000000e+00> : vector<64x64xf32>
      %235 = tpu.matmul %230, %230, %cst_101 {dimension_numbers = #tpu.dot_dimension_numbers<[1], [1], [0], [0], [0, 0, 1, 0], [], []>} : vector<64x64xbf16>, vector<64x64xbf16>, vector<64x64xf32> -> vector<64x64xf32>
      %236 = arith.mulf %235, %235 : vector<64x64xf32>
      %237 = vector.shape_cast %236 : vector<64x64xf32> to vector<1x64x64xf32>
      %cst_102 = arith.constant dense<0.000000e+00> : vector<1xf32>
      %238 = vector.multi_reduction <add>, %237, %cst_102 [1, 2] : vector<1x64x64xf32> to vector<1xf32>
      %239 = vector.shape_cast %238 : vector<1xf32> to vector<1x1x1xf32>
      %240 = vector.extract %239[0, 0, 0] : f32 from vector<1x1x1xf32>
      %241 = vector.shape_cast %234 : vector<64x1xf32> to vector<1x64x1xf32>
      %cst_103 = arith.constant dense<0.000000e+00> : vector<1xf32>
      %242 = vector.multi_reduction <add>, %241, %cst_103 [1, 2] : vector<1x64x1xf32> to vector<1xf32>
      %243 = vector.shape_cast %242 : vector<1xf32> to vector<1x1x1xf32>
      %244 = vector.extract %243[0, 0, 0] : f32 from vector<1x1x1xf32>
      %cst_104 = arith.constant 2.000000e+00 : f32
      %245 = arith.mulf %cst_104, %244 : f32
      %246 = arith.subf %240, %245 : f32
      %cst_105 = arith.constant 6.400000e+01 : f32
      %247 = arith.addf %246, %cst_105 : f32
      %cst_106 = arith.constant 0.000000e+00 : f32
      %248 = arith.maximumf %247, %cst_106 : f32
      %249 = math.sqrt %248 : f32
      %250 = vector.broadcast %249 : f32 to vector<1x1xf32>
      %251 = arith.addf %198, %250 : vector<1x1xf32>
      %252 = math.rsqrt %234 : vector<64x1xf32>
      %253 = vector.broadcast %252 : vector<64x1xf32> to vector<64x64xf32>
      %254 = arith.mulf %229, %253 : vector<64x64xf32>
      %cst_107 = arith.constant dense<0.000000e+00> : vector<64xf32>
      %255 = vector.multi_reduction <add>, %254, %cst_107 [0] : vector<64x64xf32> to vector<64xf32>
      %256 = vector.shape_cast %255 : vector<64xf32> to vector<1x64xf32>
      %257 = arith.mulf %256, %256 : vector<1x64xf32>
      %258 = vector.shape_cast %257 : vector<1x64xf32> to vector<1x1x64xf32>
      %cst_108 = arith.constant dense<0.000000e+00> : vector<1xf32>
      %259 = vector.multi_reduction <add>, %258, %cst_108 [1, 2] : vector<1x1x64xf32> to vector<1xf32>
      %260 = vector.shape_cast %259 : vector<1xf32> to vector<1x1x1xf32>
      %261 = vector.extract %260[0, 0, 0] : f32 from vector<1x1x1xf32>
      %262 = vector.broadcast %261 : f32 to vector<1x1xf32>
      %263 = arith.addf %213, %262 : vector<1x1xf32>
      %cst_109 = arith.constant 2.000000e+00 : f32
      %cst_110 = arith.constant 6.400000e+01 : f32
      %264 = arith.mulf %cst_109, %cst_110 : f32
      %265 = vector.broadcast %264 : f32 to vector<1x1xf32>
      %266 = arith.subf %263, %265 : vector<1x1xf32>
      %267 = tpu.concatenate %72, %125, %178, %231 in 1 : vector<64x16xf32>, vector<64x16xf32>, vector<64x16xf32>, vector<64x16xf32> -> vector<64x64xf32>
      %268 = arith.truncf %267 : vector<64x64xf32> to vector<64x64xbf16>
      %269 = arith.index_cast %48 : i32 to index
      %c0_111 = arith.constant 0 : index
      %270 = vector.load %arg18[%269, %c0_111] : memref<128x64xbf16, #tpu.memory_space<vmem>>, vector<64x64xbf16>
      tpu.vector_store %arg18[%269, %c0_111], %268 {strides = array<i32>} : memref<128x64xbf16, #tpu.memory_space<vmem>>, vector<64x64xbf16>,
      scf.yield %266, %251 : vector<1x1xf32>, vector<1x1xf32>
    }
    %c2_i32_28 = arith.constant 2 : i32
    %c0_29 = arith.constant 0 : index
    %c0_30 = arith.constant 0 : index
    %28 = vector.load %arg18[%c0_29, %c0_30] : memref<128x64xbf16, #tpu.memory_space<vmem>>, vector<128x64xbf16>
    %c0_31 = arith.constant 0 : index
    %c0_32 = arith.constant 0 : index
    %29 = vector.load %arg11[%c0_31, %c0_32] : memref<64x32xbf16, #tpu.memory_space<vmem>>, vector<64x32xbf16>
    %cst_33 = arith.constant dense<0.000000e+00> : vector<128x32xf32>
    %30 = tpu.matmul %28, %29, %cst_33 {dimension_numbers = #tpu.dot_dimension_numbers<[1], [0], [0], [1], [0, 0, 1, 1], [], []>} : vector<128x64xbf16>, vector<64x32xbf16>, vector<128x32xf32> -> vector<128x32xf32>
    %c0_34 = arith.constant 0 : index
    %c0_35 = arith.constant 0 : index
    %31 = vector.load %arg12[%c0_34, %c0_35] : memref<1x32xf32, #tpu.memory_space<vmem>>, vector<1x32xf32>
    %32 = vector.broadcast %31 : vector<1x32xf32> to vector<128x32xf32>
    %33 = arith.addf %30, %32 : vector<128x32xf32>
    %c0_36 = arith.constant 0 : index
    %c0_37 = arith.constant 0 : index
    %34 = vector.load %arg4[%c0_36, %c0_37] : memref<128x32xf32, #tpu.memory_space<vmem>>, vector<128x32xf32>
    %35 = arith.addf %33, %34 : vector<128x32xf32>
    %c0_38 = arith.constant 0 : index
    %c0_39 = arith.constant 0 : index
    %36 = vector.load %arg13[%c0_38, %c0_39] : memref<128x32xf32, #tpu.memory_space<vmem>>, vector<128x32xf32>
    tpu.vector_store %arg13[%c0_38, %c0_39], %35 {strides = array<i32>} : memref<128x32xf32, #tpu.memory_space<vmem>>, vector<128x32xf32>,
    %c0_i32_40 = arith.constant 0 : i32
    %c2_i32_41 = arith.constant 2 : i32
    %37 = arith.addi %c0_i32_40, %c2_i32_41 : i32
    %c1_i32_42 = arith.constant 1 : i32
    scf.for %arg19 = %c0_i32_40 to %37 step %c1_i32_42  : i32 {
      %c1_i32_48 = arith.constant 1 : i32
      %47 = arith.muli %arg19, %c1_i32_48 : i32
      %c0_i32_49 = arith.constant 0 : i32
      %48 = arith.addi %c0_i32_49, %47 : i32
      %c64_i32 = arith.constant 64 : i32
      %49 = arith.muli %48, %c64_i32 : i32
      %50 = tpu.assume_multiple %49, 64 : i32
      %51 = arith.index_cast %50 : i32 to index
      %c0_50 = arith.constant 0 : index
      %52 = vector.load %arg13[%51, %c0_50] : memref<128x32xf32, #tpu.memory_space<vmem>>, vector<64x32xf32>
      %cst_51 = arith.constant dense<0.000000e+00> : vector<32xf32>
      %53 = vector.multi_reduction <add>, %52, %cst_51 [0] : vector<64x32xf32> to vector<32xf32>
      %54 = vector.shape_cast %53 : vector<32xf32> to vector<1x32xf32>
      %cst_52 = arith.constant 1.562500e-02 : f32
      %55 = vector.broadcast %cst_52 : f32 to vector<1x32xf32>
      %56 = arith.mulf %54, %55 : vector<1x32xf32>
      %57 = arith.mulf %52, %52 : vector<64x32xf32>
      %cst_53 = arith.constant dense<0.000000e+00> : vector<32xf32>
      %58 = vector.multi_reduction <add>, %57, %cst_53 [0] : vector<64x32xf32> to vector<32xf32>
      %59 = vector.shape_cast %58 : vector<32xf32> to vector<1x32xf32>
      %cst_54 = arith.constant 1.562500e-02 : f32
      %60 = vector.broadcast %cst_54 : f32 to vector<1x32xf32>
      %61 = arith.mulf %59, %60 : vector<1x32xf32>
      %62 = arith.mulf %56, %56 : vector<1x32xf32>
      %63 = arith.subf %61, %62 : vector<1x32xf32>
      %64 = vector.broadcast %56 : vector<1x32xf32> to vector<64x32xf32>
      %65 = arith.subf %52, %64 : vector<64x32xf32>
      %cst_55 = arith.constant 9.99999974E-6 : f32
      %66 = vector.broadcast %cst_55 : f32 to vector<1x32xf32>
      %67 = arith.addf %63, %66 : vector<1x32xf32>
      %68 = math.rsqrt %67 : vector<1x32xf32>
      %69 = vector.broadcast %68 : vector<1x32xf32> to vector<64x32xf32>
      %70 = arith.mulf %65, %69 : vector<64x32xf32>
      %71 = arith.index_cast %50 : i32 to index
      %c0_56 = arith.constant 0 : index
      %72 = vector.load %arg13[%71, %c0_56] : memref<128x32xf32, #tpu.memory_space<vmem>>, vector<64x32xf32>
      tpu.vector_store %arg13[%71, %c0_56], %70 {strides = array<i32>} : memref<128x32xf32, #tpu.memory_space<vmem>>, vector<64x32xf32>,
    }
    %c2_i32_43 = arith.constant 2 : i32
    %38 = tpu.iota {dimensions = array<i32: 2>} : vector<1x1x2xi32>
    %c0_i32_44 = arith.constant 0 : i32
    %39 = vector.broadcast %c0_i32_44 : i32 to vector<1x1x2xi32>
    %40 = arith.cmpi eq, %38, %39 : vector<1x1x2xi32>
    %41 = vector.shape_cast %27#0 : vector<1x1xf32> to vector<1x1x1xf32>
    %42 = vector.broadcast %41 : vector<1x1x1xf32> to vector<1x1x2xf32>
    %43 = vector.shape_cast %27#1 : vector<1x1xf32> to vector<1x1x1xf32>
    %44 = vector.broadcast %43 : vector<1x1x1xf32> to vector<1x1x2xf32>
    %45 = arith.select %40, %42, %44 : vector<1x1x2xi1>, vector<1x1x2xf32>
    %c0_45 = arith.constant 0 : index
    %c0_46 = arith.constant 0 : index
    %c0_47 = arith.constant 0 : index
    %46 = vector.load %arg14[%c0_45, %c0_46, %c0_47] : memref<1x1x2xf32, #tpu.memory_space<vmem>>, vector<1x1x2xf32>
    tpu.vector_store %arg14[%c0_45, %c0_46, %c0_47], %45 {strides = array<i32>} : memref<1x1x2xf32, #tpu.memory_space<vmem>>, vector<1x1x2xf32>,
    return
  }
  func.func @transform_0(%arg0: i32) -> (i32, i32) {
    %c0_i32 = arith.constant 0 : i32
    %c0_i32_0 = arith.constant 0 : i32
    return %arg0, %c0_i32 : i32, i32
  }
  func.func @transform_1(%arg0: i32) -> (i32, i32) {
    %c0_i32 = arith.constant 0 : i32
    %c0_i32_0 = arith.constant 0 : i32
    return %arg0, %c0_i32 : i32, i32
  }
  func.func @transform_2(%arg0: i32) -> (i32, i32) {
    %c0_i32 = arith.constant 0 : i32
    %c0_i32_0 = arith.constant 0 : i32
    return %arg0, %c0_i32 : i32, i32
  }
  func.func @transform_3(%arg0: i32) -> (i32, i32) {
    %c0_i32 = arith.constant 0 : i32
    %c0_i32_0 = arith.constant 0 : i32
    return %arg0, %c0_i32 : i32, i32
  }
  func.func @transform_4(%arg0: i32) -> (i32, i32) {
    %c0_i32 = arith.constant 0 : i32
    %c0_i32_0 = arith.constant 0 : i32
    %c0_i32_1 = arith.constant 0 : i32
    return %c0_i32, %c0_i32_0 : i32, i32
  }
  func.func @transform_5(%arg0: i32) -> (i32, i32) {
    %c0_i32 = arith.constant 0 : i32
    %c0_i32_0 = arith.constant 0 : i32
    %c0_i32_1 = arith.constant 0 : i32
    return %c0_i32, %c0_i32_0 : i32, i32
  }
  func.func @transform_6(%arg0: i32) -> (i32, i32) {
    %c0_i32 = arith.constant 0 : i32
    %c0_i32_0 = arith.constant 0 : i32
    %c0_i32_1 = arith.constant 0 : i32
    return %c0_i32, %c0_i32_0 : i32, i32
  }
  func.func @transform_7(%arg0: i32) -> (i32, i32) {
    %c0_i32 = arith.constant 0 : i32
    %c0_i32_0 = arith.constant 0 : i32
    %c0_i32_1 = arith.constant 0 : i32
    return %c0_i32, %c0_i32_0 : i32, i32
  }
  func.func @transform_8(%arg0: i32) -> (i32, i32) {
    %c0_i32 = arith.constant 0 : i32
    %c0_i32_0 = arith.constant 0 : i32
    %c0_i32_1 = arith.constant 0 : i32
    return %c0_i32, %c0_i32_0 : i32, i32
  }
  func.func @transform_9(%arg0: i32) -> (i32, i32) {
    %c0_i32 = arith.constant 0 : i32
    %c0_i32_0 = arith.constant 0 : i32
    %c0_i32_1 = arith.constant 0 : i32
    return %c0_i32, %c0_i32_0 : i32, i32
  }
  func.func @transform_10(%arg0: i32) -> (i32, i32) {
    %c0_i32 = arith.constant 0 : i32
    %c0_i32_0 = arith.constant 0 : i32
    %c0_i32_1 = arith.constant 0 : i32
    return %c0_i32, %c0_i32_0 : i32, i32
  }
  func.func @transform_11(%arg0: i32) -> (i32, i32) {
    %c0_i32 = arith.constant 0 : i32
    %c0_i32_0 = arith.constant 0 : i32
    %c0_i32_1 = arith.constant 0 : i32
    return %c0_i32, %c0_i32_0 : i32, i32
  }
  func.func @transform_12(%arg0: i32) -> (i32, i32) {
    %c0_i32 = arith.constant 0 : i32
    %c0_i32_0 = arith.constant 0 : i32
    return %arg0, %c0_i32 : i32, i32
  }
  func.func @transform_13(%arg0: i32) -> (i32, i32, i32) {
    %c0_i32 = arith.constant 0 : i32
    %c0_i32_0 = arith.constant 0 : i32
    %c0_i32_1 = arith.constant 0 : i32
    return %arg0, %c0_i32, %c0_i32_0 : i32, i32, i32
  }
}

</mosaic_0001>

<bundles_post_ra>
// kernel: tpu_custom_call.1
= control target key start
LH: loop header
LB: loop body
LE: loop exit
PB: predicated region body
PF: predicated region fallthrough
CT: control target
= control target key end

     0   :  { %s6702_s0 = inlined_call_operand.vmem [shape: bf16[256,32], index: 0, kind: input, shape index: {}]   ;;  %s6703_s1 = inlined_call_operand.vmem [shape: bf16[256,32], index: 1, kind: input, shape index: {}]   ;;  %s6704_s2 = inlined_call_operand.vmem [shape: bf16[256,32], index: 2, kind: input, shape index: {}]   ;;  %s6705_s3 = inlined_call_operand.vmem [shape: f32[256,32], index: 3, kind: input, shape index: {}]   ;;  %s6706_s4 = inlined_call_operand.vmem [shape: bf16[32,64], index: 4, kind: input, shape index: {}]   ;;  %s6707_s5 = inlined_call_operand.vmem [shape: f32[1,64], index: 5, kind: input, shape index: {}]   ;;  %s6708_s6 = inlined_call_operand.vmem [shape: bf16[32,64], index: 6, kind: input, shape index: {}]   ;;  %s6709_s7 = inlined_call_operand.vmem [shape: f32[1,64], index: 7, kind: input, shape index: {}]   ;;  %s6710_s8 = inlined_call_operand.vmem [shape: bf16[32,64], index: 8, kind: input, shape index: {}]   ;;  %s6711_s9 = inlined_call_operand.vmem [shape: f32[1,64], index: 9, kind: input, shape index: {}]   ;;  %s6712_s10 = inlined_call_operand.vmem [shape: bf16[64,32], index: 10, kind: input, shape index: {}]   ;;  %s6713_s11 = inlined_call_operand.vmem [shape: f32[1,32], index: 11, kind: input, shape index: {}]   ;;  %s6714_s12 = inlined_call_operand.vmem [shape: f32[256,32], index: 12, kind: output, shape index: {0}]   ;;  %s6715_s13 = inlined_call_operand.hbm [shape: f32[2,1,2], index: 13, kind: output, shape index: {1}]  }
   0x1   :  { %6740 = sst [smem:[#allocation41_spill]] %s6702_s0 }
   0x2   :  { %6741 = sst [smem:[#allocation42_spill]] %s6703_s1 }
   0x3   :  { %6742 = sst [smem:[#allocation43_spill]] %s6704_s2 }
   0x4   :  { %6743 = sst [smem:[#allocation44_spill]] %s6706_s4 }
   0x5   :  { %19 = vsyncpa [#allocation7], 0 }
   0x6   :  { %21 = vsyncpa [#allocation7 + $0x1], 0  ;;  %s4650_s25 = smov 0   ;;  %s4652_s26 = smov 0  }
   0x7   :  { %s4654_s27 = smov 0   ;;  %s4656_s28 = smov 0  }
   0x8 LB: > { %6744 = sst [smem:[#allocation9_spill]] %s4551_s27  ;;  %s4671_s29 = sadd.s32 4294967295, %s4555_s28   ;;  %s4555_s28 = sphi %s4656_s28, %s6850_s28   ;;  %s4551_s27 = sphi %s4654_s27, %s6852_s27   ;;  %s4547_s26 = sphi %s4652_s26, %s6854_s26   ;;  %s4543_s25 = sphi %s4650_s25, %s6853_s25  }
   0x9   : > { %s3703_s30 = sadd.s32 4294967294, %s4555_s28   ;;  %s4675_s14 = sadd.s32 1, %s4555_s28  }
   0xa   : > { %6745 = sst [smem:[#allocation10_spill]] %s4675_s14  ;;  %s332_s15 = sadd.s32 1, %s4551_s27 }
   0xb   : > { %s329_s16 = ssub.s32 %s4555_s28, %s4675_s14  ;;  %p342_p0 = scmp.ne.s32.totalorder %s4551_s27, %s4547_s26 }
   0xc   : > { %p330_p1 = scmp.eq.s32.totalorder %s329_s16, 0  ;;  %p343_p2 = scmp.eq.s32.totalorder %s4671_s29, 1 }
   0xd   : > { %p348_p3 = scmp.ne.s32.totalorder %s4547_s26, %s4543_s25  ;;  %p349_p4 = scmp.eq.s32.totalorder %s3703_s30, 1 }
   0xe   : > { %s4686_s17 = scalar_select %p330_p1, %s4551_s27, %s332_s15  }
   0xf   : > { %p4688_p5 = por %p343_p2, %p342_p0  ;;  %p4692_p6 = por %p349_p4, %p348_p3 }
  0x10   : > { %6746 = sst [smem:[#allocation11_spill]] %s4686_s17  ;;  %p3706_p7 = scmp.ge.s32.totalorder %s4555_s28, 1 }
  0x11   : > { %p427_p8 = scmp.lt.s32.totalorder %s4555_s28, 3 }
  0x13   : > { %p428_p9 = pnand %p3706_p7, %p427_p8 }
  0x14   : > { %s6749_s4 = sld [smem:[#allocation44_spill]] (!%p428_p9)  ;;  %s3707_s16 = sshll.u32 (!%p428_p9), %s4671_s29, 4 }
  0x15   : > { %431 = sbr.rel (%p428_p9) target bundleno = 2414 (0x96e), region = 68  ;;  %p491_p10 = scmp.lt.s32.totalorder (!%p428_p9), %s3707_s16, 31 }
  0x16   : > { %s6750_s0 = sld [smem:[#allocation41_spill]] (!%p428_p9)  ;;  %s6753_s24 = sand.u32 (!%p428_p9), 1, %s4547_s26  }
  0x17   : > { %s6751_s1 = sld [smem:[#allocation42_spill]] (!%p428_p9)  ;;  %s4904_s27 = scalar_lea.vmem (!%p428_p9), [#allocation6], %s6753_s24 }
  0x18   : > { %s6752_s2 = sld [smem:[#allocation43_spill]] (!%p428_p9) }
  0x1a   : > { %v4034_v0 = vld [vmem:[%s6749_s4 + $0x8] sm:$0xff]  ;;  %v4033_v3 = vld [vmem:[%s6749_s4] sm:$0xff]  ;;  %s6856_s16 = smov (!%p491_p10, %s3707_s16), 31  ;;  %vm597_vm0 = vcmask 261120   ;;  %vm687_vm1 = vcmask 519168  }
  0x1b   : > { %v4044_v1 = vld [vmem:[%s6708_s6 + $0x8] sm:$0xff]  ;;  %628 = vmatpush.bf16.msra.mxu0 %v4034_v0  ;;  %4079 = vmatpush.bf16.msra.mxu3 %v4034_v0  ;;  %v4043_v4 = vld [vmem:[%s6708_s6] sm:$0xff]  ;;  %s3708_s30 = sshll.u32 %s6856_s16, 2  ;;  %s3714_s15 = sshll.u32 %s6856_s16, 3 }
  0x1c   : > { %v4054_v2 = vld [vmem:[%s6710_s8 + $0x8] sm:$0xff]  ;;  %810 = vmatpush.bf16.msra.mxu1 %v4044_v1  ;;  %v4053_v5 = vld [vmem:[%s6710_s8] sm:$0xff]  ;;  %s4721_s20 = scalar_lea.vmem %s6750_s0, %s3708_s30  ;;  %s4726_s21 = scalar_lea.vmem %s6705_s3, %s3714_s15 }
  0x1d   : > { %991 = vmatpush.bf16.msra.mxu2 %v4054_v2  ;;  %s4731_s16 = scalar_lea.vmem %s6714_s12, %s3714_s15  ;;  %v4025_v6 = vld [vmem:[%s4721_s20] sm:$0xff]  ;;  %v4031_v7 = vld [vmem:[%s4721_s20 + $0x30] sm:$0xff]  ;;  %s4738_s4 = scalar_lea.vmem %s6751_s1, %s3708_s30  ;;  %v4026_v10 = vld [vmem:[%s4721_s20 + $0x8] sm:$0xff] }
  0x1e   : > { %v4035_v8 = vld [vmem:[%s4738_s4] sm:$0xff]  ;;  %s4744_s0 = scalar_lea.vmem %s6752_s2, %s3708_s30  ;;  %v4032_v11 = vld [vmem:[%s4721_s20 + $0x38] sm:$0xff]  ;;  %v4036_v12 = vld [vmem:[%s4738_s4 + $0x8] sm:$0xff] }
  0x1f   : > { %629 = vmatpush.bf16.msra.mxu0 %v4033_v3  ;;  %4080 = vmatpush.bf16.msra.mxu3 %v4033_v3  ;;  %v4045_v9 = vld [vmem:[%s4744_s0] sm:$0xff]  ;;  %v4046_v13 = vld [vmem:[%s4744_s0 + $0x8] sm:$0xff]  ;;  %v4027_v14 = vld [vmem:[%s4721_s20 + $0x10] sm:$0xff] }
  0x20   : > { %811 = vmatpush.bf16.msra.mxu1 %v4043_v4  ;;  %v4041_v15 = vld [vmem:[%s4738_s4 + $0x30] sm:$0xff]  ;;  %v4028_v18 = vld [vmem:[%s4721_s20 + $0x18] sm:$0xff]  ;;  %v4029_v22 = vld [vmem:[%s4721_s20 + $0x20] sm:$0xff] }
  0x21   : > { %992 = vmatpush.bf16.msra.mxu2 %v4053_v5  ;;  %v4037_v16 = vld [vmem:[%s4738_s4 + $0x10] sm:$0xff]  ;;  %v4042_v19 = vld [vmem:[%s4738_s4 + $0x38] sm:$0xff]  ;;  %v4039_v24 = vld [vmem:[%s4738_s4 + $0x20] sm:$0xff] }
  0x22   : > { %3757 = vmatmul.msk.bf16.vlgmr.msra.gmra.mxu0 %vm597_vm0, %v4025_v6  ;;  %3763 = vmatmul.msk.bf16.vlgmr.msra.gmra.mxu3 %vm597_vm0, %v4031_v7  ;;  %v4047_v17 = vld [vmem:[%s4744_s0 + $0x10] sm:$0xff]  ;;  %v4038_v20 = vld [vmem:[%s4738_s4 + $0x18] sm:$0xff]  ;;  %v4049_v25 = vld [vmem:[%s4744_s0 + $0x20] sm:$0xff] }
  0x23   : > { %4081 = vmatpush.bf16.msrb.mxu3 %v4044_v1  ;;  %3805 = vmatmul.msk.bf16.vlgmr.msra.gmra.mxu1 %vm597_vm0, %v4035_v8  ;;  %v4048_v21 = vld [vmem:[%s4744_s0 + $0x18] sm:$0xff]  ;;  %v4051_v23 = vld [vmem:[%s4744_s0 + $0x30] sm:$0xff]  ;;  %v4030_v26 = vld [vmem:[%s4721_s20 + $0x28] sm:$0xff] }
  0x24   : > { %3853 = vmatmul.msk.bf16.vlgmr.msra.gmra.mxu2 %vm597_vm0, %v4045_v9  ;;  %v4052_v27 = vld [vmem:[%s4744_s0 + $0x38] sm:$0xff]  ;;  %v4040_v28 = vld [vmem:[%s4738_s4 + $0x28] sm:$0xff]  ;;  %v4794_v30 = vld [vmem:[%s6707_s5] ss:$0 sm:$0xff]  ;;  %s4910_s4 = smov 0  }
  0x25   : > { %v4050_v29 = vld [vmem:[%s4744_s0 + $0x28] sm:$0xff]  ;;  %v4799_v31 = vld [vmem:[%s6709_s7] ss:$0 sm:$0xff] }
  0x26   : > { %v4807_v38 = vld [vmem:[%s6711_s9] ss:$0 sm:$0xff] }
  0x27   : > { %4082 = vmatpush.bf16.msrb.mxu3 %v4043_v4 }
  0x2b   : > { %4083 = vmatpush.bf16.msra.mxu3 %v4054_v2 }
  0x2f   : > { %4084 = vmatpush.bf16.msra.mxu3 %v4053_v5 }
  0x32   : > { %3758 = vmatmul.msk.bf16.gmra.mxu0 %vm597_vm0, %v4026_v10  ;;  %3764 = vmatmul.msk.bf16.gmra.mxu3 %vm597_vm0, %v4032_v11 }
  0x33   : > { %3806 = vmatmul.msk.bf16.gmra.mxu1 %vm597_vm0, %v4036_v12 }
  0x34   : > { %3854 = vmatmul.msk.bf16.gmra.mxu2 %vm597_vm0, %v4046_v13 }
  0x42   : > { %3759 = vmatmul.msk.bf16.gmra.mxu0 %vm597_vm0, %v4027_v14  ;;  %3811 = vmatmul.msk.bf16.vlgmr.msrb.gmra.mxu3 %vm597_vm0, %v4041_v15 }
  0x43   : > { %3807 = vmatmul.msk.bf16.gmra.mxu1 %vm597_vm0, %v4037_v16 }
  0x44   : > { %3855 = vmatmul.msk.bf16.gmra.mxu2 %vm597_vm0, %v4047_v17 }
  0x52   : > { %3760 = vmatmul.msk.bf16.gmra.mxu0 %vm597_vm0, %v4028_v18  ;;  %3812 = vmatmul.msk.bf16.gmra.mxu3 %vm597_vm0, %v4042_v19 }
  0x53   : > { %3808 = vmatmul.msk.bf16.gmra.mxu1 %vm597_vm0, %v4038_v20 }
  0x54   : > { %3856 = vmatmul.msk.bf16.gmra.mxu2 %vm597_vm0, %v4048_v21 }
  0x62   : > { %3761 = vmatmul.msk.bf16.gmra.mxu0 %vm597_vm0, %v4029_v22  ;;  %3859 = vmatmul.msk.bf16.vlgmr.msra.gmra.mxu3 %vm597_vm0, %v4051_v23 }
  0x63   : > { %3809 = vmatmul.msk.bf16.gmra.mxu1 %vm597_vm0, %v4039_v24 }
  0x64   : > { %3857 = vmatmul.msk.bf16.gmra.mxu2 %vm597_vm0, %v4049_v25 }
  0x72   : > { %3762 = vmatmul.msk.bf16.gmra.mxu0 %vm597_vm0, %v4030_v26  ;;  %3860 = vmatmul.msk.bf16.gmra.mxu3 %vm597_vm0, %v4052_v27 }
  0x73   : > { %3810 = vmatmul.msk.bf16.gmra.mxu1 %vm597_vm0, %v4040_v28 }
  0x74   : > { %3858 = vmatmul.msk.bf16.gmra.mxu2 %vm597_vm0, %v4050_v29 }
  0x9f   : > { %v631_v32 = vpop.f32.mrf.mxu0 }
  0xa0   : > { %v632_v33 = vadd.f32 %v4794_v30, %v631_v32  ;;  %v813_v34 = vpop.f32.mrf.mxu1 }
  0xa1   : > { %v814_v35 = vadd.f32 %v4799_v31, %v813_v34 }
  0xa2   : > { %v671_v36 = vpack.c.bf16 %v632_v33, %v632_v33 }
  0xa3   : > { %v853_v37 = vpack.c.bf16 %v814_v35, %v814_v35 }
  0xa4   : > { %688 = vst.msk [vmem:[#allocation2] sm:$0xf] %vm687_vm1, %v671_v36 }
  0xa5   : > { %869 = vst.msk [vmem:[#allocation3] sm:$0xf] %vm687_vm1, %v853_v37  ;;  %v661_v39 = vpop.f32.mrf.mxu3 }
  0xa6   : > { %v662_v40 = vadd.f32 %v4794_v30, %v661_v39 }
  0xa7   : > { %v994_v41 = vpop.f32.mrf.mxu2  ;;  %v633_v42 = vpop.f32.mrf.mxu0 }
  0xa8   : > { %v683_v43 = vpack.c.bf16 %v662_v40, %v662_v40  ;;  %v995_v44 = vadd.f32 %v4807_v38, %v994_v41  ;;  %v634_v45 = vadd.f32 %v4794_v30, %v633_v42  ;;  %v815_v46 = vpop.f32.mrf.mxu1 }
  0xa9   : > { %v816_v47 = vadd.f32 %v4799_v31, %v815_v46 }
  0xaa   : > { %700 = vst.msk [vmem:[#allocation2 + $0x30] sm:$0xf] %vm687_vm1, %v683_v43  ;;  %v1034_v48 = vpack.c.bf16 %v995_v44, %v995_v44  ;;  %v672_v49 = vpack.c.bf16 %v634_v45, %v634_v45 }
  0xab   : > { %v854_v50 = vpack.c.bf16 %v816_v47, %v816_v47 }
  0xac   : > { %1050 = vst.msk [vmem:[#allocation4] sm:$0xf] %vm687_vm1, %v1034_v48 }
  0xad   : > { %689 = vst.msk [vmem:[#allocation2 + $0x4] sm:$0xf] %vm687_vm1, %v672_v49  ;;  %v663_v51 = vpop.f32.mrf.mxu3 }
  0xae   : > { %870 = vst.msk [vmem:[#allocation3 + $0x4] sm:$0xf] %vm687_vm1, %v854_v50  ;;  %v664_v52 = vadd.f32 %v4794_v30, %v663_v51 }
  0xaf   : > { %v996_v53 = vpop.f32.mrf.mxu2  ;;  %v636_v54 = vpop.f32.mrf.mxu0 }
  0xb0   : > { %v684_v55 = vpack.c.bf16 %v664_v52, %v664_v52  ;;  %v997_v56 = vadd.f32 %v4807_v38, %v996_v53  ;;  %v637_v57 = vadd.f32 %v4794_v30, %v636_v54  ;;  %v818_v58 = vpop.f32.mrf.mxu1 }
  0xb1   : > { %v819_v59 = vadd.f32 %v4799_v31, %v818_v58 }
  0xb2   : > { %701 = vst.msk [vmem:[#allocation2 + $0x34] sm:$0xf] %vm687_vm1, %v684_v55  ;;  %v1035_v60 = vpack.c.bf16 %v997_v56, %v997_v56  ;;  %v673_v61 = vpack.c.bf16 %v637_v57, %v637_v57 }
  0xb3   : > { %v855_v62 = vpack.c.bf16 %v819_v59, %v819_v59 }
  0xb4   : > { %1051 = vst.msk [vmem:[#allocation4 + $0x4] sm:$0xf] %vm687_vm1, %v1035_v60 }
  0xb5   : > { %690 = vst.msk [vmem:[#allocation2 + $0x8] sm:$0xf] %vm687_vm1, %v673_v61  ;;  %v666_v63 = vpop.f32.mrf.mxu3 }
  0xb6   : > { %871 = vst.msk [vmem:[#allocation3 + $0x8] sm:$0xf] %vm687_vm1, %v855_v62  ;;  %v667_v0 = vadd.f32 %v4794_v30, %v666_v63 }
  0xb7   : > { %v999_v1 = vpop.f32.mrf.mxu2  ;;  %v638_v2 = vpop.f32.mrf.mxu0 }
  0xb8   : > { %v685_v3 = vpack.c.bf16 %v667_v0, %v667_v0  ;;  %v1000_v4 = vadd.f32 %v4807_v38, %v999_v1  ;;  %v639_v5 = vadd.f32 %v4794_v30, %v638_v2  ;;  %v820_v6 = vpop.f32.mrf.mxu1 }
  0xb9   : > { %v821_v7 = vadd.f32 %v4799_v31, %v820_v6 }
  0xba   : > { %702 = vst.msk [vmem:[#allocation2 + $0x38] sm:$0xf] %vm687_vm1, %v685_v3  ;;  %v1036_v8 = vpack.c.bf16 %v1000_v4, %v1000_v4  ;;  %v674_v9 = vpack.c.bf16 %v639_v5, %v639_v5 }
  0xbb   : > { %v856_v10 = vpack.c.bf16 %v821_v7, %v821_v7 }
  0xbc   : > { %1052 = vst.msk [vmem:[#allocation4 + $0x8] sm:$0xf] %vm687_vm1, %v1036_v8 }
  0xbd   : > { %691 = vst.msk [vmem:[#allocation2 + $0xc] sm:$0xf] %vm687_vm1, %v674_v9  ;;  %v668_v11 = vpop.f32.mrf.mxu3 }
  0xbe   : > { %872 = vst.msk [vmem:[#allocation3 + $0xc] sm:$0xf] %vm687_vm1, %v856_v10  ;;  %v669_v12 = vadd.f32 %v4794_v30, %v668_v11 }
  0xbf   : > { %v1001_v13 = vpop.f32.mrf.mxu2  ;;  %v641_v14 = vpop.f32.mrf.mxu0 }
  0xc0   : > { %v686_v15 = vpack.c.bf16 %v669_v12, %v669_v12  ;;  %v1002_v16 = vadd.f32 %v4807_v38, %v1001_v13  ;;  %v642_v17 = vadd.f32 %v4794_v30, %v641_v14  ;;  %v823_v18 = vpop.f32.mrf.mxu1 }
  0xc1   : > { %v824_v19 = vadd.f32 %v4799_v31, %v823_v18 }
  0xc2   : > { %703 = vst.msk [vmem:[#allocation2 + $0x3c] sm:$0xf] %vm687_vm1, %v686_v15  ;;  %v1037_v20 = vpack.c.bf16 %v1002_v16, %v1002_v16  ;;  %v675_v21 = vpack.c.bf16 %v642_v17, %v642_v17 }
  0xc3   : > { %v857_v22 = vpack.c.bf16 %v824_v19, %v824_v19 }
  0xc4   : > { %1053 = vst.msk [vmem:[#allocation4 + $0xc] sm:$0xf] %vm687_vm1, %v1037_v20 }
  0xc5   : > { %692 = vst.msk [vmem:[#allocation2 + $0x10] sm:$0xf] %vm687_vm1, %v675_v21  ;;  %v843_v23 = vpop.f32.mrf.mxu3 }
  0xc6   : > { %873 = vst.msk [vmem:[#allocation3 + $0x10] sm:$0xf] %vm687_vm1, %v857_v22  ;;  %v844_v24 = vadd.f32 %v4799_v31, %v843_v23 }
  0xc7   : > { %v1004_v25 = vpop.f32.mrf.mxu2  ;;  %v643_v26 = vpop.f32.mrf.mxu0 }
  0xc8   : > { %v865_v27 = vpack.c.bf16 %v844_v24, %v844_v24  ;;  %v1005_v28 = vadd.f32 %v4807_v38, %v1004_v25  ;;  %v644_v29 = vadd.f32 %v4794_v30, %v643_v26  ;;  %v825_v32 = vpop.f32.mrf.mxu1 }
  0xc9   : > { %v826_v33 = vadd.f32 %v4799_v31, %v825_v32 }
  0xca   : > { %881 = vst.msk [vmem:[#allocation3 + $0x30] sm:$0xf] %vm687_vm1, %v865_v27  ;;  %v1038_v34 = vpack.c.bf16 %v1005_v28, %v1005_v28  ;;  %v676_v35 = vpack.c.bf16 %v644_v29, %v644_v29 }
  0xcb   : > { %v858_v36 = vpack.c.bf16 %v826_v33, %v826_v33 }
  0xcc   : > { %1054 = vst.msk [vmem:[#allocation4 + $0x10] sm:$0xf] %vm687_vm1, %v1038_v34 }
  0xcd   : > { %693 = vst.msk [vmem:[#allocation2 + $0x14] sm:$0xf] %vm687_vm1, %v676_v35  ;;  %v845_v37 = vpop.f32.mrf.mxu3 }
  0xce   : > { %874 = vst.msk [vmem:[#allocation3 + $0x14] sm:$0xf] %vm687_vm1, %v858_v36  ;;  %v846_v39 = vadd.f32 %v4799_v31, %v845_v37 }
  0xcf   : > { %v1006_v40 = vpop.f32.mrf.mxu2  ;;  %v646_v41 = vpop.f32.mrf.mxu0 }
  0xd0   : > { %v866_v42 = vpack.c.bf16 %v846_v39, %v846_v39  ;;  %v1007_v43 = vadd.f32 %v4807_v38, %v1006_v40  ;;  %v647_v44 = vadd.f32 %v4794_v30, %v646_v41  ;;  %v828_v45 = vpop.f32.mrf.mxu1 }
  0xd1   : > { %v829_v46 = vadd.f32 %v4799_v31, %v828_v45 }
  0xd2   : > { %882 = vst.msk [vmem:[#allocation3 + $0x34] sm:$0xf] %vm687_vm1, %v866_v42  ;;  %v1039_v47 = vpack.c.bf16 %v1007_v43, %v1007_v43  ;;  %v677_v48 = vpack.c.bf16 %v647_v44, %v647_v44 }
  0xd3   : > { %v859_v49 = vpack.c.bf16 %v829_v46, %v829_v46 }
  0xd4   : > { %1055 = vst.msk [vmem:[#allocation4 + $0x14] sm:$0xf] %vm687_vm1, %v1039_v47 }
  0xd5   : > { %694 = vst.msk [vmem:[#allocation2 + $0x18] sm:$0xf] %vm687_vm1, %v677_v48  ;;  %v848_v50 = vpop.f32.mrf.mxu3 }
  0xd6   : > { %875 = vst.msk [vmem:[#allocation3 + $0x18] sm:$0xf] %vm687_vm1, %v859_v49  ;;  %v849_v51 = vadd.f32 %v4799_v31, %v848_v50 }
  0xd7   : > { %v1009_v52 = vpop.f32.mrf.mxu2  ;;  %v648_v53 = vpop.f32.mrf.mxu0 }
  0xd8   : > { %v867_v54 = vpack.c.bf16 %v849_v51, %v849_v51  ;;  %v1010_v55 = vadd.f32 %v4807_v38, %v1009_v52  ;;  %v649_v56 = vadd.f32 %v4794_v30, %v648_v53  ;;  %v830_v57 = vpop.f32.mrf.mxu1  ;;  %v4906_v53 = vmov 0.0  }
  0xd9   : > { %v831_v58 = vadd.f32 %v4799_v31, %v830_v57 }
  0xda   : > { %883 = vst.msk [vmem:[#allocation3 + $0x38] sm:$0xf] %vm687_vm1, %v867_v54  ;;  %v1040_v59 = vpack.c.bf16 %v1010_v55, %v1010_v55  ;;  %v678_v60 = vpack.c.bf16 %v649_v56, %v649_v56  ;;  %v4908_v54 = vmov 0.0  }
  0xdb   : > { %v860_v61 = vpack.c.bf16 %v831_v58, %v831_v58 }
  0xdc   : > { %1056 = vst.msk [vmem:[#allocation4 + $0x18] sm:$0xf] %vm687_vm1, %v1040_v59 }
  0xdd   : > { %695 = vst.msk [vmem:[#allocation2 + $0x1c] sm:$0xf] %vm687_vm1, %v678_v60  ;;  %v850_v62 = vpop.f32.mrf.mxu3 }
  0xde   : > { %876 = vst.msk [vmem:[#allocation3 + $0x1c] sm:$0xf] %vm687_vm1, %v860_v61  ;;  %v851_v63 = vadd.f32 %v4799_v31, %v850_v62 }
  0xdf   : > { %v1011_v0 = vpop.f32.mrf.mxu2  ;;  %v651_v1 = vpop.f32.mrf.mxu0 }
  0xe0   : > { %v868_v2 = vpack.c.bf16 %v851_v63, %v851_v63  ;;  %v1012_v3 = vadd.f32 %v4807_v38, %v1011_v0  ;;  %v652_v4 = vadd.f32 %v4794_v30, %v651_v1  ;;  %v833_v5 = vpop.f32.mrf.mxu1 }
  0xe1   : > { %v834_v6 = vadd.f32 %v4799_v31, %v833_v5 }
  0xe2   : > { %884 = vst.msk [vmem:[#allocation3 + $0x3c] sm:$0xf] %vm687_vm1, %v868_v2  ;;  %v1041_v7 = vpack.c.bf16 %v1012_v3, %v1012_v3  ;;  %v679_v8 = vpack.c.bf16 %v652_v4, %v652_v4 }
  0xe3   : > { %v861_v9 = vpack.c.bf16 %v834_v6, %v834_v6 }
  0xe4   : > { %1057 = vst.msk [vmem:[#allocation4 + $0x1c] sm:$0xf] %vm687_vm1, %v1041_v7 }
  0xe5   : > { %696 = vst.msk [vmem:[#allocation2 + $0x20] sm:$0xf] %vm687_vm1, %v679_v8  ;;  %v1024_v10 = vpop.f32.mrf.mxu3 }
  0xe6   : > { %877 = vst.msk [vmem:[#allocation3 + $0x20] sm:$0xf] %vm687_vm1, %v861_v9  ;;  %v1025_v11 = vadd.f32 %v4807_v38, %v1024_v10 }
  0xe7   : > { %v1014_v12 = vpop.f32.mrf.mxu2  ;;  %v653_v13 = vpop.f32.mrf.mxu0 }
  0xe8   : > { %v1015_v14 = vadd.f32 %v4807_v38, %v1014_v12  ;;  %v1046_v15 = vpack.c.bf16 %v1025_v11, %v1025_v11  ;;  %v654_v16 = vadd.f32 %v4794_v30, %v653_v13  ;;  %v835_v17 = vpop.f32.mrf.mxu1 }
  0xe9   : > { %v836_v18 = vadd.f32 %v4799_v31, %v835_v17 }
  0xea   : > { %v1042_v19 = vpack.c.bf16 %v1015_v14, %v1015_v14  ;;  %1062 = vst.msk [vmem:[#allocation4 + $0x30] sm:$0xf] %vm687_vm1, %v1046_v15  ;;  %v680_v20 = vpack.c.bf16 %v654_v16, %v654_v16 }
  0xeb   : > { %v862_v21 = vpack.c.bf16 %v836_v18, %v836_v18 }
  0xec   : > { %1058 = vst.msk [vmem:[#allocation4 + $0x20] sm:$0xf] %vm687_vm1, %v1042_v19 }
  0xed   : > { %697 = vst.msk [vmem:[#allocation2 + $0x24] sm:$0xf] %vm687_vm1, %v680_v20  ;;  %v1026_v22 = vpop.f32.mrf.mxu3 }
  0xee   : > { %878 = vst.msk [vmem:[#allocation3 + $0x24] sm:$0xf] %vm687_vm1, %v862_v21  ;;  %v1027_v23 = vadd.f32 %v4807_v38, %v1026_v22 }
  0xef   : > { %v1016_v24 = vpop.f32.mrf.mxu2  ;;  %v656_v25 = vpop.f32.mrf.mxu0 }
  0xf0   : > { %v1017_v26 = vadd.f32 %v4807_v38, %v1016_v24  ;;  %v1047_v27 = vpack.c.bf16 %v1027_v23, %v1027_v23  ;;  %v657_v28 = vadd.f32 %v4794_v30, %v656_v25  ;;  %v838_v29 = vpop.f32.mrf.mxu1 }
  0xf1   : > { %v839_v32 = vadd.f32 %v4799_v31, %v838_v29 }
  0xf2   : > { %v1043_v33 = vpack.c.bf16 %v1017_v26, %v1017_v26  ;;  %1063 = vst.msk [vmem:[#allocation4 + $0x34] sm:$0xf] %vm687_vm1, %v1047_v27  ;;  %v681_v34 = vpack.c.bf16 %v657_v28, %v657_v28 }
  0xf3   : > { %v863_v35 = vpack.c.bf16 %v839_v32, %v839_v32 }
  0xf4   : > { %1059 = vst.msk [vmem:[#allocation4 + $0x24] sm:$0xf] %vm687_vm1, %v1043_v33 }
  0xf5   : > { %698 = vst.msk [vmem:[#allocation2 + $0x28] sm:$0xf] %vm687_vm1, %v681_v34  ;;  %v1029_v36 = vpop.f32.mrf.mxu3 }
  0xf6   : > { %879 = vst.msk [vmem:[#allocation3 + $0x28] sm:$0xf] %vm687_vm1, %v863_v35  ;;  %v1030_v37 = vadd.f32 %v4807_v38, %v1029_v36 }
  0xf7   : > { %v1019_v39 = vpop.f32.mrf.mxu2  ;;  %v658_v40 = vpop.f32.mrf.mxu0 }
  0xf8   : > { %v1020_v41 = vadd.f32 %v4807_v38, %v1019_v39  ;;  %v1048_v42 = vpack.c.bf16 %v1030_v37, %v1030_v37  ;;  %v659_v43 = vadd.f32 %v4794_v30, %v658_v40  ;;  %v840_v44 = vpop.f32.mrf.mxu1 }
  0xf9   : > { %v841_v45 = vadd.f32 %v4799_v31, %v840_v44 }
  0xfa   : > { %v1044_v46 = vpack.c.bf16 %v1020_v41, %v1020_v41  ;;  %1064 = vst.msk [vmem:[#allocation4 + $0x38] sm:$0xf] %vm687_vm1, %v1048_v42  ;;  %v682_v47 = vpack.c.bf16 %v659_v43, %v659_v43 }
  0xfb   : > { %v864_v48 = vpack.c.bf16 %v841_v45, %v841_v45 }
  0xfc   : > { %1060 = vst.msk [vmem:[#allocation4 + $0x28] sm:$0xf] %vm687_vm1, %v1044_v46 }
  0xfd   : > { %699 = vst.msk [vmem:[#allocation2 + $0x2c] sm:$0xf] %vm687_vm1, %v682_v47  ;;  %v1031_v49 = vpop.f32.mrf.mxu3 }
  0xfe   : > { %880 = vst.msk [vmem:[#allocation3 + $0x2c] sm:$0xf] %vm687_vm1, %v864_v48  ;;  %v1032_v50 = vadd.f32 %v4807_v38, %v1031_v49 }
  0xff   : > { %v1021_v51 = vpop.f32.mrf.mxu2 }
 0x100   : > { %v1022_v30 = vadd.f32 %v4807_v38, %v1021_v51  ;;  %v1049_v52 = vpack.c.bf16 %v1032_v50, %v1032_v50 }
 0x102   : > { %v1045_v31 = vpack.c.bf16 %v1022_v30, %v1022_v30  ;;  %1065 = vst.msk [vmem:[#allocation4 + $0x3c] sm:$0xf] %vm687_vm1, %v1049_v52 }
 0x104   : > { %1061 = vst.msk [vmem:[#allocation4 + $0x2c] sm:$0xf] %vm687_vm1, %v1045_v31 }
 0x105 LB: >> { %6754 = vst [vmem:[#allocation12_spill] sm:$0xff] %v4559_v53  ;;  %s3861_s14 = sshll.u32 %s4567_s4, 6  ;;  %vm1147_vm2 = vcmask 130048   ;;  %s4573_s23 = smov 112   ;;  %vm1209_vm3 = vcmask 523264   ;;  %vm1460_vm4 = vcmask 7168   ;;  %s4567_s4 = sphi %s4910_s4, %s1071_s4   ;;  %v4563_v54 = vphi %v4908_v54, %v6848_v54   ;;  %v4559_v53 = vphi %v4906_v53, %v6847_v53  }
 0x106   : >> { %6755 = vst [vmem:[#allocation13_spill] sm:$0xff] %v4563_v54  ;;  %s1075_s17 = sshra.s32 %s3861_s14, 3  ;;  %s4574_s0 = smov 96  }
 0x107   : >> { %s4922_s30 = sshll.u32 %s1075_s17, 2  ;;  %s4575_s24 = smov 80  }
 0x108   : >> { %s1088_s15 = scalar_lea.vmem [#allocation3], %s4922_s30  ;;  %s1078_s22 = scalar_lea.vmem [#allocation2], %s4922_s30 }
 0x109   : >> { %v4925_v38 = vld [vmem:[%s1088_s15 + $0x18] sm:$0xff]  ;;  %v4927_v55 = vld [vmem:[%s1088_s15 + $0x8] sm:$0xff]  ;;  %v4930_v56 = vld [vmem:[%s1078_s22] sm:$0xff]  ;;  %s5080_s20 = scalar_lea.vmem [#allocation4], %s4922_s30  ;;  %s1071_s4 = sadd.s32 1, %s4567_s4  }
 0x10a   : >> { %v1170_v57 = vsel %vm1147_vm2, %v4925_v38, 0  ;;  %1643 = vrot.lane.b32.xlu0 %v4925_v38, %s4573_s23  ;;  %1639 = vrot.lane.b32.xlu1 %v4927_v55, %s4573_s23  ;;  %v4940_v58 = vld [vmem:[%s1088_s15 + $0x10] sm:$0xff]  ;;  %v4944_v60 = vld [vmem:[%s1088_s15] sm:$0xff]  ;;  %v1164_v62 = vsel %vm1147_vm2, %v4927_v55, 0  ;;  %p1068_p11 = scmp.ge.s32.totalorder %s1071_s4, 2  }
 0x10b   : >> { %1176 = vmatpush.bf16.xpose.msra.mxu0 %v1170_v57  ;;  %1629 = vrot.lane.b32.xlu2 %v4930_v56, %s4573_s23  ;;  %v1167_v59 = vsel %vm1147_vm2, %v4940_v58, 0  ;;  %v4946_v61 = vld [vmem:[%s1078_s22 + $0x8] sm:$0xff]  ;;  %v4956_v63 = vld [vmem:[%s1078_s22 + $0x10] sm:$0xff]  ;;  %v1161_v0 = vsel %vm1147_vm2, %v4944_v60, 0  ;;  %v4964_v1 = vld [vmem:[%s1078_s22 + $0x18] sm:$0xff] }
 0x112   : >> { %1641 = vrot.lane.b32.xlu0 %v4940_v58, %s4573_s23  ;;  %1637 = vrot.lane.b32.xlu1 %v4944_v60, %s4573_s23 }
 0x113   : >> { %1177 = vmatpush.bf16.xpose.msra.mxu0 %v1167_v59  ;;  %1631 = vrot.lane.b32.xlu2 %v4946_v61, %s4573_s23 }
 0x11a   : >> { %1633 = vrot.lane.b32.xlu0 %v4956_v63, %s4573_s23  ;;  %1635 = vrot.lane.b32.xlu1 %v4964_v1, %s4573_s23 }
 0x11b   : >> { %1178 = vmatpush.bf16.xpose.msra.mxu0 %v1164_v62 }
 0x123   : >> { %1179 = vmatpush.bf16.xpose.msra.mxu0 %v1161_v0 }
 0x12a   : >> { %3897 = vmatmul.msk.bf16.vlgmr.msra.gmra.mxu0 %vm1147_vm2, %v4930_v56 }
 0x13a   : >> { %3898 = vmatmul.msk.bf16.gmra.mxu0 %vm1147_vm2, %v4946_v61 }
 0x14a   : >> { %3899 = vmatmul.msk.bf16.gmra.mxu0 %vm1147_vm2, %v4956_v63 }
 0x15a   : >> { %3900 = vmatmul.msk.bf16.gmra.mxu0 %vm1147_vm2, %v4964_v1 }
 0x165   : >> { %v1630_v10 = vpop.permute.xlu2 %1629 }
 0x16d   : >> { %v1632_v12 = vpop.permute.xlu2 %1631 }
 0x17c   : >> { %v1644_v2 = vpop.permute.xlu0 %1643  ;;  %v1640_v6 = vpop.permute.xlu1 %1639 }
 0x17d   : >> { %v1667_v3 = vsel %vm1147_vm2, %v1644_v2, 0  ;;  %v1661_v7 = vsel %vm1147_vm2, %v1640_v6, 0 }
 0x17e   : >> { %1673 = vmatpush.bf16.xpose.msra.mxu3 %v1667_v3 }
 0x184   : >> { %v1642_v4 = vpop.permute.xlu0 %1641  ;;  %v1638_v8 = vpop.permute.xlu1 %1637 }
 0x185   : >> { %v1664_v5 = vsel %vm1147_vm2, %v1642_v4, 0  ;;  %v1658_v9 = vsel %vm1147_vm2, %v1638_v8, 0 }
 0x186   : >> { %1674 = vmatpush.bf16.xpose.msra.mxu3 %v1664_v5 }
 0x18c   : >> { %v1634_v15 = vpop.permute.xlu0 %1633  ;;  %v1636_v20 = vpop.permute.xlu1 %1635 }
 0x18e   : >> { %1675 = vmatpush.bf16.xpose.msra.mxu3 %v1661_v7 }
 0x196   : >> { %1676 = vmatpush.bf16.xpose.msra.mxu3 %v1658_v9 }
 0x19d   : >> { %3926 = vmatmul.msk.bf16.vlgmr.msra.gmra.mxu3 %vm1147_vm2, %v1630_v10 }
 0x1a7   : >> { %v1181_v11 = vpop.f32.mrf.mxu0 }
 0x1a8   : >> { %v1201_v21 = vmul.f32 0.25, %v1181_v11 }
 0x1aa   : >> { %v1210_v23 = vsel %vm1209_vm3, %v1201_v21, -inf }
 0x1ad   : >> { %3927 = vmatmul.msk.bf16.gmra.mxu3 %vm1147_vm2, %v1632_v12 }
 0x1af   : >> { %v1183_v13 = vpop.f32.mrf.mxu0 }
 0x1b0   : >> { %v1202_v39 = vmul.f32 0.25, %v1183_v13 }
 0x1b2   : >> { %v1213_v40 = vsel %vm1209_vm3, %v1202_v39, -inf }
 0x1b7   : >> { %v1186_v14 = vpop.f32.mrf.mxu0 }
 0x1b8   : >> { %v1203_v34 = vmul.f32 0.25, %v1186_v14 }
 0x1ba   : >> { %v1216_v36 = vsel %vm1209_vm3, %v1203_v34, -inf }
 0x1bd   : >> { %3928 = vmatmul.msk.bf16.gmra.mxu3 %vm1147_vm2, %v1634_v15 }
 0x1bf   : >> { %v1188_v16 = vpop.f32.mrf.mxu0 }
 0x1c0   : >> { %v1204_v35 = vmul.f32 0.25, %v1188_v16 }
 0x1c2   : >> { %v1219_v37 = vsel %vm1209_vm3, %v1204_v35, -inf }
 0x1c7   : >> { %v1191_v17 = vpop.f32.mrf.mxu0 }
 0x1c8   : >> { %v4981_v18 = vmul.f32 0.25, %v1191_v17 }
 0x1ca   : >> { %v1222_v19 = vsel %vm1209_vm3, %v4981_v18, -inf }
 0x1cb   : >> { %1223 = vmax.xlane.f32.xlu1 %v1222_v19 }
 0x1cd   : >> { %3929 = vmatmul.msk.bf16.gmra.mxu3 %vm1147_vm2, %v1636_v20 }
 0x1cf   : >> { %v1193_v22 = vpop.f32.mrf.mxu0 }
 0x1d0   : >> { %v1206_v27 = vmul.f32 0.25, %v1193_v22 }
 0x1d2   : >> { %v1225_v32 = vsel %vm1209_vm3, %v1206_v27, -inf }
 0x1d3   : >> { %1211 = vmax.xlane.f32.xlu1 %v1210_v23 }
 0x1d7   : >> { %v1196_v24 = vpop.f32.mrf.mxu0 }
 0x1d8   : >> { %v1207_v25 = vmul.f32 0.25, %v1196_v24 }
 0x1da   : >> { %v1228_v26 = vsel %vm1209_vm3, %v1207_v25, -inf }
 0x1db   : >> { %1229 = vmax.xlane.f32.xlu2 %v1228_v26 }
 0x1df   : >> { %v1198_v28 = vpop.f32.mrf.mxu0 }
 0x1e0   : >> { %v1208_v29 = vmul.f32 0.25, %v1198_v28 }
 0x1e2   : >> { %v1231_v33 = vsel %vm1209_vm3, %v1208_v29, -inf }
 0x1e3   : >> { %1226 = vmax.xlane.f32.xlu2 %v1225_v32  ;;  %1232 = vmax.xlane.f32.xlu0 %v1231_v33 }
 0x1eb   : >> { %1217 = vmax.xlane.f32.xlu2 %v1216_v36  ;;  %1220 = vmax.xlane.f32.xlu0 %v1219_v37 }
 0x1f3   : >> { %1214 = vmax.xlane.f32.xlu2 %v1213_v40 }
 0x220   : >> { %v4993_v41 = vpop.f32.mrf.mxu3 }
 0x228   : >> { %v4995_v42 = vpop.f32.mrf.mxu3 }
 0x230   : >> { %v4997_v43 = vpop.f32.mrf.mxu3 }
 0x238   : >> { %v4999_v44 = vpop.f32.mrf.mxu3 }
 0x23e   : >> { %v1224_v46 = vpop.xlane.xlu1 %1223 }
 0x23f   : >> { %v1238_v8 = vsub.f32 %v4981_v18, %v1224_v46 }
 0x240   : >> { %v5001_v47 = vpop.f32.mrf.mxu3 }
 0x241   : >> { %v1250_v12 = vmul.f32 1.442695, %v1238_v8  ;;  %v5048_v40 = vmul.f32 0.25, %v5001_v47  ;;  %v5062_v47 = vmul.f32 0.25, %v4999_v44  ;;  %v5091_v44 = vld [vmem:[%s5080_s20 + $0x8] sm:$0xff] }
 0x246   : >> { %v1212_v52 = vpop.xlane.xlu1 %1211 }
 0x247   : >> { %v1234_v3 = vsub.f32 %v1201_v21, %v1212_v52 }
 0x248   : >> { %v1690_v2 = vpop.f32.mrf.mxu3 }
 0x249   : >> { %v1242_v10 = vmul.f32 1.442695, %v1234_v3 }
 0x24e   : >> { %v1230_v45 = vpop.xlane.xlu2 %1229 }
 0x24f   : >> { %v1240_v51 = vsub.f32 %v1207_v25, %v1230_v45  ;;  %v5050_v45 = vmul.f32 0.25, %v1690_v2 }
 0x250   : >> { %v1693_v17 = vpop.f32.mrf.mxu3 }
 0x251   : >> { %v1254_v31 = vmul.f32 1.442695, %v1240_v51 }
 0x256   : >> { %v1227_v48 = vpop.xlane.xlu2 %1226  ;;  %v1233_v49 = vpop.xlane.xlu0 %1232 }
 0x257   : >> { %v1239_v50 = vsub.f32 %v1206_v27, %v1227_v48  ;;  %v1241_v5 = vsub.f32 %v1208_v29, %v1233_v49  ;;  %v1718_v48 = vsel %vm1209_vm3, %v5048_v40, -inf  ;;  %v1721_v49 = vsel %vm1209_vm3, %v5050_v45, -inf }
 0x258   : >> { %v1695_v28 = vpop.f32.mrf.mxu3 }
 0x259   : >> { %v1252_v30 = vmul.f32 1.442695, %v1239_v50  ;;  %v1256_v11 = vmul.f32 1.442695, %v1241_v5  ;;  %v5032_v32 = vmul.f32 0.25, %v1695_v28  ;;  %v5065_v50 = vmul.f32 0.25, %v4993_v41 }
 0x25a   : >> { %v5083_v41 = vld [vmem:[%s5080_s20 + $0x18] sm:$0xff] }
 0x25b   : >> { %4270 = vpow2.f32 %v1252_v30  ;;  %v1715_v30 = vsel %vm1209_vm3, %v5062_v47, -inf  ;;  %v1706_v52 = vsel %vm1209_vm3, %v5065_v50, -inf  ;;  %1342 = vmatpush.bf16.msra.mxu1 %v5083_v41 }
 0x25c   : >> { %4272 = vpow2.f32 %v1254_v31 }
 0x25e   : >> { %v1218_v57 = vpop.xlane.xlu2 %1217  ;;  %v1221_v59 = vpop.xlane.xlu0 %1220 }
 0x25f   : >> { %v1236_v62 = vsub.f32 %v1203_v34, %v1218_v57  ;;  %v1237_v0 = vsub.f32 %v1204_v35, %v1221_v59  ;;  %v5036_v34 = vmul.f32 0.25, %v1693_v17  ;;  %v1727_v35 = vsel %vm1209_vm3, %v5032_v32, -inf  ;;  %v5095_v57 = vld [vmem:[%s5080_s20] sm:$0xff] }
 0x261   : >> { %v5003_v4 = vpop.eup %4270  ;;  %v1246_v6 = vmul.f32 1.442695, %v1236_v62  ;;  %v1248_v7 = vmul.f32 1.442695, %v1237_v0  ;;  %v1724_v37 = vsel %vm1209_vm3, %v5036_v34, -inf }
 0x262   : >> { %v1273_v9 = vsel %vm1209_vm3, %v5003_v4, 0.0  ;;  %v5008_v14 = vpop.eup %4272 }
 0x263   : >> { %4274 = vpow2.f32 %v1246_v6  ;;  %1274 = vadd.xlane.f32.xlu0 %v1273_v9  ;;  %v1276_v20 = vsel %vm1209_vm3, %v5008_v14, 0.0 }
 0x264   : >> { %4276 = vpow2.f32 %v1248_v7 }
 0x265   : >> { %4278 = vpow2.f32 %v1242_v10 }
 0x266   : >> { %v1215_v13 = vpop.xlane.xlu2 %1214  ;;  %4280 = vpow2.f32 %v1256_v11 }
 0x267   : >> { %v1235_v16 = vsub.f32 %v1202_v39, %v1215_v13  ;;  %4282 = vpow2.f32 %v1250_v12  ;;  %v5045_v39 = vmul.f32 0.25, %v4997_v43  ;;  %v5059_v43 = vmul.f32 0.25, %v4995_v42  ;;  %v5087_v42 = vld [vmem:[%s5080_s20 + $0x10] sm:$0xff] }
 0x268   : >> { %1343 = vmatpush.bf16.msra.mxu1 %v5087_v42 }
 0x269   : >> { %v5010_v15 = vpop.eup %4274  ;;  %v1244_v22 = vmul.f32 1.442695, %v1235_v16  ;;  %v1712_v46 = vsel %vm1209_vm3, %v5045_v39, -inf  ;;  %v1709_v51 = vsel %vm1209_vm3, %v5059_v43, -inf }
 0x26a   : >> { %v5012_v19 = vpop.eup %4276  ;;  %v1264_v18 = vsel %vm1209_vm3, %v5010_v15, 0.0 }
 0x26b   : >> { %1265 = vadd.xlane.f32.xlu1 %v1264_v18  ;;  %1277 = vadd.xlane.f32.xlu0 %v1276_v20  ;;  %v1267_v21 = vsel %vm1209_vm3, %v5012_v19, 0.0  ;;  %v5020_v23 = vpop.eup %4278  ;;  %4284 = vpow2.f32 %v1244_v22 }
 0x26c   : >> { %1268 = vadd.xlane.f32.xlu2 %v1267_v21  ;;  %v5022_v24 = vpop.eup %4280  ;;  %v1258_v26 = vsel %vm1209_vm3, %v5020_v23, 0.0  ;;  %1344 = vmatpush.bf16.msra.mxu1 %v5091_v44 }
 0x26d   : >> { %v5024_v25 = vpop.eup %4282  ;;  %v1279_v27 = vsel %vm1209_vm3, %v5022_v24, 0.0 }
 0x26e   : >> { %v1270_v29 = vsel %vm1209_vm3, %v5024_v25, 0.0 }
 0x270   : >> { %1345 = vmatpush.bf16.msra.mxu1 %v5095_v57 }
 0x271   : >> { %v5034_v33 = vpop.eup %4284 }
 0x272   : >> { %v1261_v36 = vsel %vm1209_vm3, %v5034_v33, 0.0 }
 0x273   : >> { %1259 = vadd.xlane.f32.xlu0 %v1258_v26  ;;  %1280 = vadd.xlane.f32.xlu1 %v1279_v27 }
 0x274   : >> { %1271 = vadd.xlane.f32.xlu2 %v1270_v29 }
 0x27b   : >> { %1728 = vmax.xlane.f32.xlu0 %v1727_v35  ;;  %1262 = vadd.xlane.f32.xlu1 %v1261_v36 }
 0x27c   : >> { %1725 = vmax.xlane.f32.xlu2 %v1724_v37 }
 0x283   : >> { %1713 = vmax.xlane.f32.xlu0 %v1712_v46  ;;  %1719 = vmax.xlane.f32.xlu1 %v1718_v48 }
 0x284   : >> { %1722 = vmax.xlane.f32.xlu2 %v1721_v49 }
 0x28b   : >> { %1710 = vmax.xlane.f32.xlu0 %v1709_v51  ;;  %1716 = vmax.xlane.f32.xlu1 %v1715_v30 }
 0x28c   : >> { %1707 = vmax.xlane.f32.xlu2 %v1706_v52 }
 0x2a4   : >> { %2125 = vrot.lane.b32.xlu1 %v4925_v38, %s4574_s0  ;;  %2123 = vrot.lane.b32.xlu2 %v4940_v58, %s4574_s0 }
 0x2ac   : >> { %2121 = vrot.lane.b32.xlu1 %v4927_v55, %s4574_s0 }
 0x2d6   : >> { %v1275_v31 = vpop.xlane.xlu0 %1274 }
 0x2de   : >> { %v1266_v59 = vpop.xlane.xlu1 %1265  ;;  %v1278_v62 = vpop.xlane.xlu0 %1277 }
 0x2df   : >> { %v1269_v0 = vpop.xlane.xlu2 %1268  ;;  %4286 = vrcp.f32 %v1278_v62 }
 0x2e5   : >> { %v4287_v6 = vpop.eup %4286 }
 0x2e6   : >> { %v1281_v2 = vpop.xlane.xlu1 %1280  ;;  %v1260_v3 = vpop.xlane.xlu0 %1259  ;;  %v5104_v11 = vmul.f32 %v4287_v6, %v5008_v14 }
 0x2e7   : >> { %4288 = vrcp.f32 %v1281_v2  ;;  %v1272_v5 = vpop.xlane.xlu2 %1271 }
 0x2e8   : >> { %4290 = vrcp.f32 %v1272_v5 }
 0x2e9   : >> { %4292 = vrcp.f32 %v1275_v31 }
 0x2ea   : >> { %4294 = vrcp.f32 %v1260_v3 }
 0x2ed   : >> { %v4289_v7 = vpop.eup %4288 }
 0x2ee   : >> { %v5099_v8 = vmul.f32 %v4289_v7, %v5022_v24  ;;  %v1263_v9 = vpop.xlane.xlu1 %1262  ;;  %v5101_v10 = vpop.xlane.xlu0 %1728 }
 0x2ef   : >> { %v4291_v12 = vpop.eup %4290  ;;  %4296 = vrcp.f32 %v1263_v9  ;;  %v1726_v13 = vpop.xlane.xlu2 %1725 }
 0x2f0   : >> { %4298 = vrcp.f32 %v1266_v59  ;;  %v1736_v16 = vsub.f32 %v5036_v34, %v1726_v13  ;;  %v5109_v17 = vpack.c.bf16 %v5099_v8, %v5104_v11  ;;  %v4293_v18 = vpop.eup %4292  ;;  %v5112_v20 = vmul.f32 %v4291_v12, %v5024_v25 }
 0x2f1   : >> { %4300 = vrcp.f32 %v1269_v0  ;;  %v4295_v22 = vpop.eup %4294  ;;  %v5117_v24 = vmul.f32 %v4293_v18, %v5003_v4  ;;  %v1737_v18 = vsub.f32 %v5032_v32, %v5101_v10 }
 0x2f2   : >> { %v1750_v21 = vmul.f32 1.442695, %v1736_v16  ;;  %v1336_v14 = vsel %vm1209_vm3, %v5109_v17, 0  ;;  %v5123_v25 = vmul.f32 %v4295_v22, %v5020_v23 }
 0x2f3   : >> { %1403 = vmatpush.bf16.xpose.msra.mxu2 %v1336_v14  ;;  %v5127_v35 = vpack.c.bf16 %v5117_v24, %v5112_v20 }
 0x2f4   : >> { %4302 = vpow2.f32 %v1750_v21  ;;  %v1752_v21 = vmul.f32 1.442695, %v1737_v18 }
 0x2f5   : >> { %v4297_v26 = vpop.eup %4296  ;;  %v1333_v51 = vsel %vm1209_vm3, %v5127_v35, 0 }
 0x2f6   : >> { %v4299_v27 = vpop.eup %4298  ;;  %v5120_v28 = vmul.f32 %v4297_v26, %v5034_v33  ;;  %v1720_v29 = vpop.xlane.xlu1 %1719 }
 0x2f7   : >> { %v1714_v34 = vpop.xlane.xlu0 %1713  ;;  %v4301_v36 = vpop.eup %4300  ;;  %v5135_v33 = vmul.f32 %v4299_v27, %v5010_v15  ;;  %v1734_v23 = vsub.f32 %v5048_v40, %v1720_v29 }
 0x2f8   : >> { %v1732_v37 = vsub.f32 %v5045_v39, %v1714_v34  ;;  %v1298_v4 = vpack.c.bf16 %v5120_v28, %v5123_v25  ;;  %v5138_v49 = vmul.f32 %v4301_v36, %v5012_v19  ;;  %v1723_v52 = vpop.xlane.xlu2 %1722 }
 0x2f9   : >> { %v1746_v30 = vmul.f32 1.442695, %v1734_v23  ;;  %v1735_v0 = vsub.f32 %v5050_v45, %v1723_v52 }
 0x2fa   : >> { %v1742_v46 = vmul.f32 1.442695, %v1732_v37  ;;  %v5132_v48 = vpop.eup %4302  ;;  %3917 = vmatmul.msk.bf16.vlgmr.msra.gmra.mxu1 %vm1209_vm3, %v1298_v4  ;;  %v1299_v19 = vpack.c.bf16 %v5138_v49, %v5135_v33  ;;  %v1327_v9 = vsel %vm1209_vm3, %v1298_v4, 0 }
 0x2fb   : >> { %v1772_v39 = vsel %vm1209_vm3, %v5132_v48, 0.0  ;;  %1404 = vmatpush.bf16.xpose.msra.mxu2 %v1333_v51  ;;  %v1748_v3 = vmul.f32 1.442695, %v1735_v0 }
 0x2fc   : >> { %1773 = vadd.xlane.f32.xlu2 %v1772_v39  ;;  %4304 = vpow2.f32 %v1742_v46  ;;  %v1330_v59 = vsel %vm1209_vm3, %v1299_v19, 0 }
 0x2fd   : >> { %4306 = vpow2.f32 %v1746_v30 }
 0x2fe   : >> { %v1717_v15 = vpop.xlane.xlu1 %1716 }
 0x2ff   : >> { %v1733_v31 = vsub.f32 %v5062_v47, %v1717_v15  ;;  %v1711_v36 = vpop.xlane.xlu0 %1710 }
 0x300   : >> { %v1708_v6 = vpop.xlane.xlu2 %1707  ;;  %v1731_v37 = vsub.f32 %v5059_v43, %v1711_v36 }
 0x301   : >> { %v1744_v40 = vmul.f32 1.442695, %v1733_v31  ;;  %v1730_v45 = vsub.f32 %v5065_v50, %v1708_v6 }
 0x302   : >> { %v5150_v62 = vpop.eup %4304 }
 0x303   : >> { %4308 = vpow2.f32 %v1744_v40  ;;  %1405 = vmatpush.bf16.xpose.msra.mxu2 %v1330_v59  ;;  %v1760_v2 = vsel %vm1209_vm3, %v5150_v62, 0.0  ;;  %v5155_v5 = vpop.eup %4306  ;;  %v1738_v13 = vmul.f32 1.442695, %v1730_v45 }
 0x304   : >> { %1761 = vadd.xlane.f32.xlu0 %v1760_v2  ;;  %4310 = vpow2.f32 %v1748_v3  ;;  %v1766_v12 = vsel %vm1209_vm3, %v5155_v5, 0.0 }
 0x305   : >> { %4312 = vpow2.f32 %v1738_v13 }
 0x306   : >> { %4314 = vpow2.f32 %v1752_v21 }
 0x308   : >> { %v2124_v27 = vpop.permute.xlu2 %2123 }
 0x309   : >> { %v5157_v7 = vpop.eup %4308  ;;  %v2146_v29 = vsel %vm1147_vm2, %v2124_v27, 0 }
 0x30a   : >> { %3918 = vmatmul.msk.bf16.gmra.mxu1 %vm1209_vm3, %v1299_v19  ;;  %v1763_v47 = vsel %vm1209_vm3, %v5157_v7, 0.0  ;;  %v5166_v16 = vpop.eup %4310 }
 0x30b   : >> { %1764 = vadd.xlane.f32.xlu1 %v1763_v47  ;;  %1406 = vmatpush.bf16.xpose.msra.mxu2 %v1327_v9  ;;  %v1769_v50 = vsel %vm1209_vm3, %v5166_v16, 0.0  ;;  %v5175_v14 = vpop.eup %4312 }
 0x30c   : >> { %1767 = vadd.xlane.f32.xlu0 %v1766_v12  ;;  %v1754_v26 = vsel %vm1209_vm3, %v5175_v14, 0.0  ;;  %v4315_v10 = vpop.eup %4314 }
 0x30d   : >> { %v1775_v34 = vsel %vm1209_vm3, %v4315_v10, 0.0 }
 0x312   : >> { %3921 = vmatmul.msk.bf16.vlgmr.msra.gmra.mxu2 %vm1209_vm3, %v1298_v4  ;;  %v1740_v4 = vmul.f32 1.442695, %v1731_v37 }
 0x314   : >> { %2119 = vrot.lane.b32.xlu2 %v4944_v60, %s4574_s0  ;;  %1770 = vadd.xlane.f32.xlu0 %v1769_v50  ;;  %4316 = vpow2.f32 %v1740_v4 }
 0x316   : >> { %v2126_v22 = vpop.permute.xlu1 %2125 }
 0x317   : >> { %v2149_v32 = vsel %vm1147_vm2, %v2126_v22, 0 }
 0x318   : >> { %2155 = vmatpush.bf16.xpose.msrb.mxu2 %v2149_v32 }
 0x31a   : >> { %3919 = vmatmul.msk.bf16.gmra.mxu1 %vm1209_vm3, %v5127_v35  ;;  %v5196_v46 = vpop.eup %4316 }
 0x31b   : >> { %v1757_v43 = vsel %vm1209_vm3, %v5196_v46, 0.0 }
 0x31c   : >> { %1755 = vadd.xlane.f32.xlu0 %v1754_v26 }
 0x320   : >> { %2156 = vmatpush.bf16.xpose.msrb.mxu2 %v2146_v29 }
 0x322   : >> { %3922 = vmatmul.msk.bf16.gmra.mxu2 %vm1209_vm3, %v1299_v19 }
 0x324   : >> { %2115 = vrot.lane.b32.xlu1 %v4956_v63, %s4574_s0  ;;  %1776 = vadd.xlane.f32.xlu0 %v1775_v34 }
 0x32a   : >> { %3920 = vmatmul.msk.bf16.gmra.mxu1 %vm1209_vm3, %v5109_v17 }
 0x32c   : >> { %2593 = vrot.lane.b32.xlu1 %v4930_v56, %s4575_s24 }
 0x332   : >> { %3923 = vmatmul.msk.bf16.gmra.mxu2 %vm1209_vm3, %v5127_v35 }
 0x334   : >> { %2597 = vrot.lane.b32.xlu1 %v4956_v63, %s4575_s24 }
 0x338   : >> { %2111 = vrot.lane.b32.xlu0 %v4930_v56, %s4574_s0  ;;  %v2122_v56 = vpop.permute.xlu1 %2121 }
 0x339   : >> { %v2143_v63 = vsel %vm1147_vm2, %v2122_v56, 0 }
 0x33a   : >> { %2157 = vmatpush.bf16.xpose.msrb.mxu2 %v2143_v63 }
 0x33c   : >> { %1802 = vrot.lane.b32.xlu1 %v5087_v42, %s4573_s23 }
 0x33d   : >> { %1758 = vadd.xlane.f32.xlu2 %v1757_v43 }
 0x340   : >> { %2113 = vrot.lane.b32.xlu0 %v4946_v61, %s4574_s0 }
 0x342   : >> { %3924 = vmatmul.msk.bf16.gmra.mxu2 %vm1209_vm3, %v5109_v17 }
 0x348   : >> { %2607 = vrot.lane.b32.xlu0 %v4925_v38, %s4575_s24 }
 0x350   : >> { %2117 = vrot.lane.b32.xlu0 %v4964_v1, %s4574_s0 }
 0x355   : >> { %2605 = vrot.lane.b32.xlu2 %v4940_v58, %s4575_s24 }
 0x358   : >> { %2603 = vrot.lane.b32.xlu0 %v4927_v55, %s4575_s24 }
 0x35d   : >> { %2599 = vrot.lane.b32.xlu2 %v4964_v1, %s4575_s24 }
 0x360   : >> { %2601 = vrot.lane.b32.xlu0 %v4944_v60, %s4575_s24 }
 0x365   : >> { %1800 = vrot.lane.b32.xlu2 %v5091_v44, %s4573_s23 }
 0x368   : >> { %2595 = vrot.lane.b32.xlu0 %v4946_v61, %s4575_s24 }
 0x36f   : >> { %v1774_v38 = vpop.xlane.xlu2 %1773 }
 0x370   : >> { %1804 = vrot.lane.b32.xlu0 %v5083_v41, %s4573_s23  ;;  %4318 = vrcp.f32 %v1774_v38 }
 0x376   : >> { %v4319_v39 = vpop.eup %4318 }
 0x377   : >> { %v2120_v55 = vpop.permute.xlu2 %2119  ;;  %v1762_v58 = vpop.xlane.xlu0 %1761  ;;  %v5231_v19 = vmul.f32 %v4319_v39, %v5132_v48 }
 0x378   : >> { %v2140_v1 = vsel %vm1147_vm2, %v2120_v55, 0  ;;  %1798 = vrot.lane.b32.xlu0 %v5095_v57, %s4573_s23 }
 0x379   : >> { %2158 = vmatpush.bf16.xpose.msrb.mxu2 %v2140_v1 }
 0x37e   : >> { %v1765_v31 = vpop.xlane.xlu1 %1764 }
 0x37f   : >> { %v1768_v60 = vpop.xlane.xlu0 %1767 }
 0x387   : >> { %v1771_v17 = vpop.xlane.xlu0 %1770 }
 0x38f   : >> { %v1756_v35 = vpop.xlane.xlu0 %1755 }
 0x395   : >> { %v1408_v23 = vpop.f32.mrf.mxu2 }
 0x396   : >> { %v1428_v61 = vmul.f32 %v1408_v23, %v1408_v23 }
 0x397   : >> { %v1777_v51 = vpop.xlane.xlu0 %1776 }
 0x398   : >> { %4320 = vrcp.f32 %v1777_v51  ;;  %v1436_v40 = vsel %vm1209_vm3, %v1428_v61, 0.0 }
 0x399   : >> { %4322 = vrcp.f32 %v1771_v17 }
 0x39a   : >> { %4324 = vrcp.f32 %v1768_v60 }
 0x39b   : >> { %4326 = vrcp.f32 %v1765_v31 }
 0x39c   : >> { %4328 = vrcp.f32 %v1762_v58 }
 0x39d   : >> { %v1410_v30 = vpop.f32.mrf.mxu2  ;;  %4330 = vrcp.f32 %v1756_v35 }
 0x39e   : >> { %v1429_v52 = vmul.f32 %v1410_v30, %v1410_v30  ;;  %v4321_v15 = vpop.eup %4320 }
 0x39f   : >> { %v5234_v59 = vmul.f32 %v4321_v15, %v4315_v10  ;;  %v4323_v2 = vpop.eup %4322 }
 0x3a0   : >> { %v1437_v0 = vsel %vm1209_vm3, %v1429_v52, 0.0  ;;  %v4325_v47 = vpop.eup %4324  ;;  %v5242_v9 = vmul.f32 %v4323_v2, %v5166_v16  ;;  %v2116_v2 = vpop.permute.xlu1 %2115 }
 0x3a1   : >> { %v1438_v3 = vadd.f32 %v1437_v0, %v1436_v40  ;;  %v5239_v6 = vpack.c.bf16 %v5234_v59, %v5231_v19  ;;  %v5247_v12 = vmul.f32 %v4325_v47, %v5155_v5  ;;  %v4327_v21 = vpop.eup %4326 }
 0x3a2   : >> { %v4329_v16 = vpop.eup %4328  ;;  %v5255_v32 = vmul.f32 %v4327_v21, %v5157_v7 }
 0x3a3   : >> { %v1820_v48 = vsel %vm1209_vm3, %v5239_v6, 0  ;;  %v5252_v50 = vpack.c.bf16 %v5242_v9, %v5247_v12  ;;  %v5261_v27 = vmul.f32 %v4329_v16, %v5150_v62  ;;  %v4331_v56 = vpop.eup %4330 }
 0x3a4   : >> { %1887 = vmatpush.bf16.xpose.msrb.mxu0 %v1820_v48  ;;  %v5268_v62 = vmul.f32 %v4331_v56, %v5175_v14 }
 0x3a5   : >> { %v1413_v45 = vpop.f32.mrf.mxu2  ;;  %v1817_v5 = vsel %vm1209_vm3, %v5252_v50, 0  ;;  %v1795_v37 = vpack.c.bf16 %v5255_v32, %v5261_v27 }
 0x3a6   : >> { %v1430_v13 = vmul.f32 %v1413_v45, %v1413_v45 }
 0x3a7   : >> { %v1814_v43 = vsel %vm1209_vm3, %v1795_v37, 0 }
 0x3a8   : >> { %v1439_v18 = vsel %vm1209_vm3, %v1430_v13, 0.0  ;;  %v2594_v45 = vpop.permute.xlu1 %2593 }
 0x3a9   : >> { %v1440_v22 = vadd.f32 %v1439_v18, %v1438_v3 }
 0x3aa   : >> { %v2112_v26 = vpop.permute.xlu0 %2111 }
 0x3ab   : >> { %3939 = vmatmul.msk.bf16.vlgmr.msrb.gmra.mxu2 %vm1147_vm2, %v2112_v26 }
 0x3ac   : >> { %1888 = vmatpush.bf16.xpose.msrb.mxu0 %v1817_v5 }
 0x3ad   : >> { %v1415_v10 = vpop.f32.mrf.mxu2 }
 0x3ae   : >> { %v1431_v29 = vmul.f32 %v1415_v10, %v1415_v10 }
 0x3b0   : >> { %v1441_v34 = vsel %vm1209_vm3, %v1431_v29, 0.0  ;;  %v1759_v36 = vpop.xlane.xlu2 %1758 }
 0x3b1   : >> { %v1442_v7 = vadd.f32 %v1441_v34, %v1440_v22  ;;  %4332 = vrcp.f32 %v1759_v36  ;;  %v2598_v22 = vpop.permute.xlu1 %2597  ;;  %v5300_v34 = vpop.f32.mrf.mxu1 }
 0x3b2   : >> { %v2114_v4 = vpop.permute.xlu0 %2113  ;;  %6756 = vst [vmem:[#allocation14_spill] sm:$0xff] %v5300_v34 }
 0x3b4   : >> { %1889 = vmatpush.bf16.xpose.msrb.mxu0 %v1814_v43 }
 0x3b5   : >> { %v1418_v63 = vpop.f32.mrf.mxu2 }
 0x3b6   : >> { %v1432_v38 = vmul.f32 %v1418_v63, %v1418_v63 }
 0x3b7   : >> { %v4333_v55 = vpop.eup %4332 }
 0x3b8   : >> { %v5271_v58 = vmul.f32 %v4333_v55, %v5196_v46  ;;  %v1443_v1 = vsel %vm1209_vm3, %v1432_v38, 0.0  ;;  %v2606_v30 = vpop.permute.xlu2 %2605 }
 0x3b9   : >> { %v1444_v60 = vadd.f32 %v1443_v1, %v1442_v7  ;;  %v2628_v15 = vsel %vm1147_vm2, %v2606_v30, 0  ;;  %v1803_v5 = vpop.permute.xlu1 %1802  ;;  %v5307_v7 = vpop.f32.mrf.mxu1 }
 0x3ba   : >> { %v1794_v17 = vpack.c.bf16 %v5271_v58, %v5268_v62  ;;  %v2608_v35 = vpop.permute.xlu0 %2607  ;;  %6757 = vst [vmem:[#allocation15_spill] sm:$0xff] %v5307_v7 }
 0x3bb   : >> { %v2631_v23 = vsel %vm1147_vm2, %v2608_v35, 0  ;;  %3940 = vmatmul.msk.bf16.gmra.mxu2 %vm1147_vm2, %v2114_v4 }
 0x3bc   : >> { %v1811_v51 = vsel %vm1209_vm3, %v1794_v17, 0 }
 0x3bd   : >> { %1890 = vmatpush.bf16.xpose.msrb.mxu0 %v1811_v51  ;;  %v1420_v61 = vpop.f32.mrf.mxu2 }
 0x3be   : >> { %v1433_v14 = vmul.f32 %v1420_v61, %v1420_v61 }
 0x3c0   : >> { %v1445_v46 = vsel %vm1209_vm3, %v1433_v14, 0.0  ;;  %v2600_v16 = vpop.permute.xlu2 %2599 }
 0x3c1   : >> { %v1446_v39 = vadd.f32 %v1445_v46, %v1444_v60 }
 0x3c2   : >> { %v2118_v52 = vpop.permute.xlu0 %2117 }
 0x3c4   : >> { %3934 = vmatmul.msk.bf16.vlgmr.msrb.gmra.mxu0 %vm1209_vm3, %v1794_v17 }
 0x3c5   : >> { %2637 = vmatpush.bf16.xpose.msra.mxu0 %v2631_v23  ;;  %v1423_v31 = vpop.f32.mrf.mxu2 }
 0x3c6   : >> { %v1434_v40 = vmul.f32 %v1423_v31, %v1423_v31 }
 0x3c8   : >> { %v1447_v0 = vsel %vm1209_vm3, %v1434_v40, 0.0  ;;  %v1801_v10 = vpop.permute.xlu2 %1800 }
 0x3c9   : >> { %v5283_v3 = vadd.f32 %v1447_v0, %v1446_v39 }
 0x3ca   : >> { %v2604_v47 = vpop.permute.xlu0 %2603 }
 0x3cb   : >> { %v2625_v48 = vsel %vm1147_vm2, %v2604_v47, 0  ;;  %3941 = vmatmul.msk.bf16.gmra.mxu2 %vm1147_vm2, %v2116_v2 }
 0x3cd   : >> { %2638 = vmatpush.bf16.xpose.msra.mxu0 %v2628_v15  ;;  %v5305_v36 = vpop.f32.mrf.mxu2 }
 0x3d2   : >> { %v2602_v13 = vpop.permute.xlu0 %2601 }
 0x3d3   : >> { %v2622_v18 = vsel %vm1147_vm2, %v2602_v13, 0 }
 0x3d4   : >> { %3935 = vmatmul.msk.bf16.gmra.mxu0 %vm1209_vm3, %v1795_v37 }
 0x3d5   : >> { %2639 = vmatpush.bf16.xpose.msra.mxu0 %v2625_v48 }
 0x3da   : >> { %v2596_v21 = vpop.permute.xlu0 %2595 }
 0x3db   : >> { %3942 = vmatmul.msk.bf16.gmra.mxu2 %vm1147_vm2, %v2118_v52 }
 0x3dd   : >> { %2640 = vmatpush.bf16.xpose.msra.mxu0 %v2622_v18 }
 0x3e2   : >> { %v1805_v26 = vpop.permute.xlu0 %1804 }
 0x3e3   : >> { %1826 = vmatpush.bf16.msrb.mxu1 %v1805_v26 }
 0x3e4   : >> { %3936 = vmatmul.msk.bf16.gmra.mxu0 %vm1209_vm3, %v5252_v50 }
 0x3e7   : >> { %1827 = vmatpush.bf16.msrb.mxu1 %v1803_v5 }
 0x3ea   : >> { %v1799_v29 = vpop.permute.xlu0 %1798 }
 0x3eb   : >> { %1828 = vmatpush.bf16.msrb.mxu1 %v1801_v10 }
 0x3ef   : >> { %1829 = vmatpush.bf16.msrb.mxu1 %v1799_v29 }
 0x3f2   : >> { %3930 = vmatmul.msk.bf16.vlgmr.msrb.gmra.mxu1 %vm1209_vm3, %v1794_v17 }
 0x3f4   : >> { %3937 = vmatmul.msk.bf16.gmra.mxu0 %vm1209_vm3, %v5239_v6 }
 0x402   : >> { %3931 = vmatmul.msk.bf16.gmra.mxu1 %vm1209_vm3, %v1795_v37 }
 0x404   : >> { %3952 = vmatmul.msk.bf16.vlgmr.msra.gmra.mxu0 %vm1147_vm2, %v2594_v45 }
 0x412   : >> { %3932 = vmatmul.msk.bf16.gmra.mxu1 %vm1209_vm3, %v5252_v50  ;;  %v5314_v50 = vpop.f32.mrf.mxu1 }
 0x413   : >> { %6758 = vst [vmem:[#allocation16_spill] sm:$0xff] %v5314_v50 }
 0x414   : >> { %3953 = vmatmul.msk.bf16.gmra.mxu0 %vm1147_vm2, %v2596_v21 }
 0x41a   : >> { %v5320_v55 = vpop.f32.mrf.mxu1 }
 0x41b   : >> { %6759 = vst [vmem:[#allocation17_spill] sm:$0xff] %v5320_v55  ;;  %v1371_v55 = vmul.f32 %v5112_v20, %v5112_v20 }
 0x422   : >> { %3933 = vmatmul.msk.bf16.gmra.mxu1 %vm1209_vm3, %v5239_v6  ;;  %v5328_v14 = vpop.f32.mrf.mxu1 }
 0x423   : >> { %6760 = vst [vmem:[#allocation18_spill] sm:$0xff] %v5328_v14  ;;  %v1387_v14 = vsel %vm1209_vm3, %v1371_v55, 0.0  ;;  %v1855_v55 = vmul.f32 %v5247_v12, %v5247_v12 }
 0x424   : >> { %3954 = vmatmul.msk.bf16.gmra.mxu0 %vm1147_vm2, %v2598_v22 }
 0x42a   : >> { %v5338_v48 = vpop.f32.mrf.mxu1 }
 0x42b   : >> { %6761 = vst [vmem:[#allocation19_spill] sm:$0xff] %v5338_v48 }
 0x42e   : >> { %v2160_v4 = vpop.f32.mrf.mxu2 }
 0x42f   : >> { %v5309_v37 = vmul.f32 0.25, %v2160_v4 }
 0x431   : >> { %v2188_v43 = vsel %vm1209_vm3, %v5309_v37, -inf }
 0x432   : >> { %2189 = vmax.xlane.f32.xlu2 %v2188_v43  ;;  %v5346_v29 = vpop.f32.mrf.mxu1 }
 0x433   : >> { %6762 = vst [vmem:[#allocation20_spill] sm:$0xff] %v5346_v29 }
 0x434   : >> { %3955 = vmatmul.msk.bf16.gmra.mxu0 %vm1147_vm2, %v2600_v16 }
 0x436   : >> { %v2162_v56 = vpop.f32.mrf.mxu2 }
 0x437   : >> { %v5316_v63 = vmul.f32 0.25, %v2162_v56 }
 0x439   : >> { %v2191_v6 = vsel %vm1209_vm3, %v5316_v63, -inf }
 0x43a   : >> { %2192 = vmax.xlane.f32.xlu2 %v2191_v6 }
 0x43e   : >> { %v2165_v38 = vpop.f32.mrf.mxu2 }
 0x43f   : >> { %v5322_v1 = vmul.f32 0.25, %v2165_v38 }
 0x441   : >> { %v1892_v60 = vpop.f32.mrf.mxu0  ;;  %v2194_v17 = vsel %vm1209_vm3, %v5322_v1, -inf }
 0x442   : >> { %2195 = vmax.xlane.f32.xlu1 %v2194_v17  ;;  %v1912_v23 = vmul.f32 %v1892_v60, %v1892_v60 }
 0x444   : >> { %v1920_v30 = vsel %vm1209_vm3, %v1912_v23, 0.0  ;;  %v5353_v23 = vpop.f32.mrf.mxu1 }
 0x445   : >> { %6763 = vst [vmem:[#allocation21_spill] sm:$0xff] %v5353_v23 }
 0x446   : >> { %v2167_v35 = vpop.f32.mrf.mxu2 }
 0x447   : >> { %v5326_v51 = vmul.f32 0.25, %v2167_v35 }
 0x449   : >> { %v1894_v61 = vpop.f32.mrf.mxu0  ;;  %v2197_v39 = vsel %vm1209_vm3, %v5326_v51, -inf }
 0x44a   : >> { %v1913_v46 = vmul.f32 %v1894_v61, %v1894_v61  ;;  %2198 = vmax.xlane.f32.xlu2 %v2197_v39 }
 0x44c   : >> { %v1921_v52 = vsel %vm1209_vm3, %v1913_v46, 0.0 }
 0x44d   : >> { %v1922_v15 = vadd.f32 %v1921_v52, %v1920_v30 }
 0x44e   : >> { %v2170_v31 = vpop.f32.mrf.mxu2 }
 0x44f   : >> { %v5334_v40 = vmul.f32 0.25, %v2170_v31 }
 0x451   : >> { %v1897_v0 = vpop.f32.mrf.mxu0  ;;  %v2200_v47 = vsel %vm1209_vm3, %v5334_v40, -inf }
 0x452   : >> { %v1914_v2 = vmul.f32 %v1897_v0, %v1897_v0  ;;  %2201 = vmax.xlane.f32.xlu2 %v2200_v47 }
 0x454   : >> { %v1923_v45 = vsel %vm1209_vm3, %v1914_v2, 0.0 }
 0x455   : >> { %v1924_v13 = vadd.f32 %v1923_v45, %v1922_v15 }
 0x456   : >> { %v2172_v18 = vpop.f32.mrf.mxu2 }
 0x457   : >> { %v5341_v21 = vmul.f32 0.25, %v2172_v18 }
 0x459   : >> { %v1899_v22 = vpop.f32.mrf.mxu0  ;;  %v2203_v26 = vsel %vm1209_vm3, %v5341_v21, -inf }
 0x45a   : >> { %v1915_v16 = vmul.f32 %v1899_v22, %v1899_v22  ;;  %2204 = vmax.xlane.f32.xlu0 %v2203_v26 }
 0x45c   : >> { %v1925_v5 = vsel %vm1209_vm3, %v1915_v16, 0.0 }
 0x45d   : >> { %v1926_v10 = vadd.f32 %v1925_v5, %v1924_v13 }
 0x45e   : >> { %v2175_v4 = vpop.f32.mrf.mxu2 }
 0x45f   : >> { %v5348_v43 = vmul.f32 0.25, %v2175_v4 }
 0x461   : >> { %v1902_v56 = vpop.f32.mrf.mxu0  ;;  %v2206_v38 = vsel %vm1209_vm3, %v5348_v43, -inf }
 0x462   : >> { %v1916_v6 = vmul.f32 %v1902_v56, %v1902_v56  ;;  %2207 = vmax.xlane.f32.xlu0 %v2206_v38 }
 0x464   : >> { %v1927_v60 = vsel %vm1209_vm3, %v1916_v6, 0.0 }
 0x465   : >> { %v1928_v17 = vadd.f32 %v1927_v60, %v1926_v10 }
 0x466   : >> { %v2177_v35 = vpop.f32.mrf.mxu2 }
 0x467   : >> { %v5355_v61 = vmul.f32 0.25, %v2177_v35 }
 0x469   : >> { %v1904_v46 = vpop.f32.mrf.mxu0  ;;  %v2209_v30 = vsel %vm1209_vm3, %v5355_v61, -inf }
 0x46a   : >> { %v1917_v39 = vmul.f32 %v1904_v46, %v1904_v46  ;;  %2210 = vmax.xlane.f32.xlu1 %v2209_v30 }
 0x46c   : >> { %v1929_v52 = vsel %vm1209_vm3, %v1917_v39, 0.0 }
 0x46d   : >> { %v1930_v15 = vadd.f32 %v1929_v52, %v1928_v17 }
 0x46f   : >> { %v5360_v31 = vpop.f32.mrf.mxu1 }
 0x470   : >> { %6764 = vst [vmem:[#allocation22_spill] sm:$0xff] %v5360_v31 }
 0x471   : >> { %v1907_v0 = vpop.f32.mrf.mxu0 }
 0x472   : >> { %v1918_v2 = vmul.f32 %v1907_v0, %v1907_v0 }
 0x474   : >> { %v1931_v47 = vsel %vm1209_vm3, %v1918_v2, 0.0 }
 0x475   : >> { %v1932_v45 = vadd.f32 %v1931_v47, %v1930_v15 }
 0x477   : >> { %v5363_v13 = vpop.f32.mrf.mxu1 }
 0x478   : >> { %6765 = vst [vmem:[#allocation23_spill] sm:$0xff] %v5363_v13 }
 0x479   : >> { %v1909_v22 = vpop.f32.mrf.mxu0 }
 0x47a   : >> { %v1919_v16 = vmul.f32 %v1909_v22, %v1909_v22 }
 0x47c   : >> { %v1933_v26 = vsel %vm1209_vm3, %v1919_v16, 0.0 }
 0x47d   : >> { %v5368_v5 = vadd.f32 %v1933_v26, %v1932_v45 }
 0x47f   : >> { %v5370_v10 = vpop.f32.mrf.mxu1 }
 0x480   : >> { %6766 = vst [vmem:[#allocation24_spill] sm:$0xff] %v5370_v10 }
 0x481   : >> { %v2642_v4 = vpop.f32.mrf.mxu0 }
 0x487   : >> { %v5372_v56 = vpop.f32.mrf.mxu1 }
 0x488   : >> { %6767 = vst [vmem:[#allocation25_spill] sm:$0xff] %v5372_v56 }
 0x489   : >> { %v2644_v38 = vpop.f32.mrf.mxu0 }
 0x48f   : >> { %v5376_v60 = vpop.f32.mrf.mxu1 }
 0x490   : >> { %6768 = vst [vmem:[#allocation26_spill] sm:$0xff] %v5376_v60 }
 0x491   : >> { %v2647_v17 = vpop.f32.mrf.mxu0 }
 0x492   : >> { %v5378_v35 = vmul.f32 0.25, %v2647_v17 }
 0x494   : >> { %v2676_v46 = vsel %vm1209_vm3, %v5378_v35, -inf }
 0x495   : >> { %2677 = vmax.xlane.f32.xlu0 %v2676_v46 }
 0x497   : >> { %v5382_v39 = vpop.f32.mrf.mxu1 }
 0x498   : >> { %6769 = vst [vmem:[#allocation27_spill] sm:$0xff] %v5382_v39 }
 0x499   : >> { %v2649_v52 = vpop.f32.mrf.mxu0 }
 0x49a   : >> { %v5386_v15 = vmul.f32 0.25, %v2649_v52 }
 0x49c   : >> { %v2679_v0 = vsel %vm1209_vm3, %v5386_v15, -inf }
 0x49d   : >> { %2680 = vmax.xlane.f32.xlu1 %v2679_v0 }
 0x4a1   : >> { %v2652_v2 = vpop.f32.mrf.mxu0 }
 0x4a2   : >> { %v5390_v47 = vmul.f32 0.25, %v2652_v2 }
 0x4a4   : >> { %v2682_v45 = vsel %vm1209_vm3, %v5390_v47, -inf }
 0x4a5   : >> { %2683 = vmax.xlane.f32.xlu1 %v2682_v45  ;;  %v2190_v22 = vpop.xlane.xlu2 %2189 }
 0x4a6   : >> { %v2212_v16 = vsub.f32 %v5309_v37, %v2190_v22 }
 0x4a8   : >> { %v2220_v26 = vmul.f32 1.442695, %v2212_v16 }
 0x4a9   : >> { %v2654_v6 = vpop.f32.mrf.mxu0 }
 0x4aa   : >> { %4334 = vpow2.f32 %v2220_v26  ;;  %v5400_v2 = vmul.f32 0.25, %v2654_v6 }
 0x4ac   : >> { %v2685_v37 = vsel %vm1209_vm3, %v5400_v2, -inf }
 0x4ad   : >> { %v2193_v17 = vpop.xlane.xlu2 %2192 }
 0x4ae   : >> { %v2213_v46 = vsub.f32 %v5316_v63, %v2193_v17 }
 0x4b0   : >> { %v5396_v52 = vpop.eup %4334  ;;  %v2222_v30 = vmul.f32 1.442695, %v2213_v46 }
 0x4b1   : >> { %v2236_v0 = vsel %vm1209_vm3, %v5396_v52, 0.0 }
 0x4b2   : >> { %4336 = vpow2.f32 %v2222_v30  ;;  %2237 = vadd.xlane.f32.xlu2 %v2236_v0 }
 0x4b5   : >> { %v2196_v45 = vpop.xlane.xlu1 %2195 }
 0x4b6   : >> { %v2214_v18 = vsub.f32 %v5322_v1, %v2196_v45 }
 0x4b8   : >> { %v5405_v22 = vpop.eup %4336  ;;  %v2224_v63 = vmul.f32 1.442695, %v2214_v18 }
 0x4b9   : >> { %v2239_v16 = vsel %vm1209_vm3, %v5405_v22, 0.0 }
 0x4ba   : >> { %4338 = vpow2.f32 %v2224_v63  ;;  %2240 = vadd.xlane.f32.xlu0 %v2239_v16  ;;  %2686 = vmax.xlane.f32.xlu2 %v2685_v37 }
 0x4bd   : >> { %v2199_v26 = vpop.xlane.xlu2 %2198 }
 0x4be   : >> { %v2215_v30 = vsub.f32 %v5326_v51, %v2199_v26  ;;  %v5419_v51 = vmul.f32 0.25, %v2642_v4  ;;  %v2657_v4 = vpop.f32.mrf.mxu0 }
 0x4c0   : >> { %v5410_v6 = vpop.eup %4338  ;;  %v2226_v17 = vmul.f32 1.442695, %v2215_v30  ;;  %v2670_v30 = vsel %vm1209_vm3, %v5419_v51, -inf }
 0x4c1   : >> { %v2242_v1 = vsel %vm1209_vm3, %v5410_v6, 0.0 }
 0x4c2   : >> { %4340 = vpow2.f32 %v2226_v17  ;;  %2243 = vadd.xlane.f32.xlu0 %v2242_v1  ;;  %v5428_v1 = vmul.f32 0.25, %v2644_v38 }
 0x4c5   : >> { %v2202_v46 = vpop.xlane.xlu2 %2201 }
 0x4c6   : >> { %v2216_v18 = vsub.f32 %v5334_v40, %v2202_v46  ;;  %v2673_v46 = vsel %vm1209_vm3, %v5428_v1, -inf }
 0x4c8   : >> { %v5415_v0 = vpop.eup %4340  ;;  %v2228_v45 = vmul.f32 1.442695, %v2216_v18 }
 0x4c9   : >> { %v2245_v37 = vsel %vm1209_vm3, %v5415_v0, 0.0 }
 0x4ca   : >> { %4342 = vpow2.f32 %v2228_v45  ;;  %2246 = vadd.xlane.f32.xlu1 %v2245_v37 }
 0x4cd   : >> { %v2205_v63 = vpop.xlane.xlu0 %2204 }
 0x4ce   : >> { %v2217_v26 = vsub.f32 %v5341_v21, %v2205_v63  ;;  %v2659_v63 = vpop.f32.mrf.mxu0 }
 0x4d0   : >> { %v5421_v16 = vpop.eup %4342  ;;  %v2230_v17 = vmul.f32 1.442695, %v2217_v26  ;;  %v5439_v26 = vmul.f32 0.25, %v2659_v63  ;;  %v1370_v63 = vmul.f32 %v5138_v49, %v5138_v49 }
 0x4d1   : >> { %v2248_v40 = vsel %vm1209_vm3, %v5421_v16, 0.0 }
 0x4d2   : >> { %2671 = vmax.xlane.f32.xlu1 %v2670_v30  ;;  %2249 = vadd.xlane.f32.xlu2 %v2248_v40  ;;  %4344 = vpow2.f32 %v2230_v17 }
 0x4d5   : >> { %v2208_v21 = vpop.xlane.xlu0 %2207 }
 0x4d6   : >> { %2284 = vrot.lane.b32.xlu0 %v5087_v42, %s4574_s0  ;;  %v2218_v45 = vsub.f32 %v5348_v43, %v2208_v21  ;;  %v2691_v42 = vsel %vm1209_vm3, %v5439_v26, -inf  ;;  %v5450_v21 = vmul.f32 0.25, %v2657_v4 }
 0x4d8   : >> { %v5434_v18 = vpop.eup %4344  ;;  %v2232_v38 = vmul.f32 1.442695, %v2218_v45  ;;  %v2688_v45 = vsel %vm1209_vm3, %v5450_v21, -inf }
 0x4d9   : >> { %v2251_v37 = vsel %vm1209_vm3, %v5434_v18, 0.0 }
 0x4da   : >> { %2674 = vmax.xlane.f32.xlu1 %v2673_v46  ;;  %4346 = vpow2.f32 %v2232_v38  ;;  %v1384_v38 = vsel %vm1209_vm3, %v1370_v63, 0.0 }
 0x4dd   : >> { %v2211_v40 = vpop.xlane.xlu1 %2210 }
 0x4de   : >> { %v2219_v17 = vsub.f32 %v5355_v61, %v2211_v40  ;;  %v1367_v61 = vmul.f32 %v5123_v25, %v5123_v25  ;;  %v1374_v40 = vmul.f32 %v5099_v8, %v5099_v8 }
 0x4e0   : >> { %v5445_v30 = vpop.eup %4346  ;;  %v2234_v46 = vmul.f32 1.442695, %v2219_v17  ;;  %v1375_v4 = vsel %vm1209_vm3, %v1367_v61, 0.0 }
 0x4e1   : >> { %v2254_v43 = vsel %vm1209_vm3, %v5445_v30, 0.0 }
 0x4e2   : >> { %2252 = vadd.xlane.f32.xlu1 %v2251_v37  ;;  %4348 = vpow2.f32 %v2234_v46  ;;  %v1396_v46 = vsel %vm1209_vm3, %v1374_v40, 0.0 }
 0x4e8   : >> { %v5454_v37 = vpop.eup %4348 }
 0x4ea   : >> { %2286 = vrot.lane.b32.xlu2 %v5083_v41, %s4574_s0  ;;  %2692 = vmax.xlane.f32.xlu1 %v2691_v42  ;;  %v2257_v41 = vsel %vm1209_vm3, %v5454_v37, 0.0 }
 0x4f2   : >> { %2255 = vadd.xlane.f32.xlu1 %v2254_v43  ;;  %v1372_v43 = vmul.f32 %v5117_v24, %v5117_v24 }
 0x500   : >> { %2689 = vmax.xlane.f32.xlu0 %v2688_v45 }
 0x508   : >> { %2258 = vadd.xlane.f32.xlu0 %v2257_v41 }
 0x50b   : >> { %2280 = vrot.lane.b32.xlu1 %v5095_v57, %s4574_s0  ;;  %v1390_v57 = vsel %vm1209_vm3, %v1372_v43, 0.0 }
 0x510   : >> { %v2681_v42 = vpop.xlane.xlu1 %2680 }
 0x511   : >> { %v2697_v61 = vsub.f32 %v5386_v15, %v2681_v42  ;;  %v1368_v42 = vmul.f32 %v5120_v28, %v5120_v28 }
 0x513   : >> { %1376 = vadd.xlane.f32.xlu2 %v1375_v4  ;;  %v2708_v43 = vmul.f32 1.442695, %v2697_v61 }
 0x518   : >> { %v2684_v17 = vpop.xlane.xlu1 %2683 }
 0x519   : >> { %v2698_v45 = vsub.f32 %v5390_v47, %v2684_v17 }
 0x51b   : >> { %1385 = vadd.xlane.f32.xlu2 %v1384_v38  ;;  %v2710_v41 = vmul.f32 1.442695, %v2698_v45  ;;  %v2678_v38 = vpop.xlane.xlu0 %2677  ;;  %v1435_v45 = vmul.f32 %v5305_v36, %v5305_v36 }
 0x51c   : >> { %2282 = vrot.lane.b32.xlu0 %v5091_v44, %s4574_s0  ;;  %v1369_v44 = vmul.f32 %v5135_v33, %v5135_v33  ;;  %s4576_s0 = smov 0.0  }
 0x51d   : >> { %4350 = vpow2.f32 %v2710_v41 }
 0x51e   : >> { %v1381_v63 = vsel %vm1209_vm3, %v1369_v44, 0.0  ;;  %4352 = vpow2.f32 %v2708_v43  ;;  %v1449_v43 = vsel %vm1209_vm3, %v1435_v45, 0.0  ;;  %v1373_v45 = vmul.f32 %v5104_v11, %v5104_v11 }
 0x51f   : >> { %v1450_v36 = vadd.f32 %v1449_v43, %v5283_v3 }
 0x520   : >> { %v1393_v3 = vsel %vm1209_vm3, %v1373_v45, 0.0 }
 0x523   : >> { %1391 = vadd.xlane.f32.xlu2 %v1390_v57  ;;  %v5481_v57 = vpop.eup %4350 }
 0x524   : >> { %v2730_v47 = vsel %vm1209_vm3, %v5481_v57, 0.0  ;;  %v5489_v15 = vpop.eup %4352 }
 0x525   : >> { %v5478_v4 = vpop.xlane.xlu2 %2237  ;;  %v2727_v41 = vsel %vm1209_vm3, %v5489_v15, 0.0 }
 0x52b   : >> { %1397 = vadd.xlane.f32.xlu2 %v1396_v46 }
 0x52d   : >> { %v2687_v40 = vpop.xlane.xlu2 %2686  ;;  %v5487_v46 = vpop.xlane.xlu0 %2240 }
 0x535   : >> { %1382 = vadd.xlane.f32.xlu1 %v1381_v63  ;;  %v1378_v63 = vsel %vm1209_vm3, %v1368_v42, 0.0  ;;  %v1852_v42 = vmul.f32 %v5271_v58, %v5271_v58 }
 0x53d   : >> { %v5485_v17 = vpop.xlane.xlu1 %2246  ;;  %2731 = vadd.xlane.f32.xlu1 %v2730_v47  ;;  %v5503_v47 = vpop.xlane.xlu0 %2243 }
 0x545   : >> { %v5497_v44 = vpop.xlane.xlu1 %2671  ;;  %v5499_v61 = vpop.xlane.xlu2 %2249  ;;  %2728 = vadd.xlane.f32.xlu1 %v2727_v41 }
 0x546   : >> { %1379 = vadd.xlane.f32.xlu0 %v1378_v63  ;;  %v1862_v63 = vsel %vm1209_vm3, %v1852_v42, 0.0  ;;  %v1858_v42 = vmul.f32 %v5234_v59, %v5234_v59 }
 0x548   : >> { %v2285_v41 = vpop.permute.xlu0 %2284  ;;  %v1880_v45 = vsel %vm1209_vm3, %v1858_v42, 0.0 }
 0x54d   : >> { %v2675_v50 = vpop.xlane.xlu1 %2674  ;;  %v2287_v48 = vpop.permute.xlu2 %2286  ;;  %1451 = vadd.xlane.f32.xlu1 %v1450_v36  ;;  %v2696_v36 = vsub.f32 %v5378_v35, %v2678_v38 }
 0x54e   : >> { %2308 = vmatpush.bf16.msrb.mxu3 %v2287_v48  ;;  %1388 = vadd.xlane.f32.xlu0 %v1387_v14  ;;  %v1871_v14 = vsel %vm1209_vm3, %v1855_v55, 0.0 }
 0x552   : >> { %2309 = vmatpush.bf16.msrb.mxu3 %v2285_v41  ;;  %v2706_v41 = vmul.f32 1.442695, %v2696_v36 }
 0x555   : >> { %v2253_v23 = vpop.xlane.xlu1 %2252  ;;  %1863 = vadd.xlane.f32.xlu1 %v1862_v63 }
 0x556   : >> { %1394 = vadd.xlane.f32.xlu0 %v1393_v3  ;;  %v2695_v3 = vsub.f32 %v5428_v1, %v2675_v50 }
 0x55d   : >> { %v2693_v48 = vpop.xlane.xlu1 %2692  ;;  %1872 = vadd.xlane.f32.xlu1 %v1871_v14 }
 0x55e   : >> { %v2701_v43 = vsub.f32 %v5439_v26, %v2693_v48  ;;  %v2704_v26 = vmul.f32 1.442695, %v2695_v3  ;;  %v2699_v48 = vsub.f32 %v5400_v2, %v2687_v40  ;;  %v2694_v2 = vsub.f32 %v5419_v51, %v5497_v44 }
 0x560   : >> { %v2716_v29 = vmul.f32 1.442695, %v2701_v43  ;;  %v2712_v36 = vmul.f32 1.442695, %v2699_v48 }
 0x562   : >> { %4354 = vpow2.f32 %v2716_v29 }
 0x563   : >> { %4356 = vpow2.f32 %v2706_v41 }
 0x564   : >> { %4358 = vpow2.f32 %v2704_v26 }
 0x565   : >> { %1881 = vadd.xlane.f32.xlu1 %v1880_v45  ;;  %v2256_v1 = vpop.xlane.xlu1 %2255  ;;  %v1851_v45 = vmul.f32 %v5268_v62, %v5268_v62 }
 0x568   : >> { %v5523_v63 = vpop.eup %4354 }
 0x569   : >> { %v2739_v55 = vsel %vm1209_vm3, %v5523_v63, 0.0  ;;  %v5528_v35 = vpop.eup %4356 }
 0x56a   : >> { %2740 = vadd.xlane.f32.xlu2 %v2739_v55  ;;  %v2724_v29 = vsel %vm1209_vm3, %v5528_v35, 0.0  ;;  %v5534_v43 = vpop.eup %4358  ;;  %v1859_v55 = vsel %vm1209_vm3, %v1851_v45, 0.0 }
 0x56b   : >> { %v2721_v42 = vsel %vm1209_vm3, %v5534_v43, 0.0 }
 0x572   : >> { %2725 = vadd.xlane.f32.xlu2 %v2724_v29  ;;  %v2702_v29 = vmul.f32 1.442695, %v2694_v2 }
 0x573   : >> { %v2690_v38 = vpop.xlane.xlu0 %2689 }
 0x574   : >> { %v2700_v14 = vsub.f32 %v5450_v21, %v2690_v38 }
 0x576   : >> { %v2714_v50 = vmul.f32 1.442695, %v2700_v14 }
 0x578   : >> { %4360 = vpow2.f32 %v2714_v50 }
 0x579   : >> { %4362 = vrcp.f32 %v2256_v1 }
 0x57a   : >> { %2722 = vadd.xlane.f32.xlu2 %v2721_v42 }
 0x57b   : >> { %v2259_v41 = vpop.xlane.xlu0 %2258 }
 0x57c   : >> { %4364 = vrcp.f32 %v2259_v41 }
 0x57d   : >> { %4366 = vpow2.f32 %v2712_v36 }
 0x57e   : >> { %v5540_v21 = vpop.eup %4360  ;;  %4368 = vrcp.f32 %v2253_v23 }
 0x57f   : >> { %v2736_v40 = vsel %vm1209_vm3, %v5540_v21, 0.0  ;;  %v4363_v3 = vpop.eup %4362  ;;  %4370 = vrcp.f32 %v5499_v61  ;;  %v1854_v61 = vmul.f32 %v5255_v32, %v5255_v32 }
 0x580   : >> { %2737 = vadd.xlane.f32.xlu0 %v2736_v40  ;;  %v5551_v14 = vmul.f32 %v4363_v3, %v5445_v30  ;;  %4372 = vrcp.f32 %v5485_v17 }
 0x581   : >> { %4374 = vpow2.f32 %v2702_v29 }
 0x582   : >> { %v4365_v26 = vpop.eup %4364  ;;  %1860 = vadd.xlane.f32.xlu2 %v1859_v55  ;;  %4376 = vrcp.f32 %v5487_v46  ;;  %v1868_v46 = vsel %vm1209_vm3, %v1854_v61, 0.0  ;;  %v2281_v55 = vpop.permute.xlu1 %2280 }
 0x583   : >> { %v5548_v38 = vpop.eup %4366  ;;  %v5554_v51 = vmul.f32 %v4365_v26, %v5454_v37  ;;  %4378 = vrcp.f32 %v5503_v47  ;;  %v1857_v47 = vmul.f32 %v5231_v19, %v5231_v19 }
 0x584   : >> { %v4369_v23 = vpop.eup %4368  ;;  %v2733_v37 = vsel %vm1209_vm3, %v5548_v38, 0.0  ;;  %4380 = vrcp.f32 %v5478_v4 }
 0x585   : >> { %6770 = vst [vmem:[#allocation28_spill] sm:$0xff] %v5554_v51  ;;  %v5559_v44 = vpack.c.bf16 %v5554_v51, %v5551_v14  ;;  %v4371_v48 = vpop.eup %4370  ;;  %v5565_v30 = vmul.f32 %v4369_v23, %v5434_v18  ;;  %v1877_v29 = vsel %vm1209_vm3, %v1857_v47, 0.0 }
 0x586   : >> { %v5574_v50 = vmul.f32 %v4371_v48, %v5421_v16  ;;  %v4373_v18 = vpop.eup %4372 }
 0x587   : >> { %v2302_v17 = vsel %vm1209_vm3, %v5559_v44, 0  ;;  %v5581_v36 = vpop.eup %4374  ;;  %v5586_v16 = vmul.f32 %v4373_v18, %v5415_v0 }
 0x588   : >> { %2734 = vadd.xlane.f32.xlu0 %v2733_v37  ;;  %2369 = vmatpush.bf16.xpose.msra.mxu1 %v2302_v17  ;;  %6771 = vst [vmem:[#allocation29_spill] sm:$0xff] %v5574_v50  ;;  %v5579_v1 = vpack.c.bf16 %v5565_v30, %v5574_v50  ;;  %v4377_v42 = vpop.eup %4376  ;;  %v2718_v2 = vsel %vm1209_vm3, %v5581_v36, 0.0  ;;  %v2337_v17 = vmul.f32 %v5574_v50, %v5574_v50 }
 0x589   : >> { %v4379_v41 = vpop.eup %4378  ;;  %v5593_v3 = vmul.f32 %v4377_v42, %v5405_v22  ;;  %v2340_v42 = vmul.f32 %v5554_v51, %v5554_v51 }
 0x58a   : >> { %1869 = vadd.xlane.f32.xlu2 %v1868_v46  ;;  %v4381_v4 = vpop.eup %4380  ;;  %v2299_v40 = vsel %vm1209_vm3, %v5579_v1, 0  ;;  %v5596_v26 = vmul.f32 %v4379_v41, %v5410_v6  ;;  %v5609_v6 = vpop.xlane.xlu2 %1376  ;;  %v2353_v18 = vsel %vm1209_vm3, %v2337_v17, 0.0 }
 0x58b   : >> { %6772 = vst [vmem:[#allocation30_spill] sm:$0xff] %v5593_v3  ;;  %v5600_v0 = vmul.f32 %v4381_v4, %v5396_v52  ;;  %v2334_v52 = vmul.f32 %v5593_v3, %v5593_v3  ;;  %4382 = vrsqrt.f32 %v5609_v6  ;;  %vm1511_vm6 = vweird.f32 %v5609_v6 }
 0x58c   : >> { %v2277_v23 = vpack.c.bf16 %v5586_v16, %v5596_v26 }
 0x58d   : >> { %v2276_v22 = vpack.c.bf16 %v5593_v3, %v5600_v0  ;;  %v2344_v37 = vsel %vm1209_vm3, %v2334_v52, 0.0 }
 0x58e   : >> { %v2283_v45 = vpop.permute.xlu0 %2282  ;;  %v2296_v61 = vsel %vm1209_vm3, %v2277_v23, 0 }
 0x58f   : >> { %2310 = vmatpush.bf16.msrb.mxu3 %v2283_v45  ;;  %v2293_v48 = vsel %vm1209_vm3, %v2276_v22, 0 }
 0x590   : >> { %2719 = vadd.xlane.f32.xlu0 %v2718_v2  ;;  %2370 = vmatpush.bf16.xpose.msra.mxu1 %v2299_v40  ;;  %v2362_v2 = vsel %vm1209_vm3, %v2340_v42, 0.0 }
 0x591   : >> { %v5627_v47 = vpop.eup %4382 }
 0x592   : >> { %1878 = vadd.xlane.f32.xlu2 %v1877_v29  ;;  %v5617_v46 = vpop.xlane.xlu2 %1385  ;;  %v1506_v4 = vmul.f32 %v5627_v47, %v5609_v6  ;;  %vm1512_vm5 = vweird.f32 %v5627_v47 }
 0x593   : >> { %2311 = vmatpush.bf16.msrb.mxu3 %v2281_v55  ;;  %4384 = vrsqrt.f32 %v5617_v46  ;;  %vm5681_vm7 = vmor %vm1511_vm6, %vm1512_vm5  ;;  %vm1541_vm15 = vweird.f32 %v5617_v46 }
 0x594   : >> { %v1507_v29 = vmul.f32 %v5627_v47, %v1506_v4 }
 0x596   : >> { %3943 = vmatmul.msk.bf16.vlgmr.msrb.gmra.mxu3 %vm1209_vm3, %v2276_v22 }
 0x598   : >> { %2371 = vmatpush.bf16.xpose.msra.mxu1 %v2296_v61 }
 0x599   : >> { %v5638_v40 = vpop.eup %4384 }
 0x59a   : >> { %1935 = vadd.xlane.f32.xlu2 %v5368_v5  ;;  %v5631_v41 = vpop.xlane.xlu2 %1391  ;;  %vm1542_vm8 = vweird.f32 %v5638_v40 }
 0x59b   : >> { %vm1543_vm5 = vmor %vm1541_vm15, %vm1542_vm8  ;;  %vm1561_vm8 = vweird.f32 %v5631_v41 }
 0x5a0   : >> { %2372 = vmatpush.bf16.xpose.msra.mxu1 %v2293_v48  ;;  %v1508_v48 = vmul.f32 0.5, %v1507_v29 }
 0x5a2   : >> { %2345 = vadd.xlane.f32.xlu2 %v2344_v37  ;;  %v5653_v17 = vpop.xlane.xlu2 %1397  ;;  %v1509_v7 = vsub.f32 1.5, %v1508_v48 }
 0x5a6   : >> { %3944 = vmatmul.msk.bf16.gmra.mxu3 %vm1209_vm3, %v2277_v23 }
 0x5a7   : >> { %3947 = vmatmul.msk.bf16.vlgmr.msra.gmra.mxu1 %vm1209_vm3, %v2276_v22  ;;  %v1536_v22 = vmul.f32 %v5638_v40, %v5617_v46 }
 0x5a8   : >> { %v5622_v5 = vpop.xlane.xlu1 %1382 }
 0x5a9   : >> { %4386 = vrsqrt.f32 %v5622_v5  ;;  %v1537_v42 = vmul.f32 %v5638_v40, %v1536_v22  ;;  %v1464_v29 = vsel %vm1460_vm4, %v5622_v5, 0.0  ;;  %v1510_v22 = vmul.f32 %v5627_v47, %v1509_v7 }
 0x5aa   : >> { %2354 = vadd.xlane.f32.xlu2 %v2353_v18  ;;  %4388 = vrsqrt.f32 %v5631_v41  ;;  %vm1531_vm12 = vweird.f32 %v5622_v5 }
 0x5ab   : >> { %v1538_v39 = vmul.f32 0.5, %v1537_v42  ;;  %v1466_v42 = vsel %vm1460_vm4, %v5617_v46, 0.0  ;;  %v1514_v51 = vsel %vm5681_vm7, %v5627_v47, %v1510_v22 }
 0x5ac   : >> { %v1585_v22 = vmul.f32 %v1514_v51, %v5123_v25 }
 0x5ad   : >> { %v1539_v31 = vsub.f32 1.5, %v1538_v39 }
 0x5af   : >> { %v5640_v55 = vpop.eup %4386 }
 0x5b0   : >> { %v5633_v45 = vpop.xlane.xlu1 %2731  ;;  %v1526_v61 = vmul.f32 %v5640_v55, %v5622_v5  ;;  %v5661_v34 = vpop.eup %4388  ;;  %vm1532_vm10 = vweird.f32 %v5640_v55 }
 0x5b1   : >> { %vm5710_vm14 = vmor %vm1531_vm12, %vm1532_vm10 }
 0x5b2   : >> { %2363 = vadd.xlane.f32.xlu2 %v2362_v2  ;;  %v1527_v4 = vmul.f32 %v5640_v55, %v1526_v61  ;;  %v1556_v61 = vmul.f32 %v5661_v34, %v5631_v41 }
 0x5b4   : >> { %v1528_v10 = vmul.f32 0.5, %v1527_v4  ;;  %v1557_v50 = vmul.f32 %v5661_v34, %v1556_v61  ;;  %v1540_v61 = vmul.f32 %v5638_v40, %v1539_v31  ;;  %v4470_v31 = vld [vmem:[%s5080_s20 + $0x8] sm:$0xff] }
 0x5b6   : >> { %3945 = vmatmul.msk.bf16.gmra.mxu3 %vm1209_vm3, %v5579_v1  ;;  %v1544_v46 = vsel %vm1543_vm5, %v5638_v40, %v1540_v61  ;;  %v1853_v40 = vmul.f32 %v5261_v27, %v5261_v27 }
 0x5b7   : >> { %3948 = vmatmul.msk.bf16.gmra.mxu1 %vm1209_vm3, %v2277_v23  ;;  %v1461_v23 = vsel %vm1460_vm4, %v5609_v6, 0.0  ;;  %v1529_v6 = vsub.f32 1.5, %v1528_v10  ;;  %v1470_v10 = vsel %vm1460_vm4, %v5631_v41, 0.0 }
 0x5b8   : >> { %v5651_v52 = vpop.xlane.xlu1 %2728  ;;  %v1865_v41 = vsel %vm1209_vm3, %v1853_v40, 0.0 }
 0x5b9   : >> { %v1380_v37 = vpop.xlane.xlu0 %1379 }
 0x5ba   : >> { %v1462_v18 = vsel %vm1460_vm4, %v1380_v37, 0.0  ;;  %4390 = vrsqrt.f32 %v1380_v37  ;;  %vm1521_vm11 = vweird.f32 %v1380_v37 }
 0x5bb   : >> { %v1463_v2 = vadd.f32 %v1462_v18, %v1461_v23  ;;  %4392 = vrsqrt.f32 %v5653_v17 }
 0x5bd   : >> { %v1465_v56 = vadd.f32 %v1464_v29, %v1463_v2 }
 0x5bf   : >> { %v1467_v13 = vadd.f32 %v1466_v42, %v1465_v56  ;;  %v1558_v42 = vmul.f32 0.5, %v1557_v50 }
 0x5c0   : >> { %v4391_v60 = vpop.eup %4390  ;;  %v1452_v53 = vpop.xlane.xlu1 %1451 }
 0x5c1   : >> { %v1516_v48 = vmul.f32 %v4391_v60, %v1380_v37  ;;  %v1453_v18 = vrot.slane %v1452_v53, 4  ;;  %v5669_v23 = vpop.xlane.xlu0 %1388  ;;  %v5673_v54 = vpop.eup %4392  ;;  %vm1522_vm9 = vweird.f32 %v4391_v60 }
 0x5c2   : >> { %4394 = vrsqrt.f32 %v5669_v23  ;;  %v1468_v7 = vsel %vm1460_vm4, %v5669_v23, 0.0  ;;  %vm1523_vm13 = vmor %vm1521_vm11, %vm1522_vm9  ;;  %vm1551_vm7 = vweird.f32 %v5669_v23  ;;  %vm1562_vm9 = vweird.f32 %v5661_v34 }
 0x5c3   : >> { %v1517_v4 = vmul.f32 %v4391_v60, %v1516_v48  ;;  %v1454_v2 = vadd.f32 %v1453_v18, %v1452_v53  ;;  %v1576_v18 = vmul.f32 %v5673_v54, %v5653_v17  ;;  %v1469_v3 = vadd.f32 %v1468_v7, %v1467_v13  ;;  %vm1563_vm11 = vmor %vm1561_vm8, %vm1562_vm9 }
 0x5c4   : >> { %v1530_v13 = vmul.f32 %v5640_v55, %v1529_v6  ;;  %vm1582_vm12 = vweird.f32 %v5673_v54 }
 0x5c5   : >> { %v1518_v48 = vmul.f32 0.5, %v1517_v4  ;;  %v1455_v53 = vrot.slane %v1454_v2, 2  ;;  %v1471_v51 = vadd.f32 %v1470_v10, %v1469_v3  ;;  %v1559_v10 = vsub.f32 1.5, %v1558_v42 }
 0x5c6   : >> { %3946 = vmatmul.msk.bf16.gmra.mxu3 %vm1209_vm3, %v5559_v44  ;;  %v1534_v5 = vsel %vm5710_vm14, %v5640_v55, %v1530_v13 }
 0x5c7   : >> { %v1519_v56 = vsub.f32 1.5, %v1518_v48  ;;  %3949 = vmatmul.msk.bf16.gmra.mxu1 %vm1209_vm3, %v5579_v1  ;;  %v1456_v39 = vadd.f32 %v1455_v53, %v1454_v2  ;;  %v1577_v1 = vmul.f32 %v5673_v54, %v1576_v18 }
 0x5c8   : >> { %v4395_v47 = vpop.eup %4394 }
 0x5c9   : >> { %v1520_v4 = vmul.f32 %v4391_v60, %v1519_v56  ;;  %v1546_v7 = vmul.f32 %v4395_v47, %v5669_v23  ;;  %v5703_v29 = vpop.xlane.xlu0 %1394  ;;  %v1457_v25 = vrot.slane %v1456_v39, 1  ;;  %v1578_v56 = vmul.f32 0.5, %v1577_v1 }
 0x5ca   : >> { %2764 = vrot.lane.b32.xlu2 %v4470_v31, %s4575_s24  ;;  %4396 = vrsqrt.f32 %v5703_v29  ;;  %v1472_v6 = vsel %vm1460_vm4, %v5703_v29, 0.0  ;;  %v1593_v31 = vsel %vm1209_vm3, %v1585_v22, 0.0  ;;  %vm1552_vm6 = vweird.f32 %v4395_v47 }
 0x5cb   : >> { %v1524_v50 = vsel %vm1523_vm13, %v4391_v60, %v1520_v4  ;;  %v1547_v37 = vmul.f32 %v4395_v47, %v1546_v7  ;;  %v1458_v48 = vadd.f32 %v1457_v25, %v1456_v39  ;;  %v1473_v53 = vadd.f32 %v1472_v6, %v1471_v51  ;;  %vm1553_vm10 = vmor %vm1551_vm7, %vm1552_vm6 }
 0x5cc   : >> { %v1586_v3 = vmul.f32 %v1524_v50, %v5120_v28  ;;  %v1474_v60 = vsel %vm1460_vm4, %v5653_v17, 0.0  ;;  %v1587_v28 = vmul.f32 %v1534_v5, %v5135_v33  ;;  %v1560_v1 = vmul.f32 %v5661_v34, %v1559_v10 }
 0x5cd   : >> { %v1548_v18 = vmul.f32 0.5, %v1547_v37  ;;  %4097 = vpush %v1458_v48  ;;  %v1475_v7 = vadd.f32 %v1474_v60, %v1473_v53  ;;  %v1579_v22 = vsub.f32 1.5, %v1578_v56  ;;  %v1588_v33 = vmul.f32 %v1544_v46, %v5138_v49 }
 0x5ce   : >> { %v1594_v4 = vsel %vm1209_vm3, %v1586_v3, 0.0  ;;  %v1596_v51 = vsel %vm1209_vm3, %v1587_v28, 0.0  ;;  %v1564_v37 = vsel %vm1563_vm11, %v5661_v34, %v1560_v1  ;;  %vm1581_vm13 = vweird.f32 %v5653_v17 }
 0x5cf   : >> { %v1549_v55 = vsub.f32 1.5, %v1548_v18  ;;  %v1595_v39 = vadd.f32 %v1594_v4, %v1593_v31  ;;  %1476 = vadd.xlane.f32.xlu0 %v1475_v7  ;;  %v1580_v6 = vmul.f32 %v5673_v54, %v1579_v22  ;;  %v1598_v5 = vsel %vm1209_vm3, %v1588_v33, 0.0  ;;  %vm1583_vm15 = vmor %vm1581_vm13, %vm1582_vm12 }
 0x5d0   : >> { %v4397_v13 = vpop.eup %4396  ;;  %v1590_v34 = vmul.f32 %v1564_v37, %v5117_v24  ;;  %vm1571_vm5 = vweird.f32 %v5703_v29  ;;  %vm1615_vm7 = vcmask 516096  }
 0x5d1   : >> { %v1550_v42 = vmul.f32 %v4395_v47, %v1549_v55  ;;  %v1566_v25 = vmul.f32 %v4397_v13, %v5703_v29  ;;  %v1597_v61 = vadd.f32 %v1596_v51, %v1595_v39  ;;  %vm1572_vm14 = vweird.f32 %v4397_v13 }
 0x5d2   : >> { %v1584_v48 = vsel %vm1583_vm15, %v5673_v54, %v1580_v6  ;;  %vm1573_vm6 = vmor %vm1571_vm5, %vm1572_vm14  ;;  %v1602_v17 = vsel %vm1209_vm3, %v1590_v34, 0.0 }
 0x5d3   : >> { %v1554_v2 = vsel %vm1553_vm10, %v4395_v47, %v1550_v42  ;;  %v1567_v50 = vmul.f32 %v4397_v13, %v1566_v25  ;;  %v1592_v10 = vmul.f32 %v1584_v48, %v5099_v8  ;;  %v2333_v25 = vmul.f32 %v5600_v0, %v5600_v0 }
 0x5d4   : >> { %v1589_v23 = vmul.f32 %v1554_v2, %v5112_v20  ;;  %v1599_v20 = vadd.f32 %v1598_v5, %v1597_v61 }
 0x5d5   : >> { %v1568_v49 = vmul.f32 0.5, %v1567_v50  ;;  %v1606_v29 = vsel %vm1209_vm3, %v1592_v10, 0.0  ;;  %v2341_v2 = vsel %vm1209_vm3, %v2333_v25, 0.0 }
 0x5d6   : >> { %v1600_v47 = vsel %vm1209_vm3, %v1589_v23, 0.0 }
 0x5d7   : >> { %3950 = vmatmul.msk.bf16.gmra.mxu1 %vm1209_vm3, %v5559_v44  ;;  %v1569_v3 = vsub.f32 1.5, %v1568_v49  ;;  %1866 = vadd.xlane.f32.xlu0 %v1865_v41  ;;  %v1601_v53 = vadd.f32 %v1600_v47, %v1599_v20  ;;  %v1856_v44 = vmul.f32 %v5242_v9, %v5242_v9 }
 0x5d9   : >> { %v1570_v18 = vmul.f32 %v4397_v13, %v1569_v3  ;;  %v1603_v4 = vadd.f32 %v1602_v17, %v1601_v53  ;;  %v1874_v24 = vsel %vm1209_vm3, %v1856_v44, 0.0 }
 0x5db   : >> { %v1574_v60 = vsel %vm1573_vm6, %v4397_v13, %v1570_v18 }
 0x5dc   : >> { %v1591_v56 = vmul.f32 %v1574_v60, %v5104_v11 }
 0x5dd   : >> { %v2741_v1 = vpop.xlane.xlu2 %2740 }
 0x5de   : >> { %v1604_v54 = vsel %vm1209_vm3, %v1591_v56, 0.0  ;;  %4398 = vrcp.f32 %v2741_v1  ;;  %v5814_v56 = vpop.f32.mrf.mxu1 }
 0x5df   : >> { %1875 = vadd.xlane.f32.xlu0 %v1874_v24  ;;  %v1605_v7 = vadd.f32 %v1604_v54, %v1603_v4 }
 0x5e1   : >> { %v1607_v31 = vadd.f32 %v1606_v29, %v1605_v7  ;;  %v4471_v7 = vld [vmem:[%s5080_s20 + $0x10] sm:$0xff] }
 0x5e3   : >> { %v1608_v28 = vrot.slane %v1607_v31, 4 }
 0x5e4   : >> { %v4399_v33 = vpop.eup %4398 }
 0x5e5   : >> { %v1609_v55 = vadd.f32 %v1608_v28, %v1607_v31  ;;  %v5766_v40 = vmul.f32 %v4399_v33, %v5523_v63  ;;  %v2726_v61 = vpop.xlane.xlu2 %2725 }
 0x5e7   : >> { %v1610_v46 = vrot.slane %v1609_v55, 2 }
 0x5e9   : >> { %v1611_v39 = vadd.f32 %v1610_v46, %v1609_v55  ;;  %v1864_v55 = vpop.xlane.xlu1 %1863 }
 0x5ea   : >> { %vm2004_vm10 = vweird.f32 %v1864_v55 }
 0x5eb   : >> { %v1612_v13 = vrot.slane %v1611_v39, 1 }
 0x5ed   : >> { %v1613_v42 = vadd.f32 %v1612_v13, %v1611_v39  ;;  %v2723_v3 = vpop.xlane.xlu2 %2722 }
 0x5ef   : >> { %v1614_v8 = vmul.f32 %v1613_v42, %v1613_v42 }
 0x5f1   : >> { %v1616_v11 = vsel %vm1615_vm7, %v1614_v8, 0.0 }
 0x5f2   : >> { %1617 = vadd.xlane.f32.xlu0 %v1616_v11  ;;  %v5851_v11 = vpop.xlane.xlu1 %1872 }
 0x5f3   : >> { %v2738_v22 = vpop.xlane.xlu0 %2737  ;;  %vm2034_vm5 = vweird.f32 %v5851_v11 }
 0x5f4   : >> { %4400 = vrcp.f32 %v2738_v22 }
 0x5f5   : >> { %4402 = vrcp.f32 %v5633_v45  ;;  %v2336_v45 = vmul.f32 %v5586_v16, %v5586_v16  ;;  %v5840_v39 = vpop.xlane.xlu2 %1860 }
 0x5f6   : >> { %vm1994_vm13 = vweird.f32 %v5840_v39 }
 0x5f7   : >> { %v2350_v49 = vsel %vm1209_vm3, %v2336_v45, 0.0 }
 0x5fa   : >> { %v4401_v51 = vpop.eup %4400  ;;  %2342 = vadd.xlane.f32.xlu0 %v2341_v2 }
 0x5fb   : >> { %v5769_v23 = vmul.f32 %v4401_v51, %v5540_v21  ;;  %v2735_v50 = vpop.xlane.xlu0 %2734  ;;  %v4403_v63 = vpop.eup %4402 }
 0x5fc   : >> { %4404 = vrcp.f32 %v2735_v50  ;;  %v5782_v5 = vmul.f32 %v4403_v63, %v5481_v57 }
 0x5fd   : >> { %v5773_v37 = vpack.c.bf16 %v5766_v40, %v5769_v23  ;;  %4406 = vrcp.f32 %v2726_v61  ;;  %v5854_v25 = vpop.xlane.xlu2 %1869 }
 0x5fe   : >> { %4408 = vrcp.f32 %v5651_v52  ;;  %v2339_v52 = vmul.f32 %v5551_v14, %v5551_v14  ;;  %v1949_v42 = vsel %vm1460_vm4, %v5854_v25, 0.0  ;;  %vm2024_vm6 = vweird.f32 %v5854_v25  ;;  %s4098_s14 = spop %4097 }
 0x5ff   : >> { %6777 = vst [vmem:[#allocation31_spill] sm:$0xff] %v5773_v37  ;;  %v2784_v6 = vsel %vm1209_vm3, %v5773_v37, 0 }
 0x600   : >> { %2851 = vmatpush.bf16.xpose.msra.mxu3 %v2784_v6  ;;  %v2359_v18 = vsel %vm1209_vm3, %v2339_v52, 0.0  ;;  %v5867_v6 = vpop.xlane.xlu1 %1881 }
 0x602   : >> { %v4405_v21 = vpop.eup %4404  ;;  %2351 = vadd.xlane.f32.xlu0 %v2350_v49 }
 0x603   : >> { %v5785_v47 = vmul.f32 %v4405_v21, %v5548_v38  ;;  %v2720_v41 = vpop.xlane.xlu0 %2719  ;;  %v4407_v20 = vpop.eup %4406 }
 0x604   : >> { %v4409_v48 = vpop.eup %4408  ;;  %4410 = vrcp.f32 %v2720_v41  ;;  %v5794_v53 = vmul.f32 %v4407_v20, %v5528_v35  ;;  %v1945_v20 = vsel %vm1460_vm4, %v1864_v55, 0.0 }
 0x605   : >> { %v5789_v34 = vpack.c.bf16 %v5785_v47, %v5782_v5  ;;  %4412 = vrcp.f32 %v2723_v3  ;;  %v5799_v38 = vmul.f32 %v4409_v48, %v5489_v15  ;;  %v5877_v41 = vpop.xlane.xlu2 %1878 }
 0x606   : >> { %4414 = vrsqrt.f32 %v1864_v55 }
 0x607   : >> { %6778 = vst [vmem:[#allocation32_spill] sm:$0xff] %v5789_v34  ;;  %v2781_v57 = vsel %vm1209_vm3, %v5789_v34, 0  ;;  %v5804_v44 = vpack.c.bf16 %v5799_v38, %v5794_v53  ;;  %4416 = vrsqrt.f32 %v5840_v39 }
 0x608   : >> { %2852 = vmatpush.bf16.xpose.msra.mxu3 %v2781_v57  ;;  %4418 = vrsqrt.f32 %v5851_v11 }
 0x609   : >> { %6779 = vst [vmem:[#allocation33_spill] sm:$0xff] %v5804_v44  ;;  %v2778_v10 = vsel %vm1209_vm3, %v5804_v44, 0  ;;  %4420 = vrsqrt.f32 %v5854_v25 }
 0x60a   : >> { %2360 = vadd.xlane.f32.xlu0 %v2359_v18  ;;  %v4411_v60 = vpop.eup %4410  ;;  %4422 = vrsqrt.f32 %v5867_v6 }
 0x60b   : >> { %v4413_v17 = vpop.eup %4412  ;;  %v5807_v35 = vmul.f32 %v4411_v60, %v5581_v36  ;;  %v5824_v36 = vpop.f32.mrf.mxu1  ;;  %4424 = vrsqrt.f32 %v5877_v41 }
 0x60c   : >> { %v5812_v15 = vmul.f32 %v4413_v17, %v5534_v43  ;;  %v5848_v1 = vpop.eup %4414 }
 0x60d   : >> { %v1999_v22 = vmul.f32 %v5848_v1, %v1864_v55  ;;  %v5858_v51 = vpop.eup %4416  ;;  %vm2005_vm9 = vweird.f32 %v5848_v1 }
 0x60e   : >> { %v5818_v4 = vpack.c.bf16 %v5812_v15, %v5807_v35  ;;  %v1989_v50 = vmul.f32 %v5858_v51, %v5840_v39  ;;  %v5871_v63 = vpop.eup %4418  ;;  %vm5896_vm8 = vmor %vm2004_vm10, %vm2005_vm9  ;;  %vm1995_vm11 = vweird.f32 %v5858_v51 }
 0x60f   : >> { %v2000_v2 = vmul.f32 %v5848_v1, %v1999_v22  ;;  %v5881_v3 = vpop.eup %4420  ;;  %v2029_v52 = vmul.f32 %v5871_v63, %v5851_v11  ;;  %vm2035_vm12 = vweird.f32 %v5871_v63  ;;  %vm5935_vm14 = vmor %vm1994_vm13, %vm1995_vm11 }
 0x610   : >> { %2853 = vmatpush.bf16.xpose.msra.mxu3 %v2778_v10  ;;  %6780 = vst [vmem:[#allocation34_spill] sm:$0xff] %v5818_v4  ;;  %v2775_v24 = vsel %vm1209_vm3, %v5818_v4, 0  ;;  %v1990_v21 = vmul.f32 %v5858_v51, %v1989_v50  ;;  %v2019_v10 = vmul.f32 %v5881_v3, %v5854_v25  ;;  %v1944_v50 = vsel %vm1460_vm4, %v5840_v39, 0.0 }
 0x611   : >> { %v2001_v45 = vmul.f32 0.5, %v2000_v2  ;;  %v2030_v22 = vmul.f32 %v5871_v63, %v2029_v52  ;;  %v5891_v2 = vpop.eup %4422  ;;  %vm2025_vm15 = vweird.f32 %v5881_v3 }
 0x612   : >> { %v1991_v17 = vmul.f32 0.5, %v1990_v21  ;;  %vm5966_vm9 = vmor %vm2024_vm6, %vm2025_vm15  ;;  %vm2054_vm15 = vweird.f32 %v5877_v41  ;;  %vm2064_vm6 = vweird.f32 %v5867_v6 }
 0x613   : >> { %v2002_v48 = vsub.f32 1.5, %v2001_v45  ;;  %v2031_v29 = vmul.f32 0.5, %v2030_v22 }
 0x614   : >> { %v1992_v21 = vsub.f32 1.5, %v1991_v17  ;;  %v1946_v17 = vadd.f32 %v1945_v20, %v1944_v50 }
 0x618   : >> { %2854 = vmatpush.bf16.xpose.msra.mxu3 %v2775_v24 }
 0x619   : >> { %v5822_v54 = vpop.f32.mrf.mxu3 }
 0x61a   : >> { %6781 = vst [vmem:[#allocation35_spill] sm:$0xff] %v5822_v54 }
 0x61e   : >> { %2766 = vrot.lane.b32.xlu0 %v4471_v7, %s4575_s24  ;;  %v2003_v7 = vmul.f32 %v5848_v1, %v2002_v48  ;;  %v2020_v48 = vmul.f32 %v5881_v3, %v2019_v10 }
 0x61f   : >> { %3960 = vmatmul.msk.bf16.vlgmr.msra.gmra.mxu3 %vm1209_vm3, %v5818_v4 }
 0x620   : >> { %v2007_v52 = vsel %vm5896_vm8, %v5848_v1, %v2003_v7  ;;  %v2021_v7 = vmul.f32 0.5, %v2020_v48  ;;  %vm5979_vm8 = vmor %vm2034_vm5, %vm2035_vm12 }
 0x621   : >> { %v5830_v43 = vpop.f32.mrf.mxu3 }
 0x622   : >> { %6782 = vst [vmem:[#allocation36_spill] sm:$0xff] %v5830_v43 }
 0x624   : >> { %v5834_v31 = vpop.f32.mrf.mxu1 }
 0x625   : >> { %v2394_v50 = vmul.f32 %v5834_v31, %v5834_v31  ;;  %v1957_v31 = vsel %vm1460_vm4, %v5867_v6, 0.0 }
 0x629   : >> { %v5836_v28 = vpop.f32.mrf.mxu3 }
 0x62a   : >> { %6783 = vst [vmem:[#allocation37_spill] sm:$0xff] %v5836_v28 }
 0x62c   : >> { %v5838_v46 = vpop.f32.mrf.mxu1 }
 0x62d   : >> { %v2395_v1 = vmul.f32 %v5838_v46, %v5838_v46  ;;  %v2032_v46 = vsub.f32 1.5, %v2031_v29 }
 0x62f   : >> { %3961 = vmatmul.msk.bf16.gmra.mxu3 %vm1209_vm3, %v5804_v44  ;;  %v2069_v44 = vmul.f32 %v2007_v52, %v5271_v58  ;;  %v2403_v58 = vsel %vm1209_vm3, %v2395_v1, 0.0  ;;  %v2402_v52 = vsel %vm1209_vm3, %v2394_v50, 0.0  ;;  %v2033_v54 = vmul.f32 %v5871_v63, %v2032_v46 }
 0x630   : >> { %v2404_v1 = vadd.f32 %v2403_v58, %v2402_v52 }
 0x631   : >> { %v5844_v13 = vpop.f32.mrf.mxu3 }
 0x632   : >> { %6784 = vst [vmem:[#allocation38_spill] sm:$0xff] %v5844_v13  ;;  %v1951_v13 = vsel %vm1460_vm4, %v5851_v11, 0.0  ;;  %v2335_v11 = vmul.f32 %v5596_v26, %v5596_v26 }
 0x634   : >> { %v2379_v8 = vpop.f32.mrf.mxu1 }
 0x639   : >> { %v5856_v33 = vpop.f32.mrf.mxu3 }
 0x63a   : >> { %6785 = vst [vmem:[#allocation39_spill] sm:$0xff] %v5856_v33  ;;  %v2059_v33 = vmul.f32 %v5891_v2, %v5867_v6  ;;  %v2816_v6 = vmul.f32 %v5812_v15, %v5812_v15 }
 0x63c   : >> { %v5862_v61 = vpop.f32.mrf.mxu1  ;;  %v2060_v48 = vmul.f32 %v5891_v2, %v2059_v33  ;;  %v2022_v33 = vsub.f32 1.5, %v2021_v7 }
 0x63d   : >> { %v2397_v29 = vmul.f32 %v5862_v61, %v5862_v61 }
 0x63e   : >> { %v2061_v43 = vmul.f32 0.5, %v2060_v48 }
 0x63f   : >> { %3962 = vmatmul.msk.bf16.gmra.mxu3 %vm1209_vm3, %v5789_v34  ;;  %v2396_v34 = vmul.f32 %v2379_v8, %v2379_v8  ;;  %v2407_v7 = vsel %vm1209_vm3, %v2397_v29, 0.0  ;;  %v2023_v8 = vmul.f32 %v5881_v3, %v2022_v33 }
 0x641   : >> { %v5874_v49 = vpop.f32.mrf.mxu3  ;;  %v2027_v46 = vsel %vm5966_vm9, %v5881_v3, %v2023_v8  ;;  %v2077_v3 = vsel %vm1209_vm3, %v2069_v44, 0.0 }
 0x642   : >> { %6786 = vst [vmem:[#allocation40_spill] sm:$0xff] %v5874_v49  ;;  %v1477_v57 = vpop.xlane.xlu0 %1476 }
 0x643   : >> { %v1478_v18 = vrot.slane %v1477_v57, 4 }
 0x644   : >> { %v2384_v60 = vpop.f32.mrf.mxu1 }
 0x645   : >> { %v1479_v24 = vadd.f32 %v1478_v18, %v1477_v57  ;;  %v5901_v18 = vpop.eup %4424 }
 0x646   : >> { %v2049_v22 = vmul.f32 %v5901_v18, %v5877_v41  ;;  %vm2055_vm12 = vweird.f32 %v5901_v18 }
 0x647   : >> { %v1480_v45 = vrot.slane %v1479_v24, 2  ;;  %vm2056_vm9 = vmor %vm2054_vm15, %vm2055_vm12 }
 0x649   : >> { %v1481_v57 = vadd.f32 %v1480_v45, %v1479_v24  ;;  %v1993_v45 = vmul.f32 %v5858_v51, %v1992_v21 }
 0x64a   : >> { %v5908_v49 = vpop.xlane.xlu0 %1866 }
 0x64b   : >> { %v1947_v55 = vsel %vm1460_vm4, %v5908_v49, 0.0  ;;  %4426 = vrsqrt.f32 %v5908_v49  ;;  %v1482_v24 = vrot.slane %v1481_v57, 1  ;;  %vm2014_vm11 = vweird.f32 %v5908_v49 }
 0x64c   : >> { %v2386_v10 = vpop.f32.mrf.mxu1  ;;  %v1948_v20 = vadd.f32 %v1947_v55, %v1946_v17  ;;  %v2405_v17 = vsel %vm1209_vm3, %v2396_v34, 0.0  ;;  %v2398_v55 = vmul.f32 %v2384_v60, %v2384_v60 }
 0x64d   : >> { %v1483_v28 = vadd.f32 %v1482_v24, %v1481_v57  ;;  %v2050_v57 = vmul.f32 %v5901_v18, %v2049_v22  ;;  %v2399_v34 = vmul.f32 %v2386_v10, %v2386_v10 }
 0x64e   : >> { %v1950_v21 = vadd.f32 %v1949_v42, %v1948_v20  ;;  %v2409_v58 = vsel %vm1209_vm3, %v2398_v55, 0.0 }
 0x64f   : >> { %3963 = vmatmul.msk.bf16.gmra.mxu3 %vm1209_vm3, %v5773_v37  ;;  %4099 = vpush %v1483_v28  ;;  %v1997_v28 = vsel %vm5935_vm14, %v5858_v51, %v1993_v45  ;;  %v1955_v45 = vsel %vm1460_vm4, %v5877_v41, 0.0  ;;  %vm2065_vm14 = vweird.f32 %v5891_v2 }
 0x650   : >> { %v1952_v61 = vadd.f32 %v1951_v13, %v1950_v21  ;;  %v2068_v50 = vmul.f32 %v1997_v28, %v5268_v62  ;;  %v2051_v13 = vmul.f32 0.5, %v2050_v57  ;;  %v2406_v21 = vadd.f32 %v2405_v17, %v2404_v1 }
 0x651   : >> { %v4427_v39 = vpop.eup %4426  ;;  %v2411_v28 = vsel %vm1209_vm3, %v2399_v34, 0.0 }
 0x652   : >> { %v2009_v24 = vmul.f32 %v4427_v39, %v5908_v49  ;;  %v5951_v42 = vpop.xlane.xlu0 %1875  ;;  %v2408_v29 = vadd.f32 %v2407_v7, %v2406_v21  ;;  %vm2015_vm10 = vweird.f32 %v4427_v39  ;;  %v2076_v17 = vsel %vm1209_vm3, %v2068_v50, 0.0 }
 0x653   : >> { %v1953_v20 = vsel %vm1460_vm4, %v5951_v42, 0.0  ;;  %4428 = vrsqrt.f32 %v5951_v42  ;;  %v2052_v25 = vsub.f32 1.5, %v2051_v13  ;;  %vm2016_vm13 = vmor %vm2014_vm11, %vm2015_vm10  ;;  %v2347_v21 = vsel %vm1209_vm3, %v2335_v11, 0.0 }
 0x654   : >> { %v2389_v51 = vpop.f32.mrf.mxu1  ;;  %v2010_v22 = vmul.f32 %v4427_v39, %v2009_v24  ;;  %v1954_v60 = vadd.f32 %v1953_v20, %v1952_v61  ;;  %v2410_v48 = vadd.f32 %v2409_v58, %v2408_v29  ;;  %v2062_v61 = vsub.f32 1.5, %v2061_v43  ;;  %vm2066_vm10 = vmor %vm2064_vm6, %vm2065_vm14 }
 0x655   : >> { %v2400_v37 = vmul.f32 %v2389_v51, %v2389_v51  ;;  %v2037_v51 = vsel %vm5979_vm8, %v5871_v63, %v2033_v54  ;;  %v2053_v34 = vmul.f32 %v5901_v18, %v2052_v25  ;;  %vm2044_vm8 = vweird.f32 %v5951_v42 }
 0x656   : >> { %v2011_v52 = vmul.f32 0.5, %v2010_v22  ;;  %v1956_v4 = vadd.f32 %v1955_v45, %v1954_v60  ;;  %v2412_v1 = vadd.f32 %v2411_v28, %v2410_v48  ;;  %v2078_v22 = vadd.f32 %v2077_v3, %v2076_v17 }
 0x657   : >> { %v2063_v8 = vmul.f32 %v5891_v2, %v2062_v61  ;;  %v2057_v58 = vsel %vm2056_vm9, %v5901_v18, %v2053_v34  ;;  %v2338_v18 = vmul.f32 %v5565_v30, %v5565_v30  ;;  %v2819_v48 = vmul.f32 %v5782_v5, %v5782_v5 }
 0x658   : >> { %v2012_v62 = vsub.f32 1.5, %v2011_v52  ;;  %v1958_v33 = vadd.f32 %v1957_v31, %v1956_v4  ;;  %v2413_v31 = vsel %vm1209_vm3, %v2400_v37, 0.0  ;;  %v2071_v37 = vmul.f32 %v2027_v46, %v5255_v32 }
 0x659   : >> { %v4429_v57 = vpop.eup %4428  ;;  %v2414_v43 = vadd.f32 %v2413_v31, %v2412_v1  ;;  %v2067_v41 = vsel %vm2066_vm10, %v5891_v2, %v2063_v8  ;;  %v2826_v2 = vsel %vm1209_vm3, %v2816_v6, 0.0  ;;  %v2356_v46 = vsel %vm1209_vm3, %v2338_v18, 0.0  ;;  %v4473_v8 = vld [vmem:[%s5080_s20] sm:$0xff] }
 0x65a   : >> { %v2013_v24 = vmul.f32 %v4427_v39, %v2012_v62  ;;  %v2039_v4 = vmul.f32 %v4429_v57, %v5951_v42  ;;  %1959 = vadd.xlane.f32.xlu1 %v1958_v33  ;;  %vm2045_vm5 = vweird.f32 %v4429_v57  ;;  %v2081_v13 = vsel %vm1209_vm3, %v2071_v37, 0.0 }
 0x65b   : >> { %vm2046_vm11 = vmor %vm2044_vm8, %vm2045_vm5  ;;  %v2074_v62 = vmul.f32 %v2057_v58, %v5231_v19  ;;  %v2075_v42 = vmul.f32 %v2067_v41, %v5234_v59  ;;  %v2835_v59 = vsel %vm1209_vm3, %v2819_v48, 0.0  ;;  %v2822_v3 = vmul.f32 %v5766_v40, %v5766_v40 }
 0x65c   : >> { %v2391_v20 = vpop.f32.mrf.mxu1  ;;  %v2017_v49 = vsel %vm2016_vm13, %v4427_v39, %v2013_v24  ;;  %v2040_v45 = vmul.f32 %v4429_v57, %v2039_v4  ;;  %v2818_v34 = vmul.f32 %v5799_v38, %v5799_v38 }
 0x65d   : >> { %v2401_v7 = vmul.f32 %v2391_v20, %v2391_v20  ;;  %v2070_v44 = vmul.f32 %v2017_v49, %v5261_v27  ;;  %v2072_v27 = vmul.f32 %v2037_v51, %v5247_v12  ;;  %v2087_v25 = vsel %vm1209_vm3, %v2074_v62, 0.0 }
 0x65e   : >> { %v2041_v60 = vmul.f32 0.5, %v2040_v45  ;;  %v2844_v20 = vsel %vm1209_vm3, %v2822_v3, 0.0  ;;  %v2815_v45 = vmul.f32 %v5807_v35, %v5807_v35 }
 0x65f   : >> { %v2415_v50 = vsel %vm1209_vm3, %v2401_v7, 0.0  ;;  %v2079_v54 = vsel %vm1209_vm3, %v2070_v44, 0.0  ;;  %v2083_v10 = vsel %vm1209_vm3, %v2072_v27, 0.0  ;;  %v4472_v7 = vld [vmem:[%s5080_s20 + $0x18] sm:$0xff]  ;;  %v1936_v44 = vpop.xlane.xlu2 %1935  ;;  %v6040_v27 = vpop.f32.mrf.mxu3  ;;  %s4578_s20 = smov 32  }
 0x660   : >> { %v2416_v63 = vadd.f32 %v2415_v50, %v2414_v43  ;;  %v2080_v32 = vadd.f32 %v2079_v54, %v2078_v22  ;;  %v2042_v39 = vsub.f32 1.5, %v2041_v60  ;;  %v2823_v22 = vsel %vm1209_vm3, %v2815_v45, 0.0 }
 0x661   : >> { %v1937_v50 = vrot.slane %v1936_v44, 4  ;;  %v2832_v54 = vsel %vm1209_vm3, %v2818_v34, 0.0 }
 0x662   : >> { %2417 = vadd.xlane.f32.xlu2 %v2416_v63  ;;  %v2082_v52 = vadd.f32 %v2081_v13, %v2080_v32  ;;  %v2043_v29 = vmul.f32 %v4429_v57, %v2042_v39  ;;  %2348 = vadd.xlane.f32.xlu1 %v2347_v21  ;;  %v2821_v13 = vmul.f32 %v5769_v23, %v5769_v23 }
 0x663   : >> { %v1938_v32 = vadd.f32 %v1937_v50, %v1936_v44 }
 0x664   : >> { %v2047_v12 = vsel %vm2046_vm11, %v4429_v57, %v2043_v29  ;;  %v2084_v33 = vadd.f32 %v2083_v10, %v2082_v52  ;;  %v2841_v41 = vsel %vm1209_vm3, %v2821_v13, 0.0 }
 0x665   : >> { %v2073_v28 = vmul.f32 %v2047_v12, %v5242_v9  ;;  %v2089_v9 = vsel %vm1209_vm3, %v2075_v42, 0.0  ;;  %v1618_v37 = vpop.xlane.xlu0 %1617  ;;  %v1939_v52 = vrot.slane %v1938_v32, 2 }
 0x666   : >> { %v1619_v60 = vrot.slane %v1618_v37, 4 }
 0x667   : >> { %v2085_v17 = vsel %vm1209_vm3, %v2073_v28, 0.0  ;;  %v1940_v62 = vadd.f32 %v1939_v52, %v1938_v32  ;;  %v6045_v18 = vpop.f32.mrf.mxu3 }
 0x668   : >> { %v2086_v57 = vadd.f32 %v2085_v17, %v2084_v33  ;;  %v1620_v63 = vadd.f32 %v1619_v60, %v1618_v37 }
 0x669   : >> { %v1941_v17 = vrot.slane %v1940_v62, 1 }
 0x66a   : >> { %2827 = vadd.xlane.f32.xlu2 %v2826_v2  ;;  %2357 = vadd.xlane.f32.xlu1 %v2356_v46  ;;  %v2088_v19 = vadd.f32 %v2087_v25, %v2086_v57  ;;  %v1621_v58 = vrot.slane %v1620_v63, 2 }
 0x66c   : >> { %v2090_v55 = vadd.f32 %v2089_v9, %v2088_v19  ;;  %v1622_v6 = vadd.f32 %v1621_v58, %v1620_v63  ;;  %v1942_v19 = vadd.f32 %v1941_v17, %v1940_v62 }
 0x66e   : >> { %v2091_v24 = vrot.slane %v2090_v55, 4  ;;  %v1623_v33 = vrot.slane %v1622_v6, 1 }
 0x670   : >> { %v2092_v4 = vadd.f32 %v2091_v24, %v2090_v55  ;;  %v1624_v25 = vadd.f32 %v1623_v33, %v1622_v6 }
 0x672   : >> { %2836 = vadd.xlane.f32.xlu2 %v2835_v59  ;;  %v2093_v31 = vrot.slane %v2092_v4, 2  ;;  %v6047_v59 = vpop.xlane.xlu0 %2342 }
 0x673   : >> { %v2426_v6 = vsel %vm1460_vm4, %v6047_v59, 0.0  ;;  %vm2476_vm5 = vweird.f32 %v6047_v59 }
 0x674   : >> { %v2094_v61 = vadd.f32 %v2093_v31, %v2092_v4  ;;  %v6049_v4 = vpop.xlane.xlu2 %2345 }
 0x675   : >> { %v2427_v52 = vsel %vm1460_vm4, %v6049_v4, 0.0  ;;  %vm2486_vm6 = vweird.f32 %v6049_v4 }
 0x676   : >> { %v2095_v1 = vrot.slane %v2094_v61, 1 }
 0x678   : >> { %v2096_v11 = vadd.f32 %v2095_v1, %v2094_v61 }
 0x67a   : >> { %2845 = vadd.xlane.f32.xlu2 %v2844_v20  ;;  %v2097_v51 = vmul.f32 %v2096_v11, %v2096_v11  ;;  %v6053_v3 = vpop.xlane.xlu0 %2351 }
 0x67c   : >> { %v2098_v49 = vsel %vm1615_vm7, %v2097_v51, 0.0  ;;  %v6055_v61 = vpop.xlane.xlu2 %2354 }
 0x67d   : >> { %2099 = vadd.xlane.f32.xlu0 %v2098_v49 }
 0x680   : >> { %s4100_s17 = spop %4099 }
 0x681   : >> { %s1485_s15 = smul.f32 2.0, %s4100_s17 }
 0x683   : >> { %s1486_s22 = ssub.f32 %s4098_s14, %s1485_s15  ;;  %2768 = vrot.lane.b32.xlu1 %v4472_v7, %s4575_s24 }
 0x684   : >> { %v6074_v63 = vpop.xlane.xlu2 %2363 }
 0x685   : >> { %s1487_s23 = sadd.f32 64.0, %s1486_s22  ;;  %2824 = vadd.xlane.f32.xlu0 %v2823_v22 }
 0x687   : >> { %s1488_s1 = smax.f32 %s4576_s0, %s1487_s23 }
 0x688   : >> { %v1489_v43 = vstv %s1488_s1  ;;  %s6738_s1 = smov 16  }
 0x689   : >> { %4430 = vrsqrt.f32 %v1489_v43  ;;  %vm1497_vm13 = vcmp.eq.f32.partialorder %v1489_v43, inf  ;;  %v1500_v2 = vand.u32 2147483648, %v1489_v43  ;;  %vm1499_vm12 = vcmp.eq.f32.partialorder %v1489_v43, 0.0 }
 0x68a   : >> { %4432 = vrsqrt.f32 %v6049_v4 }
 0x68b   : >> { %2762 = vrot.lane.b32.xlu1 %v4473_v8, %s4575_s24  ;;  %4434 = vrsqrt.f32 %v6047_v59 }
 0x68c   : >> { %4436 = vrsqrt.f32 %v6053_v3 }
 0x68d   : >> { %2833 = vadd.xlane.f32.xlu0 %v2832_v54  ;;  %4438 = vrsqrt.f32 %v6055_v61 }
 0x68f   : >> { %v4431_v39 = vpop.eup %4430 }
 0x690   : >> { %v1491_v21 = vmul.f32 %v4431_v39, %v1489_v43  ;;  %v6057_v1 = vpop.eup %4432 }
 0x691   : >> { %v6059_v20 = vpop.eup %4434  ;;  %v2481_v49 = vmul.f32 %v6057_v1, %v6049_v4  ;;  %vm2487_vm14 = vweird.f32 %v6057_v1 }
 0x692   : >> { %v1492_v29 = vmul.f32 %v4431_v39, %v1491_v21  ;;  %v2471_v45 = vmul.f32 %v6059_v20, %v6047_v59  ;;  %v6067_v44 = vpop.eup %4436  ;;  %vm2477_vm15 = vweird.f32 %v6059_v20  ;;  %vm2488_vm10 = vmor %vm2486_vm6, %vm2487_vm14  ;;  %vm2516_vm6 = vweird.f32 %v6055_v61 }
 0x693   : >> { %v2482_v8 = vmul.f32 %v6057_v1, %v2481_v49  ;;  %v6078_v58 = vpop.eup %4438  ;;  %vm6123_vm9 = vmor %vm2476_vm5, %vm2477_vm15  ;;  %vm2507_vm8 = vweird.f32 %v6067_v44 }
 0x694   : >> { %v1493_v12 = vmul.f32 0.5, %v1492_v29  ;;  %v2472_v54 = vmul.f32 %v6059_v20, %v2471_v45  ;;  %v2501_v29 = vmul.f32 %v6067_v44, %v6053_v3 }
 0x695   : >> { %2842 = vadd.xlane.f32.xlu0 %v2841_v41  ;;  %v2483_v33 = vmul.f32 0.5, %v2482_v8 }
 0x696   : >> { %v1494_v10 = vsub.f32 1.5, %v1493_v12 }
 0x697   : >> { %v2484_v49 = vsub.f32 1.5, %v2483_v33 }
 0x698   : >> { %v1495_v28 = vmul.f32 %v4431_v39, %v1494_v10 }
 0x69a   : >> { %v1496_v42 = vmul.f32 %v1495_v28, %v1489_v43 }
 0x69c   : >> { %v1498_v57 = vsel %vm1497_vm13, %v1489_v43, %v1496_v42  ;;  %v6069_v43 = vpop.xlane.xlu0 %2360  ;;  %v2473_v42 = vmul.f32 0.5, %v2472_v54  ;;  %vm2506_vm13 = vweird.f32 %v6053_v3 }
 0x69d   : >> { %v1501_v46 = vsel %vm1499_vm12, %v1500_v2, %v1498_v57  ;;  %4440 = vrsqrt.f32 %v6069_v43  ;;  %v2511_v2 = vmul.f32 %v6078_v58, %v6055_v61  ;;  %vm2517_vm12 = vweird.f32 %v6078_v58  ;;  %vm6149_vm14 = vmor %vm2506_vm13, %vm2507_vm8 }
 0x69e   : >> { %4101 = vpush %v1501_v46  ;;  %4442 = vrsqrt.f32 %v6074_v63  ;;  %v2474_v45 = vsub.f32 1.5, %v2473_v42 }
 0x69f   : >> { %4103 = vpush %v1624_v25 }
 0x6a0   : >> { %4105 = vpush %v1942_v19  ;;  %v2428_v19 = vadd.f32 %v2427_v52, %v2426_v6 }
 0x6a2   : >> { %v2856_v9 = vpop.f32.mrf.mxu3 }
 0x6a3   : >> { %v2876_v7 = vmul.f32 %v2856_v9, %v2856_v9  ;;  %v2502_v9 = vmul.f32 %v6067_v44, %v2501_v29  ;;  %v2433_v29 = vsel %vm1460_vm4, %v6055_v61, 0.0 }
 0x6a5   : >> { %v2884_v32 = vsel %vm1209_vm3, %v2876_v7, 0.0 }
 0x6aa   : >> { %v2858_v48 = vpop.f32.mrf.mxu3 }
 0x6ab   : >> { %v2877_v51 = vmul.f32 %v2858_v48, %v2858_v48 }
 0x6ad   : >> { %v2885_v34 = vsel %vm1209_vm3, %v2877_v51, 0.0  ;;  %v6099_v51 = vpop.eup %4440 }
 0x6ae   : >> { %v2886_v41 = vadd.f32 %v2885_v34, %v2884_v32  ;;  %v2431_v34 = vsel %vm1460_vm4, %v6053_v3, 0.0  ;;  %v6105_v8 = vpop.eup %4442 }
 0x6af   : >> { %vm2547_vm8 = vweird.f32 %v6105_v8 }
 0x6b2   : >> { %v2861_v55 = vpop.f32.mrf.mxu3 }
 0x6b3   : >> { %v2878_v22 = vmul.f32 %v2861_v55, %v2861_v55 }
 0x6b5   : >> { %v2887_v39 = vsel %vm1209_vm3, %v2878_v22, 0.0 }
 0x6b6   : >> { %v2888_v17 = vadd.f32 %v2887_v39, %v2886_v41  ;;  %v2475_v41 = vmul.f32 %v6059_v20, %v2474_v45 }
 0x6b8   : >> { %v2479_v59 = vsel %vm6123_vm9, %v6059_v20, %v2475_v41  ;;  %vm6164_vm9 = vmor %vm2516_vm6, %vm2517_vm12  ;;  %vm2546_vm12 = vweird.f32 %v6074_v63 }
 0x6ba   : >> { %v2863_v24 = vpop.f32.mrf.mxu3 }
 0x6bb   : >> { %v2879_v60 = vmul.f32 %v2863_v24, %v2863_v24 }
 0x6bd   : >> { %v2889_v10 = vsel %vm1209_vm3, %v2879_v60, 0.0 }
 0x6be   : >> { %v2890_v48 = vadd.f32 %v2889_v10, %v2888_v17  ;;  %v2485_v10 = vmul.f32 %v6057_v1, %v2484_v49 }
 0x6c0   : >> { %v2489_v49 = vsel %vm2488_vm10, %v6057_v1, %v2485_v10  ;;  %v2817_v10 = vmul.f32 %v5794_v53, %v5794_v53  ;;  %vm2537_vm10 = vweird.f32 %v6099_v51 }
 0x6c2   : >> { %v2866_v31 = vpop.f32.mrf.mxu3 }
 0x6c3   : >> { %v2880_v13 = vmul.f32 %v2866_v31, %v2866_v31 }
 0x6c5   : >> { %v2891_v57 = vsel %vm1209_vm3, %v2880_v13, 0.0  ;;  %v2503_v13 = vmul.f32 0.5, %v2502_v9 }
 0x6c6   : >> { %v2892_v7 = vadd.f32 %v2891_v57, %v2890_v48 }
 0x6ca   : >> { %v2868_v11 = vpop.f32.mrf.mxu3 }
 0x6cb   : >> { %v2881_v62 = vmul.f32 %v2868_v11, %v2868_v11 }
 0x6cd   : >> { %v1960_v37 = vpop.xlane.xlu1 %1959  ;;  %v2893_v24 = vsel %vm1209_vm3, %v2881_v62, 0.0 }
 0x6ce   : >> { %v1961_v50 = vrot.slane %v1960_v37, 4  ;;  %v2894_v54 = vadd.f32 %v2893_v24, %v2892_v7 }
 0x6cf   : >> { %s6209_s24 = spop %4101 }
 0x6d0   : >> { %v1962_v21 = vadd.f32 %v1961_v50, %v1960_v37  ;;  %v2512_v37 = vmul.f32 %v6078_v58, %v2511_v2  ;;  %s6211_s14 = spop %4103 }
 0x6d1   : >> { %s4106_s17 = spop %4105 }
 0x6d2   : >> { %v2871_v12 = vpop.f32.mrf.mxu3  ;;  %v1963_v28 = vrot.slane %v1962_v21, 2  ;;  %v2513_v62 = vmul.f32 0.5, %v2512_v37 }
 0x6d3   : >> { %v2882_v46 = vmul.f32 %v2871_v12, %v2871_v12 }
 0x6d4   : >> { %v1964_v25 = vadd.f32 %v1963_v28, %v1962_v21  ;;  %v2531_v21 = vmul.f32 %v6099_v51, %v6069_v43  ;;  %v2541_v28 = vmul.f32 %v6105_v8, %v6074_v63  ;;  %v2514_v45 = vsub.f32 1.5, %v2513_v62 }
 0x6d5   : >> { %v6093_v55 = vpop.xlane.xlu1 %2348  ;;  %v2895_v60 = vsel %vm1209_vm3, %v2882_v46, 0.0 }
 0x6d6   : >> { %v2429_v31 = vsel %vm1460_vm4, %v6093_v55, 0.0  ;;  %4444 = vrsqrt.f32 %v6093_v55  ;;  %v1965_v11 = vrot.slane %v1964_v25, 1  ;;  %v2896_v12 = vadd.f32 %v2895_v60, %v2894_v54  ;;  %v6797_v54 = vld [vmem:[#allocation30_spill] sm:$0xff] }
 0x6d7   : >> { %v2430_v22 = vadd.f32 %v2429_v31, %v2428_v19  ;;  %v2532_v19 = vmul.f32 %v6099_v51, %v2531_v21  ;;  %v2542_v4 = vmul.f32 %v6105_v8, %v2541_v28  ;;  %v2437_v31 = vsel %vm1460_vm4, %v6069_v43, 0.0 }
 0x6d8   : >> { %v1966_v50 = vadd.f32 %v1965_v11, %v1964_v25  ;;  %v2504_v25 = vsub.f32 1.5, %v2503_v13  ;;  %v2439_v11 = vsel %vm1460_vm4, %v6074_v63, 0.0  ;;  %v2515_v1 = vmul.f32 %v6078_v58, %v2514_v45 }
 0x6d9   : >> { %v2432_v32 = vadd.f32 %v2431_v34, %v2430_v22  ;;  %v2550_v22 = vmul.f32 %v2479_v59, %v5600_v0  ;;  %v2533_v34 = vmul.f32 0.5, %v2532_v19  ;;  %vm2496_vm15 = vweird.f32 %v6093_v55 }
 0x6da   : >> { %v2873_v39 = vpop.f32.mrf.mxu3  ;;  %4107 = vpush %v1966_v50  ;;  %v2505_v37 = vmul.f32 %v6067_v44, %v2504_v25 }
 0x6db   : >> { %v2883_v52 = vmul.f32 %v2873_v39, %v2873_v39  ;;  %v2434_v57 = vadd.f32 %v2433_v29, %v2432_v32  ;;  %v2551_v32 = vmul.f32 %v2489_v49, %v6797_v54  ;;  %v2543_v39 = vmul.f32 0.5, %v2542_v4 }
 0x6dc   : >> { %v4445_v6 = vpop.eup %4444  ;;  %v2509_v29 = vsel %vm6149_vm14, %v6067_v44, %v2505_v37  ;;  %v2534_v3 = vsub.f32 1.5, %v2533_v34  ;;  %v6805_v37 = vld [vmem:[#allocation22_spill] sm:$0xff] }
 0x6dd   : >> { %v2897_v33 = vsel %vm1209_vm3, %v2883_v52, 0.0  ;;  %v2491_v42 = vmul.f32 %v4445_v6, %v6093_v55  ;;  %v6120_v2 = vpop.xlane.xlu1 %2357  ;;  %vm2497_vm11 = vweird.f32 %v4445_v6  ;;  %v2558_v52 = vsel %vm1209_vm3, %v2550_v22, 0.0 }
 0x6de   : >> { %v2898_v17 = vadd.f32 %v2897_v33, %v2896_v12  ;;  %v2435_v9 = vsel %vm1460_vm4, %v6120_v2, 0.0  ;;  %4446 = vrsqrt.f32 %v6120_v2  ;;  %vm2498_vm5 = vmor %vm2496_vm15, %vm2497_vm11  ;;  %v2559_v55 = vsel %vm1209_vm3, %v2551_v32, 0.0 }
 0x6df   : >> { %v2492_v48 = vmul.f32 %v4445_v6, %v2491_v42  ;;  %v2436_v24 = vadd.f32 %v2435_v9, %v2434_v57  ;;  %v2544_v28 = vsub.f32 1.5, %v2543_v39  ;;  %v2519_v42 = vsel %vm6164_vm9, %v6078_v58, %v2515_v1  ;;  %v6802_v9 = vld [vmem:[#allocation29_spill] sm:$0xff]  ;;  %vm2548_vm15 = vmor %vm2546_vm12, %vm2547_vm8 }
 0x6e0   : >> { %2899 = vadd.xlane.f32.xlu0 %v2898_v17  ;;  %v2560_v17 = vadd.f32 %v2559_v55, %v2558_v52  ;;  %v2553_v61 = vmul.f32 %v2509_v29, %v5586_v16  ;;  %vm2536_vm11 = vweird.f32 %v6069_v43  ;;  %v2554_v16 = vmul.f32 %v2519_v42, %v6802_v9 }
 0x6e1   : >> { %v2493_v20 = vmul.f32 0.5, %v2492_v48  ;;  %v2438_v7 = vadd.f32 %v2437_v31, %v2436_v24  ;;  %v2545_v19 = vmul.f32 %v6105_v8, %v2544_v28  ;;  %vm2538_vm14 = vmor %vm2536_vm11, %vm2537_vm10  ;;  %v4225_v39 = vpack.i.bf16 %v5824_v36, %v5814_v56  ;;  %v6810_v36 = vld [vmem:[#allocation34_spill] sm:$0xff] }
 0x6e2   : >> { %v2563_v59 = vsel %vm1209_vm3, %v2553_v61, 0.0  ;;  %v2565_v63 = vsel %vm1209_vm3, %v2554_v16, 0.0 }
 0x6e3   : >> { %v2494_v60 = vsub.f32 1.5, %v2493_v20  ;;  %v2440_v50 = vadd.f32 %v2439_v11, %v2438_v7  ;;  %v2549_v43 = vsel %vm2548_vm15, %v6105_v8, %v2545_v19  ;;  %v2820_v11 = vmul.f32 %v5785_v47, %v5785_v47  ;;  %v6803_v7 = vld [vmem:[#allocation28_spill] sm:$0xff] }
 0x6e4   : >> { %v4447_v13 = vpop.eup %4446 }
 0x6e5   : >> { %v2495_v21 = vmul.f32 %v4445_v6, %v2494_v60  ;;  %2441 = vadd.xlane.f32.xlu1 %v2440_v50  ;;  %v2521_v41 = vmul.f32 %v4447_v13, %v6120_v2  ;;  %vm2527_vm13 = vweird.f32 %v4447_v13  ;;  %v2838_v34 = vsel %vm1209_vm3, %v2820_v11, 0.0 }
 0x6e7   : >> { %v2499_v12 = vsel %vm2498_vm5, %v4445_v6, %v2495_v21  ;;  %v2522_v33 = vmul.f32 %v4447_v13, %v2521_v41  ;;  %v2535_v6 = vmul.f32 %v6099_v51, %v2534_v3  ;;  %vm2526_vm5 = vweird.f32 %v6120_v2  ;;  %v6804_v2 = vld [vmem:[#allocation23_spill] sm:$0xff]  ;;  %v2765_v21 = vpop.permute.xlu2 %2764 }
 0x6e8   : >> { %v2552_v44 = vmul.f32 %v2499_v12, %v5596_v26  ;;  %v2829_v26 = vsel %vm1209_vm3, %v2817_v10, 0.0  ;;  %vm2528_vm6 = vmor %vm2526_vm5, %vm2527_vm13  ;;  %v6806_v8 = vpack.i.bf16 %v6804_v2, %v6805_v37  ;;  %v6807_v12 = vld [vmem:[#allocation36_spill] sm:$0xff]  ;;  %v6808_v10 = vld [vmem:[#allocation35_spill] sm:$0xff] }
 0x6e9   : >> { %v2523_v46 = vmul.f32 0.5, %v2522_v33  ;;  %v2539_v48 = vsel %vm2538_vm14, %v6099_v51, %v2535_v6  ;;  %v2557_v51 = vmul.f32 %v2549_v43, %v6803_v7  ;;  %v6809_v55 = vpack.i.bf16 %v6807_v12, %v6808_v10  ;;  %v6812_v43 = vld [vmem:[#allocation32_spill] sm:$0xff] }
 0x6ea   : >> { %v2561_v57 = vsel %vm1209_vm3, %v2552_v44, 0.0  ;;  %v2556_v49 = vmul.f32 %v2539_v48, %v5551_v14  ;;  %v4245_v44 = vpack.i.bf16 %v6045_v18, %v6040_v27 }
 0x6eb   : >> { %v2562_v25 = vadd.f32 %v2561_v57, %v2560_v17  ;;  %v2524_v58 = vsub.f32 1.5, %v2523_v46  ;;  %v2571_v54 = vsel %vm1209_vm3, %v2557_v51, 0.0  ;;  %v6811_v57 = vld [vmem:[#allocation33_spill] sm:$0xff]  ;;  %v6813_v51 = vld [vmem:[#allocation31_spill] sm:$0xff] }
 0x6ec   : >> { %v2569_v14 = vsel %vm1209_vm3, %v2556_v49, 0.0 }
 0x6ed   : >> { %2830 = vadd.xlane.f32.xlu1 %v2829_v26  ;;  %v2564_v24 = vadd.f32 %v2563_v59, %v2562_v25  ;;  %v2525_v4 = vmul.f32 %v4447_v13, %v2524_v58 }
 0x6ef   : >> { %v2529_v31 = vsel %vm2528_vm6, %v4447_v13, %v2525_v4  ;;  %v2566_v20 = vadd.f32 %v2565_v63, %v2564_v24  ;;  %v2767_v13 = vpop.permute.xlu0 %2766  ;;  %v2418_v42 = vpop.xlane.xlu2 %2417 }
 0x6f0   : >> { %v2555_v45 = vmul.f32 %v2529_v31, %v5565_v30  ;;  %v2419_v6 = vrot.slane %v2418_v42, 4 }
 0x6f2   : >> { %v2567_v22 = vsel %vm1209_vm3, %v2555_v45, 0.0  ;;  %v2420_v18 = vadd.f32 %v2419_v6, %v2418_v42 }
 0x6f3   : >> { %v2568_v60 = vadd.f32 %v2567_v22, %v2566_v20 }
 0x6f4   : >> { %4211 = vrot.lane.b32.xlu0 %v6806_v8, %s6738_s1  ;;  %v2421_v19 = vrot.slane %v2420_v18, 2 }
 0x6f5   : >> { %v2769_v50 = vpop.permute.xlu1 %2768  ;;  %2839 = vadd.xlane.f32.xlu1 %v2838_v34  ;;  %v2570_v30 = vadd.f32 %v2569_v14, %v2568_v60  ;;  %v6814_v14 = vld [vmem:[#allocation13_spill] sm:$0xff] }
 0x6f6   : >> { %2790 = vmatpush.bf16.msra.mxu2 %v2769_v50  ;;  %v2422_v48 = vadd.f32 %v2421_v19, %v2420_v18  ;;  %v1626_v50 = vstv %s6211_s14 }
 0x6f7   : >> { %v2572_v32 = vadd.f32 %v2571_v54, %v2570_v30  ;;  %v2100_v33 = vpop.xlane.xlu0 %2099  ;;  %v6226_v2 = vpop.xlane.xlu2 %2827  ;;  %v1627_v30 = vadd.f32 %v6814_v14, %v1626_v50 }
 0x6f8   : >> { %v2101_v61 = vrot.slane %v2100_v33, 4  ;;  %v2423_v11 = vrot.slane %v2422_v48, 1  ;;  %vm2968_vm14 = vweird.f32 %v6226_v2 }
 0x6f9   : >> { %v2573_v1 = vrot.slane %v2572_v32, 4 }
 0x6fa   : >> { %2791 = vmatpush.bf16.msra.mxu2 %v2767_v13  ;;  %v2102_v27 = vadd.f32 %v2101_v61, %v2100_v33  ;;  %v2424_v7 = vadd.f32 %v2423_v11, %v2422_v48 }
 0x6fb   : >> { %v2574_v0 = vadd.f32 %v2573_v1, %v2572_v32 }
 0x6fc   : >> { %4226 = vrot.lane.b32.xlu0 %v4225_v39, %s6738_s1  ;;  %v2103_v26 = vrot.slane %v2102_v27, 2  ;;  %v1503_v39 = vstv %s6209_s24  ;;  %s6824_s24 = smov 16  }
 0x6fd   : >> { %v2575_v52 = vrot.slane %v2574_v0, 2  ;;  %v2763_v29 = vpop.permute.xlu1 %2762 }
 0x6fe   : >> { %2792 = vmatpush.bf16.msra.mxu2 %v2765_v21  ;;  %v2104_v16 = vadd.f32 %v2103_v26, %v2102_v27 }
 0x6ff   : >> { %v2576_v3 = vadd.f32 %v2575_v52, %v2574_v0  ;;  %v6224_v22 = vpop.xlane.xlu0 %2824  ;;  %v6232_v8 = vpop.xlane.xlu2 %2836 }
 0x700   : >> { %v2105_v4 = vrot.slane %v2104_v16, 1  ;;  %v2908_v33 = vsel %vm1460_vm4, %v6224_v22, 0.0  ;;  %v2915_v50 = vsel %vm1460_vm4, %v6232_v8, 0.0  ;;  %vm2958_vm13 = vweird.f32 %v6224_v22 }
 0x701   : >> { %v2577_v41 = vrot.slane %v2576_v3, 1 }
 0x702   : >> { %2793 = vmatpush.bf16.msra.mxu2 %v2763_v29  ;;  %v2106_v20 = vadd.f32 %v2105_v4, %v2104_v16  ;;  %v6815_v29 = vld [vmem:[#allocation12_spill] sm:$0xff] }
 0x703   : >> { %v2578_v56 = vadd.f32 %v2577_v41, %v2576_v3  ;;  %v1504_v3 = vadd.f32 %v6815_v29, %v1503_v39  ;;  %v3925_v41 = vadd.f32 -128.0, %v1627_v30 }
 0x704   : >> { %4231 = vrot.lane.b32.xlu0 %v6809_v55, %s4578_s20 }
 0x705   : >> { %3956 = vmatmul.msk.bf16.vlgmr.msra.gmra.mxu2 %vm1209_vm3, %v6810_v36  ;;  %v2579_v62 = vmul.f32 %v2578_v56, %v2578_v56 }
 0x707   : >> { %v2580_v28 = vsel %vm1615_vm7, %v2579_v62, 0.0  ;;  %v6230_v37 = vpop.xlane.xlu0 %2833  ;;  %v6251_v21 = vpop.xlane.xlu2 %2845 }
 0x708   : >> { %2581 = vadd.xlane.f32.xlu1 %v2580_v28  ;;  %vm2988_vm6 = vweird.f32 %v6230_v37 }
 0x70b   : >> { %s4108_s15 = spop %4107 }
 0x70c   : >> { %4246 = vrot.lane.b32.xlu0 %v4245_v44, %s4578_s20  ;;  %s1968_s22 = smul.f32 2.0, %s4108_s15 }
 0x70e   : >> { %s1969_s23 = ssub.f32 %s4106_s17, %s1968_s22  ;;  %s4579_s22 = smov 48  }
 0x70f   : >> { %v6249_v1 = vpop.xlane.xlu0 %2842 }
 0x710   : >> { %s1970_s1 = sadd.f32 64.0, %s1969_s23 }
 0x712   : >> { %s1971_s2 = smax.f32 %s4576_s0, %s1970_s1 }
 0x713   : >> { %v1972_v17 = vstv %s1971_s2 }
 0x714   : >> { %4448 = vrsqrt.f32 %v1972_v17  ;;  %vm1980_vm9 = vcmp.eq.f32.partialorder %v1972_v17, inf  ;;  %v1983_v63 = vand.u32 2147483648, %v1972_v17  ;;  %vm1982_vm10 = vcmp.eq.f32.partialorder %v1972_v17, 0.0 }
 0x715   : >> { %3957 = vmatmul.msk.bf16.gmra.mxu2 %vm1209_vm3, %v6811_v57  ;;  %4450 = vrsqrt.f32 %v6226_v2  ;;  %v2909_v57 = vsel %vm1460_vm4, %v6226_v2, 0.0 }
 0x716   : >> { %4452 = vrsqrt.f32 %v6224_v22 }
 0x717   : >> { %4454 = vrsqrt.f32 %v6230_v37 }
 0x718   : >> { %4456 = vrsqrt.f32 %v6232_v8 }
 0x719   : >> { %4458 = vrsqrt.f32 %v6249_v1 }
 0x71a   : >> { %v4449_v46 = vpop.eup %4448  ;;  %4460 = vrsqrt.f32 %v6251_v21 }
 0x71b   : >> { %v1974_v25 = vmul.f32 %v4449_v46, %v1972_v17  ;;  %v6234_v34 = vpop.eup %4450 }
 0x71c   : >> { %v6237_v60 = vpop.eup %4452  ;;  %v2963_v54 = vmul.f32 %v6234_v34, %v6226_v2  ;;  %vm2969_vm8 = vweird.f32 %v6234_v34  ;;  %v2919_v2 = vsel %vm1460_vm4, %v6249_v1, 0.0 }
 0x71d   : >> { %v1975_v58 = vmul.f32 %v4449_v46, %v1974_v25  ;;  %v2953_v32 = vmul.f32 %v6237_v60, %v6224_v22  ;;  %v6247_v13 = vpop.eup %4454  ;;  %v2910_v25 = vadd.f32 %v2909_v57, %v2908_v33  ;;  %vm2959_vm11 = vweird.f32 %v6237_v60  ;;  %vm6314_vm15 = vmor %vm2968_vm14, %vm2969_vm8 }
 0x71e   : >> { %v2964_v12 = vmul.f32 %v6234_v34, %v2963_v54  ;;  %v2983_v55 = vmul.f32 %v6247_v13, %v6230_v37  ;;  %v6259_v62 = vpop.eup %4456  ;;  %vm6301_vm12 = vmor %vm2958_vm13, %vm2959_vm11  ;;  %vm2989_vm5 = vweird.f32 %v6247_v13  ;;  %vm2998_vm11 = vweird.f32 %v6232_v8 }
 0x71f   : >> { %v1976_v9 = vmul.f32 0.5, %v1975_v58  ;;  %v2954_v10 = vmul.f32 %v6237_v60, %v2953_v32  ;;  %v2993_v27 = vmul.f32 %v6259_v62, %v6232_v8  ;;  %v6275_v19 = vpop.eup %4458  ;;  %vm2999_vm8 = vweird.f32 %v6259_v62 }
 0x720   : >> { %v2965_v61 = vmul.f32 0.5, %v2964_v12  ;;  %v2984_v18 = vmul.f32 %v6247_v13, %v2983_v55  ;;  %v6280_v16 = vpop.eup %4460  ;;  %vm3019_vm14 = vweird.f32 %v6275_v19 }
 0x721   : >> { %v1977_v59 = vsub.f32 1.5, %v1976_v9  ;;  %v2955_v6 = vmul.f32 0.5, %v2954_v10  ;;  %v2994_v4 = vmul.f32 %v6259_v62, %v2993_v27 }
 0x723   : >> { %v1978_v24 = vmul.f32 %v4449_v46, %v1977_v59  ;;  %v2966_v59 = vsub.f32 1.5, %v2965_v61  ;;  %v2956_v48 = vsub.f32 1.5, %v2955_v6  ;;  %v2995_v14 = vmul.f32 0.5, %v2994_v4 }
 0x724   : >> { %v2921_v6 = vsel %vm1460_vm4, %v6251_v21, 0.0 }
 0x725   : >> { %3958 = vmatmul.msk.bf16.gmra.mxu2 %vm1209_vm3, %v6812_v43  ;;  %v1979_v31 = vmul.f32 %v1978_v24, %v1972_v17  ;;  %v2913_v43 = vsel %vm1460_vm4, %v6230_v37, 0.0  ;;  %v2996_v55 = vsub.f32 1.5, %v2995_v14 }
 0x727   : >> { %v1981_v49 = vsel %vm1980_vm9, %v1972_v17, %v1979_v31  ;;  %v2985_v31 = vmul.f32 0.5, %v2984_v18  ;;  %vm6329_vm9 = vmor %vm2988_vm6, %vm2989_vm5  ;;  %vm3018_vm5 = vweird.f32 %v6249_v1 }
 0x728   : >> { %v1984_v45 = vsel %vm1982_vm10, %v1983_v63, %v1981_v49  ;;  %v3013_v63 = vmul.f32 %v6275_v19, %v6249_v1 }
 0x729   : >> { %4109 = vpush %v1984_v45  ;;  %v3023_v45 = vmul.f32 %v6280_v16, %v6251_v21  ;;  %v2986_v30 = vsub.f32 1.5, %v2985_v31 }
 0x72a   : >> { %4111 = vpush %v2106_v20  ;;  %v2957_v20 = vmul.f32 %v6237_v60, %v2956_v48  ;;  %v3014_v54 = vmul.f32 %v6275_v19, %v3013_v63 }
 0x72b   : >> { %4113 = vpush %v2424_v7 }
 0x72c   : >> { %v2961_v22 = vsel %vm6301_vm12, %v6237_v60, %v2957_v20  ;;  %vm6344_vm12 = vmor %vm2998_vm11, %vm2999_vm8 }
 0x72d   : >> { %v3032_v61 = vmul.f32 %v2961_v22, %v5807_v35 }
 0x735   : >> { %3959 = vmatmul.msk.bf16.gmra.mxu2 %vm1209_vm3, %v6813_v51  ;;  %v2967_v51 = vmul.f32 %v6234_v34, %v2966_v59 }
 0x737   : >> { %v2971_v60 = vsel %vm6314_vm15, %v6234_v34, %v2967_v51  ;;  %vm3029_vm15 = vweird.f32 %v6280_v16 }
 0x738   : >> { %v3033_v34 = vmul.f32 %v2971_v60, %v5812_v15  ;;  %v3040_v15 = vsel %vm1209_vm3, %v3032_v61, 0.0  ;;  %v6828_v60 = vld [vmem:[#allocation38_spill] sm:$0xff] }
 0x73a   : >> { %v3041_v4 = vsel %vm1209_vm3, %v3033_v34, 0.0 }
 0x73b   : >> { %v3042_v31 = vadd.f32 %v3041_v4, %v3040_v15 }
 0x758   : >> { %v2442_v0 = vpop.xlane.xlu1 %2441 }
 0x759   : >> { %v2443_v52 = vrot.slane %v2442_v0, 4 }
 0x75a   : >> { %s4110_s2 = spop %4109 }
 0x75b   : >> { %v2444_v56 = vadd.f32 %v2443_v52, %v2442_v0  ;;  %v1986_v36 = vstv %s4110_s2  ;;  %s4112_s1 = spop %4111  ;;  %v3024_v52 = vmul.f32 %v6280_v16, %v3023_v45 }
 0x75c   : >> { %v6262_v28 = vadd.f32 %v1986_v36, %v1504_v3  ;;  %v2108_v44 = vstv %s4112_s1  ;;  %v3015_v36 = vmul.f32 0.5, %v3014_v54  ;;  %s4114_s14 = spop %4113 }
 0x75d   : >> { %v2445_v42 = vrot.slane %v2444_v56, 2  ;;  %v6266_v17 = vadd.f32 %v3925_v41, %v2108_v44 }
 0x75e   : >> { %v3016_v37 = vsub.f32 1.5, %v3015_v36  ;;  %v6829_v36 = vld [vmem:[#allocation37_spill] sm:$0xff] }
 0x75f   : >> { %v2446_v46 = vadd.f32 %v2445_v42, %v2444_v56  ;;  %v2987_v56 = vmul.f32 %v6247_v13, %v2986_v30  ;;  %v3025_v42 = vmul.f32 0.5, %v3024_v52 }
 0x760   : >> { %v6273_v26 = vpop.xlane.xlu1 %2830 }
 0x761   : >> { %v2911_v58 = vsel %vm1460_vm4, %v6273_v26, 0.0  ;;  %4462 = vrsqrt.f32 %v6273_v26  ;;  %v2447_v9 = vrot.slane %v2446_v46, 1  ;;  %v2991_v35 = vsel %vm6329_vm9, %v6247_v13, %v2987_v56 }
 0x762   : >> { %v2912_v24 = vadd.f32 %v2911_v58, %v2910_v25  ;;  %v2997_v25 = vmul.f32 %v6259_v62, %v2996_v55  ;;  %v3026_v59 = vsub.f32 1.5, %v3025_v42  ;;  %vm3028_vm9 = vweird.f32 %v6251_v21 }
 0x763   : >> { %v2448_v11 = vadd.f32 %v2447_v9, %v2446_v46  ;;  %vm3030_vm8 = vmor %vm3028_vm9, %vm3029_vm15 }
 0x764   : >> { %v2914_v49 = vadd.f32 %v2913_v43, %v2912_v24  ;;  %v3035_v43 = vmul.f32 %v2991_v35, %v5799_v38 }
 0x765   : >> { %4115 = vpush %v2448_v11  ;;  %v3017_v11 = vmul.f32 %v6275_v19, %v3016_v37 }
 0x766   : >> { %v2916_v0 = vadd.f32 %v2915_v50, %v2914_v49  ;;  %v3027_v49 = vmul.f32 %v6280_v16, %v3026_v59 }
 0x767   : >> { %v4463_v7 = vpop.eup %4462 }
 0x768   : >> { %v2973_v32 = vmul.f32 %v4463_v7, %v6273_v26  ;;  %v6298_v39 = vpop.xlane.xlu1 %2839  ;;  %vm2979_vm10 = vweird.f32 %v4463_v7  ;;  %v3031_v1 = vsel %vm3030_vm8, %v6280_v16, %v3027_v49 }
 0x769   : >> { %v2917_v3 = vsel %vm1460_vm4, %v6298_v39, 0.0  ;;  %4464 = vrsqrt.f32 %v6298_v39  ;;  %vm2978_vm4 = vweird.f32 %v6273_v26  ;;  %v3001_v26 = vsel %vm6344_vm12, %v6259_v62, %v2997_v25 }
 0x76a   : >> { %v2974_v41 = vmul.f32 %v4463_v7, %v2973_v32  ;;  %v2918_v12 = vadd.f32 %v2917_v3, %v2916_v0  ;;  %vm2980_vm13 = vmor %vm2978_vm4, %vm2979_vm10  ;;  %v3036_v38 = vmul.f32 %v3001_v26, %v5782_v5  ;;  %vm3008_vm4 = vweird.f32 %v6298_v39  ;;  %v6831_v26 = vld [vmem:[#allocation27_spill] sm:$0xff] }
 0x76b   : >> { %vm3020_vm10 = vmor %vm3018_vm5, %vm3019_vm14  ;;  %v3039_v32 = vmul.f32 %v3031_v1, %v5766_v40  ;;  %v6834_v1 = vld [vmem:[#allocation40_spill] sm:$0xff]  ;;  %vm3187_vm12 = vcmask 392192  }
 0x76c   : >> { %v2975_v44 = vmul.f32 0.5, %v2974_v41  ;;  %v2920_v33 = vadd.f32 %v2919_v2, %v2918_v12  ;;  %v3047_v30 = vsel %vm1209_vm3, %v3036_v38, 0.0  ;;  %v6825_v12 = vld [vmem:[#allocation25_spill] sm:$0xff] }
 0x76e   : >> { %v2976_v27 = vsub.f32 1.5, %v2975_v44  ;;  %v2922_v18 = vadd.f32 %v2921_v6, %v2920_v33  ;;  %v6830_v44 = vpack.i.bf16 %v6828_v60, %v6829_v36 }
 0x76f   : >> { %v4465_v46 = vpop.eup %4464 }
 0x770   : >> { %v2977_v58 = vmul.f32 %v4463_v7, %v2976_v27  ;;  %v3003_v9 = vmul.f32 %v4465_v46, %v6298_v39  ;;  %2923 = vadd.xlane.f32.xlu2 %v2922_v18  ;;  %vm3009_vm6 = vweird.f32 %v4465_v46  ;;  %v3053_v39 = vsel %vm1209_vm3, %v3039_v32, 0.0  ;;  %v2900_v27 = vpop.xlane.xlu0 %2899 }
 0x771   : >> { %vm3010_vm11 = vmor %vm3008_vm4, %vm3009_vm6  ;;  %v2901_v34 = vrot.slane %v2900_v27, 4 }
 0x772   : >> { %v2981_v24 = vsel %vm2980_vm13, %v4463_v7, %v2977_v58  ;;  %v3004_v13 = vmul.f32 %v4465_v46, %v3003_v9  ;;  %v3021_v7 = vsel %vm3020_vm10, %v6275_v19, %v3017_v11 }
 0x773   : >> { %v3034_v8 = vmul.f32 %v2981_v24, %v5794_v53  ;;  %v3045_v53 = vsel %vm1209_vm3, %v3035_v43, 0.0  ;;  %v3038_v5 = vmul.f32 %v3021_v7, %v5769_v23  ;;  %v6826_v23 = vld [vmem:[#allocation24_spill] sm:$0xff]  ;;  %v2902_v37 = vadd.f32 %v2901_v34, %v2900_v27  ;;  %v6832_v43 = vld [vmem:[#allocation26_spill] sm:$0xff] }
 0x774   : >> { %v3005_v63 = vmul.f32 0.5, %v3004_v13  ;;  %v6827_v10 = vpack.i.bf16 %v6825_v12, %v6826_v23 }
 0x775   : >> { %v3043_v45 = vsel %vm1209_vm3, %v3034_v8, 0.0  ;;  %v3051_v52 = vsel %vm1209_vm3, %v3038_v5, 0.0  ;;  %v2903_v15 = vrot.slane %v2902_v37, 2  ;;  %v6833_v8 = vpack.i.bf16 %v6831_v26, %v6832_v43  ;;  %v6839_v26 = vld [vmem:[#allocation20_spill] sm:$0xff] }
 0x776   : >> { %v3044_v20 = vadd.f32 %v3043_v45, %v3042_v31  ;;  %v3006_v62 = vsub.f32 1.5, %v3005_v63 }
 0x777   : >> { %v2904_v11 = vadd.f32 %v2903_v15, %v2902_v37 }
 0x778   : >> { %v3046_v51 = vadd.f32 %v3045_v53, %v3044_v20  ;;  %v3007_v50 = vmul.f32 %v4465_v46, %v3006_v62 }
 0x779   : >> { %v2905_v62 = vrot.slane %v2904_v11, 1 }
 0x77a   : >> { %v3011_v14 = vsel %vm3010_vm11, %v4465_v46, %v3007_v50  ;;  %v3048_v54 = vadd.f32 %v3047_v30, %v3046_v51 }
 0x77b   : >> { %v3037_v21 = vmul.f32 %v3011_v14, %v5785_v47  ;;  %v2582_v57 = vpop.xlane.xlu1 %2581  ;;  %v6835_v14 = vld [vmem:[#allocation39_spill] sm:$0xff]  ;;  %v2906_v5 = vadd.f32 %v2905_v62, %v2904_v11 }
 0x77c   : >> { %v2583_v46 = vrot.slane %v2582_v57, 4  ;;  %v6836_v30 = vpack.i.bf16 %v6834_v1, %v6835_v14 }
 0x77d   : >> { %v3049_v0 = vsel %vm1209_vm3, %v3037_v21, 0.0 }
 0x77e   : >> { %v3050_v19 = vadd.f32 %v3049_v0, %v3048_v54  ;;  %v2584_v35 = vadd.f32 %v2583_v46, %v2582_v57 }
 0x780   : >> { %v3052_v29 = vadd.f32 %v3051_v52, %v3050_v19  ;;  %v2585_v59 = vrot.slane %v2584_v35, 2  ;;  %v4212_v19 = vpop.permute.xlu0 %4211 }
 0x781   : >> { %v4214_v60 = vunpack.i.h.bf16 %v4212_v19  ;;  %v4213_v36 = vunpack.i.l.bf16 %v4212_v19  ;;  %v6842_v19 = vld [vmem:[#allocation19_spill] sm:$0xff] }
 0x782   : >> { %v3054_v3 = vadd.f32 %v3053_v39, %v3052_v29  ;;  %v2586_v4 = vadd.f32 %v2585_v59, %v2584_v35  ;;  %v3938_v39 = vadd.f32 -128.0, %v6266_v17 }
 0x784   : >> { %v3055_v16 = vrot.slane %v3054_v3, 4  ;;  %v2587_v49 = vrot.slane %v2586_v4, 1 }
 0x786   : >> { %v3056_v22 = vadd.f32 %v3055_v16, %v3054_v3  ;;  %v2588_v50 = vadd.f32 %v2587_v49, %v2586_v4 }
 0x788   : >> { %v2795_v41 = vpop.f32.mrf.mxu2  ;;  %4216 = vrot.lane.b32.xlu2 %v6827_v10, %s6824_s24  ;;  %v3057_v47 = vrot.slane %v3056_v22, 2 }
 0x78a   : >> { %v3058_v55 = vadd.f32 %v3057_v47, %v3056_v22 }
 0x78c   : >> { %v3059_v40 = vrot.slane %v3058_v55, 1 }
 0x78e   : >> { %v3060_v56 = vadd.f32 %v3059_v40, %v3058_v55  ;;  %v4227_v55 = vpop.permute.xlu0 %4226 }
 0x78f   : >> { %v4229_v15 = vunpack.i.h.bf16 %v4227_v55 }
 0x790   : >> { %v2797_v2 = vpop.f32.mrf.mxu2  ;;  %4236 = vrot.lane.b32.xlu2 %v6830_v44, %s4578_s20  ;;  %v3061_v33 = vmul.f32 %v3060_v56, %v3060_v56 }
 0x791   : >> { %v4250_v61 = vpack.i.bf16 %v2797_v2, %v2795_v41 }
 0x792   : >> { %v3062_v42 = vsel %vm1615_vm7, %v3061_v33, 0.0 }
 0x793   : >> { %3063 = vadd.xlane.f32.xlu1 %v3062_v42  ;;  %v6837_v42 = vld [vmem:[#allocation14_spill] sm:$0xff] }
 0x796   : >> { %s4116_s17 = spop %4115  ;;  %v4232_v17 = vpop.permute.xlu0 %4231 }
 0x797   : >> { %s2450_s15 = smul.f32 2.0, %s4116_s17  ;;  %v4234_v44 = vunpack.i.h.bf16 %v4232_v17 }
 0x798   : >> { %v2800_v6 = vpop.f32.mrf.mxu2  ;;  %4251 = vrot.lane.b32.xlu2 %v4250_v61, %s4579_s22  ;;  %v3171_v61 = vsel %vm1147_vm2, %v6837_v42, %v4213_v36  ;;  %v6844_v42 = vld [vmem:[#allocation17_spill] sm:$0xff] }
 0x799   : >> { %s2451_s23 = ssub.f32 %s4114_s14, %s2450_s15  ;;  %s6414_s14 = scalar_lea.vmem [#allocation5], %s4922_s30 }
 0x79b   : >> { %s2452_s2 = sadd.f32 64.0, %s2451_s23 }
 0x79d   : >> { %s2453_s1 = smax.f32 %s4576_s0, %s2452_s2 }
 0x79e   : >> { %v2454_v18 = vstv %s2453_s1  ;;  %v4247_v59 = vpop.permute.xlu0 %4246 }
 0x79f   : >> { %4466 = vrsqrt.f32 %v2454_v18  ;;  %vm2462_vm7 = vcmp.eq.f32.partialorder %v2454_v18, inf  ;;  %v2465_v53 = vand.u32 2147483648, %v2454_v18  ;;  %vm2464_vm13 = vcmp.eq.f32.partialorder %v2454_v18, 0.0 }
 0x7a0   : >> { %v2802_v25 = vpop.f32.mrf.mxu2 }
 0x7a1   : >> { %v4255_v54 = vpack.i.bf16 %v2802_v25, %v2800_v6  ;;  %v6838_v6 = vld [vmem:[#allocation15_spill] sm:$0xff] }
 0x7a2   : >> { %v3172_v57 = vsel %vm1147_vm2, %v6838_v6, %v4214_v60 }
 0x7a3   : >> { %v3180_v34 = vsel %vm597_vm0, %v3172_v57, %v4234_v44 }
 0x7a5   : >> { %v4467_v58 = vpop.eup %4466 }
 0x7a6   : >> { %v2456_v9 = vmul.f32 %v4467_v58, %v2454_v18 }
 0x7a8   : >> { %v2805_v48 = vpop.f32.mrf.mxu2  ;;  %v2457_v24 = vmul.f32 %v4467_v58, %v2456_v9 }
 0x7aa   : >> { %v2458_v13 = vmul.f32 0.5, %v2457_v24  ;;  %v4249_v24 = vunpack.i.h.bf16 %v4247_v59 }
 0x7ac   : >> { %4221 = vrot.lane.b32.xlu1 %v6833_v8, %s6824_s24  ;;  %v2459_v31 = vsub.f32 1.5, %v2458_v13  ;;  %v4248_v13 = vunpack.i.l.bf16 %v4247_v59  ;;  %v6840_v8 = vld [vmem:[#allocation21_spill] sm:$0xff] }
 0x7ae   : >> { %v2460_v63 = vmul.f32 %v4467_v58, %v2459_v31  ;;  %v3178_v31 = vsel %vm1147_vm2, %v6840_v8, %v4229_v15 }
 0x7b0   : >> { %v2807_v45 = vpop.f32.mrf.mxu2  ;;  %v2461_v20 = vmul.f32 %v2460_v63, %v2454_v18 }
 0x7b1   : >> { %v4260_v38 = vpack.i.bf16 %v2807_v45, %v2805_v48  ;;  %v4228_v48 = vunpack.i.l.bf16 %v4227_v55 }
 0x7b2   : >> { %v2463_v7 = vsel %vm2462_vm7, %v2454_v18, %v2461_v20  ;;  %v3186_v20 = vsel %vm597_vm0, %v3178_v31, %v4249_v24 }
 0x7b3   : >> { %4261 = vrot.lane.b32.xlu0 %v4260_v38, %s4579_s22  ;;  %v2466_v51 = vsel %vm2464_vm13, %v2465_v53, %v2463_v7  ;;  %v3177_v43 = vsel %vm1147_vm2, %v6839_v26, %v4228_v48 }
 0x7b4   : >> { %4117 = vpush %v2466_v51  ;;  %4241 = vrot.lane.b32.xlu1 %v6836_v30, %s4578_s20  ;;  %v3185_v45 = vsel %vm597_vm0, %v3177_v43, %v4248_v13 }
 0x7b5   : >> { %4119 = vpush %v2588_v50 }
 0x7b6   : >> { %4121 = vpush %v2906_v5 }
 0x7b8   : >> { %v2810_v21 = vpop.f32.mrf.mxu2 }
 0x7bc   : >> { %4256 = vrot.lane.b32.xlu1 %v4255_v54, %s4579_s22 }
 0x7c0   : >> { %v2812_v32 = vpop.f32.mrf.mxu2 }
 0x7c1   : >> { %v4265_v0 = vpack.i.bf16 %v2812_v32, %v2810_v21  ;;  %v6841_v32 = vld [vmem:[#allocation18_spill] sm:$0xff] }
 0x7c3   : >> { %4266 = vrot.lane.b32.xlu2 %v4265_v0, %s4579_s22 }
 0x7e3   : >> { %v2924_v52 = vpop.xlane.xlu2 %2923 }
 0x7e4   : >> { %v2925_v29 = vrot.slane %v2924_v52, 4 }
 0x7e5   : >> { %s4118_s24 = spop %4117 }
 0x7e6   : >> { %v2926_v3 = vadd.f32 %v2925_v29, %v2924_v52  ;;  %v2468_v16 = vstv %s4118_s24  ;;  %s4120_s20 = spop %4119 }
 0x7e7   : >> { %v6397_v22 = vadd.f32 %v2468_v16, %v6262_v28  ;;  %v2590_v41 = vstv %s4120_s20  ;;  %v4233_v28 = vunpack.i.l.bf16 %v4232_v17  ;;  %s4122_s30 = spop %4121 }
 0x7e8   : >> { %v2927_v12 = vrot.slane %v2926_v3, 2  ;;  %v6399_v23 = vadd.f32 %v3938_v39, %v2590_v41 }
 0x7e9   : >> { %v3179_v46 = vsel %vm597_vm0, %v3171_v61, %v4233_v28  ;;  %v6843_v28 = vld [vmem:[#allocation16_spill] sm:$0xff] }
 0x7ea   : >> { %v2928_v10 = vadd.f32 %v2927_v12, %v2926_v3  ;;  %v3951_v31 = vadd.f32 -128.0, %v6399_v23  ;;  %v4077_v23 = vld [vmem:[%s6712_s10 + $0x10] sm:$0xff] (%p1068_p11) }
 0x7eb   : >> { %v6401_v47 = vpop.permute.xlu2 %4216 }
 0x7ec   : >> { %v2929_v40 = vrot.slane %v2928_v10, 1  ;;  %v4218_v55 = vunpack.i.l.bf16 %v6401_v47 }
 0x7ee   : >> { %v2930_v56 = vadd.f32 %v2929_v40, %v2928_v10  ;;  %v4219_v10 = vunpack.i.h.bf16 %v6401_v47 }
 0x7f0   : >> { %4123 = vpush %v2930_v56  ;;  %v3174_v47 = vsel %vm1147_vm2, %v6844_v42, %v4219_v10  ;;  %v3392_v10 = vld [vmem:[%s4726_s21 + $0x60] sm:$0xff] (%p1068_p11) }
 0x7f3   : >> { %v6403_v2 = vpop.permute.xlu2 %4236 }
 0x7f4   : >> { %v4239_v17 = vunpack.i.h.bf16 %v6403_v2  ;;  %v4238_v60 = vunpack.i.l.bf16 %v6403_v2 }
 0x7f6   : >> { %v3182_v2 = vsel %vm597_vm0, %v3174_v47, %v4239_v17  ;;  %v3381_v17 = vld [vmem:[%s4726_s21 + $0x8] sm:$0xff] (%p1068_p11) }
 0x7fb   : >> { %v4252_v33 = vpop.permute.xlu2 %4251 }
 0x7fc   : >> { %v4254_v27 = vunpack.i.h.bf16 %v4252_v33  ;;  %v4253_v18 = vunpack.i.l.bf16 %v4252_v33  ;;  %v3173_v33 = vsel %vm1147_vm2, %v6843_v28, %v4218_v55 }
 0x7fe   : >> { %v3188_v25 = vsel %vm3187_vm12, %v3179_v46, %v4253_v18  ;;  %v3189_v35 = vsel %vm3187_vm12, %v3180_v34, %v4254_v27  ;;  %v3181_v27 = vsel %vm597_vm0, %v3173_v33, %v4238_v60 }
 0x7ff   : >> { %v3196_v37 = vpack.c.bf16 %v3188_v25, %v3188_v25  ;;  %v3197_v58 = vpack.c.bf16 %v3189_v35, %v3189_v35 }
 0x801   : >> { %3206 = vst.msk [vmem:[%s6414_s14] sm:$0xf] %vm687_vm1, %v3196_v37 }
 0x802   : >> { %3207 = vst.msk [vmem:[%s6414_s14 + $0x4] sm:$0xf] %vm687_vm1, %v3197_v58 }
 0x806   : >> { %v3064_v9 = vpop.xlane.xlu1 %3063 }
 0x807   : >> { %v3065_v16 = vrot.slane %v3064_v9, 4 }
 0x809   : >> { %v3066_v36 = vadd.f32 %v3065_v16, %v3064_v9 }
 0x80b   : >> { %v3067_v25 = vrot.slane %v3066_v36, 2 }
 0x80d   : >> { %v3068_v59 = vadd.f32 %v3067_v25, %v3066_v36  ;;  %v3385_v36 = vld [vmem:[%s4726_s21 + $0x28] sm:$0xff] (%p1068_p11)  ;;  %v3382_v25 = vld [vmem:[%s4726_s21 + $0x10] sm:$0xff] (%p1068_p11) }
 0x80f   : >> { %v3069_v24 = vrot.slane %v3068_v59, 1 }
 0x811   : >> { %v3070_v8 = vadd.f32 %v3069_v24, %v3068_v59 }
 0x81d   : >> { %v4267_v4 = vpop.permute.xlu2 %4266 }
 0x81e   : >> { %v4269_v11 = vunpack.i.h.bf16 %v4267_v4  ;;  %v4268_v63 = vunpack.i.l.bf16 %v4267_v4  ;;  %v4222_v49 = vpop.permute.xlu1 %4221 }
 0x81f   : >> { %v4224_v51 = vunpack.i.h.bf16 %v4222_v49  ;;  %v4223_v50 = vunpack.i.l.bf16 %v4222_v49 }
 0x820   : >> { %v3194_v62 = vsel %vm3187_vm12, %v3185_v45, %v4268_v63  ;;  %v3195_v38 = vsel %vm3187_vm12, %v3186_v20, %v4269_v11 }
 0x821   : >> { %v3202_v53 = vpack.c.bf16 %v3194_v62, %v3194_v62  ;;  %v3203_v7 = vpack.c.bf16 %v3195_v38, %v3195_v38  ;;  %s4124_s17 = spop %4123  ;;  %v3175_v0 = vsel %vm1147_vm2, %v6841_v32, %v4223_v50  ;;  %v3176_v52 = vsel %vm1147_vm2, %v6842_v19, %v4224_v51  ;;  %v4076_v62 = vld [vmem:[%s6712_s10 + $0x8] sm:$0xff] (%p1068_p11)  ;;  %v4075_v38 = vld [vmem:[%s6712_s10] sm:$0xff] (%p1068_p11) }
 0x822   : >> { %s2932_s15 = smul.f32 2.0, %s4124_s17  ;;  %v3380_v32 = vld [vmem:[%s4726_s21] sm:$0xff] (%p1068_p11) }
 0x823   : >> { %3212 = vst.msk [vmem:[%s6414_s14 + $0x18] sm:$0xf] %vm687_vm1, %v3202_v53  ;;  %v3384_v19 = vld [vmem:[%s4726_s21 + $0x20] sm:$0xff] (%p1068_p11) }
 0x824   : >> { %3213 = vst.msk [vmem:[%s6414_s14 + $0x1c] sm:$0xf] %vm687_vm1, %v3203_v7  ;;  %s2933_s22 = ssub.f32 %s4122_s30, %s2932_s15 }
 0x825   : >> { %v4262_v1 = vpop.permute.xlu0 %4261 }
 0x826   : >> { %s2934_s23 = sadd.f32 64.0, %s2933_s22  ;;  %v4242_v14 = vpop.permute.xlu1 %4241  ;;  %v4264_v21 = vunpack.i.h.bf16 %v4262_v1  ;;  %v4263_v54 = vunpack.i.l.bf16 %v4262_v1 }
 0x827   : >> { %v4244_v30 = vunpack.i.h.bf16 %v4242_v14  ;;  %v4243_v5 = vunpack.i.l.bf16 %v4242_v14 }
 0x828   : >> { %s2935_s2 = smax.f32 %s4576_s0, %s2934_s23 }
 0x829   : >> { %v2936_v29 = vstv %s2935_s2  ;;  %v3183_v39 = vsel %vm597_vm0, %v3175_v0, %v4243_v5  ;;  %v3184_v3 = vsel %vm597_vm0, %v3176_v52, %v4244_v30 }
 0x82a   : >> { %4468 = vrsqrt.f32 %v2936_v29  ;;  %v3192_v41 = vsel %vm3187_vm12, %v3183_v39, %v4263_v54  ;;  %v3193_v12 = vsel %vm3187_vm12, %v3184_v3, %v4264_v21  ;;  %vm2944_vm2 = vcmp.eq.f32.partialorder %v2936_v29, inf  ;;  %v6499_v21 = vld [vmem:[%s6713_s11] ss:$0 sm:$0xff] (%p1068_p11) }
 0x82b   : >> { %v3200_v40 = vpack.c.bf16 %v3192_v41, %v3192_v41  ;;  %v3201_v56 = vpack.c.bf16 %v3193_v12, %v3193_v12  ;;  %v2947_v4 = vand.u32 2147483648, %v2936_v29  ;;  %vm2946_vm14 = vcmp.eq.f32.partialorder %v2936_v29, 0.0  ;;  %v3388_v41 = vld [vmem:[%s4726_s21 + $0x40] sm:$0xff] (%p1068_p11) }
 0x82d   : >> { %3210 = vst.msk [vmem:[%s6414_s14 + $0x10] sm:$0xf] %vm687_vm1, %v3200_v40 }
 0x82e   : >> { %3211 = vst.msk [vmem:[%s6414_s14 + $0x14] sm:$0xf] %vm687_vm1, %v3201_v56  ;;  %v4257_v44 = vpop.permute.xlu1 %4256 }
 0x82f   : >> { %v4259_v61 = vunpack.i.h.bf16 %v4257_v44  ;;  %v4258_v6 = vunpack.i.l.bf16 %v4257_v44 }
 0x830   : >> { %v4469_v57 = vpop.eup %4468 }
 0x831   : >> { %v3190_v18 = vsel %vm3187_vm12, %v3181_v27, %v4258_v6  ;;  %v3191_v46 = vsel %vm3187_vm12, %v3182_v2, %v4259_v61  ;;  %v2938_v34 = vmul.f32 %v4469_v57, %v2936_v29  ;;  %v3393_v2 = vld [vmem:[%s4726_s21 + $0x68] sm:$0xff] (%p1068_p11) }
 0x832   : >> { %v3198_v35 = vpack.c.bf16 %v3190_v18, %v3190_v18  ;;  %v3199_v37 = vpack.c.bf16 %v3191_v46, %v3191_v46 }
 0x833   : >> { %v2939_v58 = vmul.f32 %v4469_v57, %v2938_v34 }
 0x834   : >> { %3208 = vst.msk [vmem:[%s6414_s14 + $0x8] sm:$0xf] %vm687_vm1, %v3198_v35 }
 0x835   : >> { %3209 = vst.msk [vmem:[%s6414_s14 + $0xc] sm:$0xf] %vm687_vm1, %v3199_v37  ;;  %v2940_v9 = vmul.f32 0.5, %v2939_v58  ;;  %v3386_v37 = vld [vmem:[%s4726_s21 + $0x30] sm:$0xff] (%p1068_p11) }
 0x837   : >> { %v2941_v15 = vsub.f32 1.5, %v2940_v9 }
 0x839   : >> { %v2942_v48 = vmul.f32 %v4469_v57, %v2941_v15  ;;  %v3389_v57 = vld [vmem:[%s4726_s21 + $0x48] sm:$0xff] (%p1068_p11) }
 0x83b   : >> { %v2943_v13 = vmul.f32 %v2942_v48, %v2936_v29 }
 0x83c   : > { %v4069_v7 = vld [vmem:[#allocation5 + $0x10] sm:$0xff] (%p1068_p11)  ;;  %v4071_v51 = vld [vmem:[#allocation5 + $0x20] sm:$0xff] (%p1068_p11)  ;;  %v4068_v1 = vld [vmem:[#allocation5 + $0x8] sm:$0xff] (%p1068_p11) }
 0x83d   : >> { %v2945_v26 = vsel %vm2944_vm2, %v2936_v29, %v2943_v13  ;;  %v4073_v50 = vld [vmem:[#allocation5 + $0x30] sm:$0xff] (%p1068_p11)  ;;  %v4070_v14 = vld [vmem:[#allocation5 + $0x18] sm:$0xff] (%p1068_p11)  ;;  %v4072_v30 = vld [vmem:[#allocation5 + $0x28] sm:$0xff] (%p1068_p11) }
 0x83e   : >> { %v2948_v43 = vsel %vm2946_vm14, %v2947_v4, %v2945_v26  ;;  %v4074_v5 = vld [vmem:[#allocation5 + $0x38] sm:$0xff] (%p1068_p11)  ;;  %v3390_v4 = vld [vmem:[%s4726_s21 + $0x50] sm:$0xff] (%p1068_p11) }
 0x83f   : >> { %4125 = vpush %v2948_v43  ;;  %v3394_v43 = vld [vmem:[%s4726_s21 + $0x70] sm:$0xff] (%p1068_p11) }
 0x840   : >> { %4127 = vpush %v3070_v8 }
 0x870   : >> { %s4126_s0 = spop %4125 }
 0x871   : >> { %v2950_v11 = vstv %s4126_s0  ;;  %s4128_s1 = spop %4127  ;;  %s6565_s0 = smov (%p1068_p11), 0  }
 0x872   : >> { %v6463_v53 = vadd.f32 %v2950_v11, %v6397_v22   ;;  %v3072_v49 = vstv %s4128_s1  ;;  %v4078_v22 = vld [vmem:[%s6712_s10 + $0x18] sm:$0xff] (%p1068_p11) }
 0x873   : >> { %v3073_v45 = vadd.f32 %v3951_v31, %v3072_v49  ;;  %3335 = vmatpush.bf16.msra.mxu0 (%p1068_p11), %v4078_v22  ;;  %4085 = vmatpush.bf16.msra.mxu1 (%p1068_p11), %v4078_v22  ;;  %v3383_v49 = vld [vmem:[%s4726_s21 + $0x18] sm:$0xff] (%p1068_p11) }
 0x874   : >> { %v6845_v63 = vmov %v6463_v53  ;;  %1070 = sbr.rel (!%p1068_p11) target bundleno = 261 (0x105), region = 143  ;;  %4086 = vmatpush.bf16.msra.mxu2 (%p1068_p11), %v4078_v22  ;;  %4087 = vmatpush.bf16.msra.mxu3 (%p1068_p11), %v4078_v22  ;;  %v3387_v22 = vld [vmem:[%s4726_s21 + $0x38] sm:$0xff] (%p1068_p11) }
 0x875   : >> { %v6465_v54 = vadd.f32 -128.0, %v3073_v45   ;;  %v6847_v53 = vmov %v6845_v63 }
 0x876   : > { %v4067_v53 = vld [vmem:[#allocation5] sm:$0xff] (%p1068_p11) }
 0x877   : >> { %v6846_v20 = vmov %v6465_v54  ;;  %3336 = vmatpush.bf16.msra.mxu0 (%p1068_p11), %v4077_v23  ;;  %4088 = vmatpush.bf16.msra.mxu1 (%p1068_p11), %v4077_v23 }
 0x878   : >> { %v6848_v54 = vmov %v6846_v20  ;;  %4089 = vmatpush.bf16.msra.mxu2 (%p1068_p11), %v4077_v23  ;;  %4090 = vmatpush.bf16.msra.mxu3 (%p1068_p11), %v4077_v23 }
 0x87b   : > { %3337 = vmatpush.bf16.msra.mxu0 %v4076_v62  ;;  %4091 = vmatpush.bf16.msra.mxu1 %v4076_v62 }
 0x87c   : > { %4092 = vmatpush.bf16.msra.mxu2 %v4076_v62  ;;  %4093 = vmatpush.bf16.msra.mxu3 %v4076_v62 }
 0x87f   : > { %3338 = vmatpush.bf16.msra.mxu0 %v4075_v38  ;;  %4094 = vmatpush.bf16.msra.mxu1 %v4075_v38 }
 0x880   : > { %4095 = vmatpush.bf16.msra.mxu2 %v4075_v38  ;;  %4096 = vmatpush.bf16.msra.mxu3 %v4075_v38 }
 0x882   : > { %4014 = vmatmul.msk.bf16.vlgmr.msra.gmra.mxu0 %vm1209_vm3, %v4067_v53  ;;  %4016 = vmatmul.msk.bf16.vlgmr.msra.gmra.mxu1 %vm1209_vm3, %v4069_v7 }
 0x883   : > { %4018 = vmatmul.msk.bf16.vlgmr.msra.gmra.mxu2 %vm1209_vm3, %v4071_v51  ;;  %4020 = vmatmul.msk.bf16.vlgmr.msra.gmra.mxu3 %vm1209_vm3, %v4073_v50 }
 0x892   : > { %4015 = vmatmul.msk.bf16.gmra.mxu0 %vm1209_vm3, %v4068_v1  ;;  %4017 = vmatmul.msk.bf16.gmra.mxu1 %vm1209_vm3, %v4070_v14  ;;  %v3391_v1 = vld [vmem:[%s4726_s21 + $0x58] sm:$0xff] }
 0x893   : > { %4019 = vmatmul.msk.bf16.gmra.mxu2 %vm1209_vm3, %v4072_v30  ;;  %4021 = vmatmul.msk.bf16.gmra.mxu3 %vm1209_vm3, %v4074_v5  ;;  %v3395_v30 = vld [vmem:[%s4726_s21 + $0x78] sm:$0xff] }
 0x8ff   : > { %v3340_v54 = vpop.f32.mrf.mxu0  ;;  %v3350_v0 = vpop.f32.mrf.mxu1 }
 0x900   : > { %v3341_v52 = vadd.f32 %v6499_v21, %v3340_v54  ;;  %v3351_v29 = vadd.f32 %v6499_v21, %v3350_v0 }
 0x902   : > { %v3396_v39 = vadd.f32 %v3380_v32, %v3341_v52  ;;  %v3400_v3 = vadd.f32 %v3384_v19, %v3351_v29 }
 0x904   : > { %3412 = vst.msk [vmem:[%s4731_s16] sm:$0xff] %vm597_vm0, %v3396_v39 }
 0x905   : > { %3416 = vst.msk [vmem:[%s4731_s16 + $0x20] sm:$0xff] %vm597_vm0, %v3400_v3 }
 0x906   : > { %v3360_v16 = vpop.f32.mrf.mxu2  ;;  %v3370_v12 = vpop.f32.mrf.mxu3 }
 0x907   : > { %v3361_v55 = vadd.f32 %v6499_v21, %v3360_v16  ;;  %v3371_v40 = vadd.f32 %v6499_v21, %v3370_v12  ;;  %v3342_v56 = vpop.f32.mrf.mxu0  ;;  %v3352_v60 = vpop.f32.mrf.mxu1 }
 0x908   : > { %v3343_v44 = vadd.f32 %v6499_v21, %v3342_v56  ;;  %v3353_v28 = vadd.f32 %v6499_v21, %v3352_v60 }
 0x909   : > { %v3404_v33 = vadd.f32 %v3388_v41, %v3361_v55  ;;  %v3408_v42 = vadd.f32 %v3392_v10, %v3371_v40 }
 0x90a   : > { %v3397_v47 = vadd.f32 %v3381_v17, %v3343_v44  ;;  %v3401_v61 = vadd.f32 %v3385_v36, %v3353_v28 }
 0x90b   : > { %3420 = vst.msk [vmem:[%s4731_s16 + $0x40] sm:$0xff] %vm597_vm0, %v3404_v33 }
 0x90c   : > { %3424 = vst.msk [vmem:[%s4731_s16 + $0x60] sm:$0xff] %vm597_vm0, %v3408_v42 }
 0x90d   : > { %3413 = vst.msk [vmem:[%s4731_s16 + $0x8] sm:$0xff] %vm597_vm0, %v3397_v47 }
 0x90e   : > { %3417 = vst.msk [vmem:[%s4731_s16 + $0x28] sm:$0xff] %vm597_vm0, %v3401_v61  ;;  %v3362_v6 = vpop.f32.mrf.mxu2  ;;  %v3372_v27 = vpop.f32.mrf.mxu3 }
 0x90f   : > { %v3363_v18 = vadd.f32 %v6499_v21, %v3362_v6  ;;  %v3373_v46 = vadd.f32 %v6499_v21, %v3372_v27  ;;  %v3345_v34 = vpop.f32.mrf.mxu0  ;;  %v3355_v35 = vpop.f32.mrf.mxu1 }
 0x910   : > { %v3346_v58 = vadd.f32 %v6499_v21, %v3345_v34  ;;  %v3356_v9 = vadd.f32 %v6499_v21, %v3355_v35 }
 0x911   : > { %v3405_v59 = vadd.f32 %v3389_v57, %v3363_v18  ;;  %v3409_v15 = vadd.f32 %v3393_v2, %v3373_v46 }
 0x912   : > { %v3398_v48 = vadd.f32 %v3382_v25, %v3346_v58  ;;  %v3402_v24 = vadd.f32 %v3386_v37, %v3356_v9 }
 0x913   : > { %3421 = vst.msk [vmem:[%s4731_s16 + $0x48] sm:$0xff] %vm597_vm0, %v3405_v59 }
 0x914   : > { %3425 = vst.msk [vmem:[%s4731_s16 + $0x68] sm:$0xff] %vm597_vm0, %v3409_v15 }
 0x915   : > { %3414 = vst.msk [vmem:[%s4731_s16 + $0x10] sm:$0xff] %vm597_vm0, %v3398_v48 }
 0x916   : > { %3418 = vst.msk [vmem:[%s4731_s16 + $0x30] sm:$0xff] %vm597_vm0, %v3402_v24  ;;  %v3365_v13 = vpop.f32.mrf.mxu2  ;;  %v3375_v26 = vpop.f32.mrf.mxu3 }
 0x917   : > { %v3366_v8 = vadd.f32 %v6499_v21, %v3365_v13  ;;  %v3376_v31 = vadd.f32 %v6499_v21, %v3375_v26  ;;  %v3347_v11 = vpop.f32.mrf.mxu0  ;;  %v3357_v45 = vpop.f32.mrf.mxu1 }
 0x918   : > { %v3348_v23 = vadd.f32 %v6499_v21, %v3347_v11  ;;  %v3358_v62 = vadd.f32 %v6499_v21, %v3357_v45 }
 0x919   : > { %v3406_v38 = vadd.f32 %v3390_v4, %v3366_v8  ;;  %v3410_v53 = vadd.f32 %v3394_v43, %v3376_v31 }
 0x91a   : > { %v3399_v7 = vadd.f32 %v3383_v49, %v3348_v23  ;;  %v3403_v51 = vadd.f32 %v3387_v22, %v3358_v62 }
 0x91b   : > { %3422 = vst.msk [vmem:[%s4731_s16 + $0x50] sm:$0xff] %vm597_vm0, %v3406_v38 }
 0x91c   : > { %3426 = vst.msk [vmem:[%s4731_s16 + $0x70] sm:$0xff] %vm597_vm0, %v3410_v53 }
 0x91d   : > { %3415 = vst.msk [vmem:[%s4731_s16 + $0x18] sm:$0xff] %vm597_vm0, %v3399_v7 }
 0x91e   : > { %3419 = vst.msk [vmem:[%s4731_s16 + $0x38] sm:$0xff] %vm597_vm0, %v3403_v51  ;;  %v3367_v50 = vpop.f32.mrf.mxu2  ;;  %v3377_v14 = vpop.f32.mrf.mxu3 }
 0x91f   : > { %v3368_v5 = vadd.f32 %v6499_v21, %v3367_v50  ;;  %v3378_v54 = vadd.f32 %v6499_v21, %v3377_v14 }
 0x921   : > { %v3407_v32 = vadd.f32 %v3391_v1, %v3368_v5  ;;  %v3411_v0 = vadd.f32 %v3395_v30, %v3378_v54 }
 0x923   : > { %3423 = vst.msk [vmem:[%s4731_s16 + $0x58] sm:$0xff] %vm597_vm0, %v3407_v32 }
 0x924   : > { %3427 = vst.msk [vmem:[%s4731_s16 + $0x78] sm:$0xff] %vm597_vm0, %v3411_v0 }
 0x925 LB: >> { %s4022_s21 = sshll.u32 %s4571_s0, 6  ;;  %s3433_s0 = sadd.s32 1, %s4571_s0   ;;  %s4571_s0 = sphi %s6565_s0, %s3433_s0  }
 0x926   : >> { %s6572_s1 = scalar_lea.vmem %s4731_s16, %s4022_s21  ;;  %p3430_p12 = scmp.ge.s32.totalorder %s3433_s0, 2  }
 0x927   : > { %s3557_s14 = scalar_lea.hbm (%p3430_p12), %s6715_s13, %s4671_s29  ;;  %s3559_s30 = sshll.u32 (%p3430_p12), %s4904_s27, 4  ;;  %vm3537_vm5 = vcmask (%p3430_p12), 8192   ;;  %s3560_s30 = int_to_ptr.vmem [resolvable:$true] %s3559_s30 }
 0x928   : > { %s3561_s17 = sshll.u32 (%p3430_p12), %s3557_s14, 4  ;;  %s6849_s16 = sand.u32 (%p3430_p12), 1, %s4547_s26   ;;  %s3562_s17 = int_to_ptr.hbm [resolvable:$true] %s3561_s17 }
 0x929   : > { %s3545_s15 = scalar_lea.sflag (%p3430_p12), [#allocation7], %s6849_s16  ;;  %s4491_s4 = sshra.s32 (%p3430_p12), %s3562_s17, 4  ;;  %s4492_s4 = int_to_ptr.hbm [resolvable:$true] %s4491_s4 }
 0x92a   : > { %s4493_s22 = scalar_lea.hbm (%p3430_p12), %s4492_s4, 1  ;;  %s4497_s2 = scalar_lea.hbm (%p3430_p12), %s6715_s13, 2 }
 0x92b   : >> { %v6575_v21 = vld [vmem:[%s6572_s1] sm:$0xff]  ;;  %v6578_v19 = vld [vmem:[%s6572_s1 + $0x8] sm:$0xff]  ;;  %v6581_v52 = vld [vmem:[%s6572_s1 + $0x10] sm:$0xff]  ;;  %p4494_p13 = scmp.ne.s32.totalorder (%p3430_p12), %s4492_s4, %s4493_s22  ;;  %p4498_p2 = scmp.lt.s32.totalorder (%p3430_p12), %s4492_s4, %s6715_s13 }
 0x92c   : >> { %v6584_v29 = vld [vmem:[%s6572_s1 + $0x18] sm:$0xff]  ;;  %v3444_v39 = vsel %vm597_vm0, %v6575_v21, 0.0  ;;  %v3445_v3 = vsel %vm597_vm0, %v6578_v19, 0.0  ;;  %v3447_v16 = vsel %vm597_vm0, %v6581_v52, 0.0  ;;  %v3466_v41 = vmul.f32 %v6575_v21, %v6575_v21  ;;  %v6595_v12 = vld [vmem:[%s6572_s1 + $0x20] sm:$0xff]  ;;  %v6604_v17 = vld [vmem:[%s6572_s1 + $0x28] sm:$0xff]  ;;  %p4499_p3 = scmp.lt.s32.totalorder (%p3430_p12), %s4497_s2, %s4493_s22 }
 0x92d   : >> { %v3446_v10 = vadd.f32 %v3445_v3, %v3444_v39  ;;  %v3449_v55 = vsel %vm597_vm0, %v6584_v29, 0.0  ;;  %v3467_v40 = vmul.f32 %v6578_v19, %v6578_v19  ;;  %v3468_v56 = vmul.f32 %v6581_v52, %v6581_v52  ;;  %v6615_v47 = vld [vmem:[%s6572_s1 + $0x30] sm:$0xff]  ;;  %v6624_v46 = vld [vmem:[%s6572_s1 + $0x38] sm:$0xff]  ;;  %p4495_p0 = pnand (%p3430_p12), %p4494_p13, %p4688_p5 }
 0x92e   : >> { %v3469_v36 = vmul.f32 %v6584_v29, %v6584_v29  ;;  %v3451_v44 = vsel %vm597_vm0, %v6595_v12, 0.0  ;;  %v3470_v28 = vmul.f32 %v6595_v12, %v6595_v12  ;;  %v3474_v33 = vsel %vm597_vm0, %v3466_v41, 0.0  ;;  %p4500_p4 = por (%p3430_p12), %p4499_p3, %p4498_p2 }
 0x92f   : >> { %v3448_v60 = vadd.f32 %v3447_v16, %v3446_v10  ;;  %v3475_v42 = vsel %vm597_vm0, %v3467_v40, 0.0  ;;  %v3477_v57 = vsel %vm597_vm0, %v3468_v56, 0.0  ;;  %v3453_v27 = vsel %vm597_vm0, %v6604_v17, 0.0  ;;  %p4496_p1 = pneg (%p3430_p12), %p4495_p0 }
 0x930   : >> { %v3476_v6 = vadd.f32 %v3475_v42, %v3474_v33  ;;  %v3471_v2 = vmul.f32 %v6604_v17, %v6604_v17  ;;  %v3479_v18 = vsel %vm597_vm0, %v3469_v36, 0.0  ;;  %v3455_v35 = vsel %vm597_vm0, %v6615_v47, 0.0 }
 0x931   : >> { %v3450_v61 = vadd.f32 %v3449_v55, %v3448_v60  ;;  %v3472_v37 = vmul.f32 %v6615_v47, %v6615_v47  ;;  %v3481_v58 = vsel %vm597_vm0, %v3470_v28, 0.0  ;;  %v3457_v15 = vsel %vm597_vm0, %v6624_v46, 0.0  ;;  %p4501_p7 = pnand (%p3430_p12), %p4500_p4, %p4496_p1 }
 0x932   : >> { %v3478_v25 = vadd.f32 %v3477_v57, %v3476_v6  ;;  %v3473_v48 = vmul.f32 %v6624_v46, %v6624_v46  ;;  %v3483_v24 = vsel %vm597_vm0, %v3471_v2, 0.0 }
 0x933   : >> { %v3452_v34 = vadd.f32 %v3451_v44, %v3450_v61  ;;  %v3485_v26 = vsel %vm597_vm0, %v3472_v37, 0.0 }
 0x934   : >> { %v3480_v59 = vadd.f32 %v3479_v18, %v3478_v25  ;;  %v3487_v31 = vsel %vm597_vm0, %v3473_v48, 0.0 }
 0x935   : >> { %v3454_v9 = vadd.f32 %v3453_v27, %v3452_v34 }
 0x936   : >> { %v3482_v4 = vadd.f32 %v3481_v58, %v3480_v59 }
 0x937   : >> { %v3456_v13 = vadd.f32 %v3455_v35, %v3454_v9 }
 0x938   : >> { %v3484_v8 = vadd.f32 %v3483_v24, %v3482_v4 }
 0x939   : >> { %v3458_v43 = vadd.f32 %v3457_v15, %v3456_v13 }
 0x93a   : >> { %v3486_v49 = vadd.f32 %v3485_v26, %v3484_v8 }
 0x93b   : >> { %v3459_v11 = vrot.slane %v3458_v43, 4 }
 0x93c   : >> { %v3488_v22 = vadd.f32 %v3487_v31, %v3486_v49 }
 0x93d   : >> { %v3460_v45 = vadd.f32 %v3459_v11, %v3458_v43 }
 0x93e   : >> { %v3489_v62 = vrot.slane %v3488_v22, 4 }
 0x93f   : >> { %v3461_v23 = vrot.slane %v3460_v45, 2 }
 0x940   : >> { %v3490_v53 = vadd.f32 %v3489_v62, %v3488_v22 }
 0x941   : >> { %v3462_v38 = vadd.f32 %v3461_v23, %v3460_v45 }
 0x942   : >> { %v3491_v51 = vrot.slane %v3490_v53, 2 }
 0x943   : >> { %v3463_v7 = vrot.slane %v3462_v38, 1 }
 0x944   : >> { %v3492_v1 = vadd.f32 %v3491_v51, %v3490_v53 }
 0x945   : >> { %v3464_v50 = vadd.f32 %v3463_v7, %v3462_v38 }
 0x946   : >> { %v3493_v30 = vrot.slane %v3492_v1, 1 }
 0x947   : >> { %v3465_v14 = vmul.f32 0.015625, %v3464_v50 }
 0x948   : >> { %v3494_v5 = vadd.f32 %v3493_v30, %v3492_v1 }
 0x949   : >> { %v3496_v54 = vmul.f32 %v3465_v14, %v3465_v14  ;;  %v3498_v40 = vsub.f32 %v6575_v21, %v3465_v14  ;;  %v3499_v56 = vsub.f32 %v6578_v19, %v3465_v14  ;;  %v3500_v60 = vsub.f32 %v6581_v52, %v3465_v14 }
 0x94a   : >> { %v3495_v32 = vmul.f32 0.015625, %v3494_v5  ;;  %v3501_v44 = vsub.f32 %v6584_v29, %v3465_v14  ;;  %v3502_v28 = vsub.f32 %v6595_v12, %v3465_v14  ;;  %v3503_v42 = vsub.f32 %v6604_v17, %v3465_v14 }
 0x94b   : >> { %v3504_v19 = vsub.f32 %v6615_v47, %v3465_v14  ;;  %v3505_v57 = vsub.f32 %v6624_v46, %v3465_v14  ;;  %v3533_v47 = vlaneseq (%p3430_p12) }
 0x94c   : >> { %v3497_v0 = vsub.f32 %v3495_v32, %v3496_v54 }
 0x94d   : > { %v3534_v2 = vand.u32 (%p3430_p12), 127, %v3533_v47 }
 0x94e   : >> { %v3506_v39 = vadd.f32 1e-05, %v3497_v0 }
 0x94f   : > { %vm3535_vm6 = vcmp.eq.s32.totalorder (%p3430_p12), %v3534_v2, 0 }
 0x950   : >> { %4475 = vrsqrt.f32 %v3506_v39  ;;  %vm3513_vm1 = vweird.f32 %v3506_v39  ;;  %v3536_v18 = vsel (%p3430_p12), %vm3535_vm6, %v6846_v20, %v6845_v63 }
 0x951   : > { %3538 = vst.msk [vmem:[%s4904_s27] sm:$0x1] (%p3430_p12), %vm3537_vm5, %v3536_v18 }
 0x956   : >> { %v4476_v3 = vpop.eup %4475 }
 0x957   : >> { %v3508_v16 = vmul.f32 %v4476_v3, %v3506_v39  ;;  %vm3514_vm3 = vweird.f32 %v4476_v3 }
 0x958   : >> { %vm3515_vm15 = vmor %vm3513_vm1, %vm3514_vm3 }
 0x959   : >> { %v3509_v41 = vmul.f32 %v4476_v3, %v3508_v16 }
 0x95b   : >> { %v3510_v10 = vmul.f32 0.5, %v3509_v41 }
 0x95d   : >> { %v3511_v55 = vsub.f32 1.5, %v3510_v10 }
 0x95f   : >> { %v3512_v36 = vmul.f32 %v4476_v3, %v3511_v55 }
 0x961   : >> { %v3516_v33 = vsel %vm3515_vm15, %v4476_v3, %v3512_v36 }
 0x962   : >> { %v3517_v61 = vmul.f32 %v3516_v33, %v3498_v40  ;;  %v3518_v21 = vmul.f32 %v3516_v33, %v3499_v56  ;;  %v3519_v6 = vmul.f32 %v3516_v33, %v3500_v60  ;;  %v3520_v52 = vmul.f32 %v3516_v33, %v3501_v44 }
 0x963   : >> { %v3521_v29 = vmul.f32 %v3516_v33, %v3502_v28  ;;  %v3522_v12 = vmul.f32 %v3516_v33, %v3503_v42  ;;  %v3523_v17 = vmul.f32 %v3516_v33, %v3504_v19  ;;  %v3524_v27 = vmul.f32 %v3516_v33, %v3505_v57 }
 0x964   : >> { %3525 = vst.msk [vmem:[%s6572_s1] sm:$0xff] %vm597_vm0, %v3517_v61 }
 0x965   : >> { %3526 = vst.msk [vmem:[%s6572_s1 + $0x8] sm:$0xff] %vm597_vm0, %v3518_v21 }
 0x966   : >> { %3527 = vst.msk [vmem:[%s6572_s1 + $0x10] sm:$0xff] %vm597_vm0, %v3519_v6 }
 0x967   : >> { %3528 = vst.msk [vmem:[%s6572_s1 + $0x18] sm:$0xff] %vm597_vm0, %v3520_v52  ;;  %3432 = sbr.rel (!%p3430_p12) target bundleno = 2341 (0x925), region = 154 }
 0x968   : >> { %3529 = vst.msk [vmem:[%s6572_s1 + $0x20] sm:$0xff] %vm597_vm0, %v3521_v29 }
 0x969   : >> { %3530 = vst.msk [vmem:[%s6572_s1 + $0x28] sm:$0xff] %vm597_vm0, %v3522_v12 }
 0x96a   : >> { %3531 = vst.msk [vmem:[%s6572_s1 + $0x30] sm:$0xff] %vm597_vm0, %v3523_v17 }
 0x96b   : >> { %3532 = vst.msk [vmem:[%s6572_s1 + $0x38] sm:$0xff] %vm597_vm0, %v3524_v27 }
 0x96c   : > { %4504 = shalt.err (!%p4501_p7)
}
 0x96d   : > { %4129 = dma.vmem_to_hbm [thread:$0]  (%p4688_p5), %s3560_s30, 16, %s3562_s17, %s3545_s15  }
 0x96e PF: > { %p4135_p8 = scmp.ge.s32.totalorder %s4555_s28, 2  ;;  %s3581_s27 = sand.u32 1, %s4543_s25  }
 0x96f   : > { %s3582_s1 = scalar_lea.sflag [#allocation7], %s3581_s27 }
 0x970   : > { %p4132_p9 = pnand %p4135_p8, %p4692_p6 }
 0x972   : > { %p4133_p10 = pneg %p4132_p9 }
 0x974   : > { %4538 = dma.done.wait (%p4133_p10), %s3582_s1, 16  }
 0x975   : > { %4540 = vsyncadd (%p4133_p10), %s3582_s1, 4294967280  ;;  %s6850_s28 = sld [smem:[#allocation10_spill]]  ;;  %s6853_s25 = smov %s4547_s26 }
 0x976   : > { %s6851_s24 = sld [smem:[#allocation9_spill]] }
 0x977   : > { %s6852_s27 = sld [smem:[#allocation11_spill]] }
 0x97b   : > { %p24_p11 = scmp.ge.s32.totalorder %s6850_s28, 4  }
 0x97c   : > { %s6854_s26 = smov %s6851_s24 }
 0x97d   :  { %26 = sbr.rel (!%p24_p11) target bundleno = 8 (0x8), region = 165 }
 0x982   :  { %3587 = vsyncpa [#allocation7], 1 }
 0x983   :  { %3589 = vsyncpa [#allocation7 + $0x1], 1 }

</bundles_post_ra>
